<compile_context>
chip_gen: v7x
topology: tpu7x:2x2x1
jax: 0.10.0
libtpu: 0.0.40
codegen_flags: <defaults>
</compile_context>

<pallas_src>
import functools

import jax
import jax.numpy as jnp
from jax.experimental import pallas as pl
from jax.experimental.pallas import tpu as pltpu

_BN_EPS = 1e-5
_FC_PAD = 128          # lane-dense width for all FC matmuls and the output


# ------------------------------ fused kernel ------------------------------- #

def _lenet5_kernel(
    x_ref,                                     # (B*Hp,  Wp*Cin)
    r1_ref, g1_ref,                            # (5, B*H1, B*Hp), (5, Wp*Cin, H1*6)
    msum1_ref, mexp1_ref, gam1_ref, bet1_ref,  # (H1*6,6), (6,H1*6), (1,6), (1,6)
    pr1_ref, pc1_ref,                          # (B*Q1, B*H1), (H1*6, Q1*6)
    r2_ref, g2_ref,                            # (5, B*H2, B*Q1), (5, Q1*6, H2*16)
    msum2_ref, mexp2_ref, gam2_ref, bet2_ref,
    pr2_ref, pc2_ref,                          # (B*Q2, B*H2), (H2*16, Q2*16)
    selfc_ref, wfc0_ref, bfc0_ref,             # (Q2, B, B*Q2), (Q2, Q2*16, 128), (1,128)
    wfc1_ref, bfc1_ref, wfc2_ref, bfc2_ref,    # (128,128), (1,128), (128,128), (1,128)
    out_ref,                                   # (B, 128)
    *, k, n1, n2, hq2):
  """Whole LeNet5 forward in one kernel; all intermediates live in VMEM."""

  def mm(a, b):
    return jnp.dot(a, b, preferred_element_type=jnp.float32)

  def conv(a, r_ref, g_ref):
    # 5x5 conv == sum over the k kernel rows of
    #   (row-shift selector) @ a @ (banded weight operator)   -- all MXU work.
    acc = mm(mm(r_ref[0], a), g_ref[0])
    for d in range(1, k):
      acc = acc + mm(mm(r_ref[d], a), g_ref[d])
    return acc

  def bn_relu(y, msum_ref, mexp_ref, gam_ref, bet_ref, n):
    # Training-mode BatchNorm2d (module default): single-pass batch stats
    # (sum / sum-of-squares), biased variance, folded scale+shift.
    inv_n = 1.0 / n
    mean = mm(jnp.sum(y, axis=0, keepdims=True), msum_ref[...]) * inv_n      # (1,C)
    msq = mm(jnp.sum(y * y, axis=0, keepdims=True), msum_ref[...]) * inv_n   # (1,C)
    var = msq - mean * mean
    scale = gam_ref[...] * jax.lax.rsqrt(var + _BN_EPS)
    shift = bet_ref[...] - mean * scale
    scale_c = mm(scale, mexp_ref[...])        # broadcast back to (1, W*C)
    shift_c = mm(shift, mexp_ref[...])
    return jnp.maximum(y * scale_c + shift_c, 0.0)

  def pool(y, pr_ref, pc_ref):
    # AvgPool2d(2, 2) == row-pool @ y @ col-pool.
    return mm(pr_ref[...], mm(y, pc_ref[...]))

  # layer 1: Conv(Cin->6, k5, pad already folded into x) + BN + ReLU + AvgPool2
  y = conv(x_ref[...], r1_ref, g1_ref)
  y = bn_relu(y, msum1_ref, mexp1_ref, gam1_ref, bet1_ref, n1)
  y = pool(y, pr1_ref, pc1_ref)

  # layer 2: Conv(6->16, k5, no pad) + BN + ReLU + AvgPool2
  y = conv(y, r2_ref, g2_ref)
  y = bn_relu(y, msum2_ref, mexp2_ref, gam2_ref, bet2_ref, n2)
  y = pool(y, pr2_ref, pc2_ref)

  # flatten (PyTorch NCHW order) is folded into the permuted fc0 weights:
  #   fc0(x) = sum_i (row-selector_i @ y) @ wfc0[i]
  z = mm(mm(selfc_ref[0], y), wfc0_ref[0])
  for i in range(1, hq2):
    z = z + mm(mm(selfc_ref[i], y), wfc0_ref[i])
  z = jnp.maximum(z + bfc0_ref[...], 0.0)                       # fc0 + ReLU
  z = jnp.maximum(mm(z, wfc1_ref[...]) + bfc1_ref[...], 0.0)    # fc1 + ReLU
  out_ref[...] = mm(z, wfc2_ref[...]) + bfc2_ref[...]           # fc2 (128-padded)


# ------------------------- constant operator builders ----------------------- #

def _row_select(batch, h_out, h_in, shift):
  """(batch*h_out, batch*h_in) 0/1 matrix selecting row (b, i + shift)."""
  rows = jnp.arange(batch * h_out)
  cols = (rows // h_out) * h_in + (rows % h_out) + shift
  return (jnp.arange(batch * h_in)[None, :] == cols[:, None]).astype(jnp.float32)


def _banded_weights(w_hwio, w_in, w_out):
  """(k, w_in*cin, w_out*cout) banded operators, one per conv-kernel row di."""
  k, _, cin, cout = w_hwio.shape
  jp = jnp.arange(w_in)[:, None]            # source column j'
  j = jnp.arange(w_out)[None, :]            # output column j
  dj = jp - j
  valid = (dj >= 0) & (dj < k)
  g = w_hwio[:, jnp.clip(dj, 0, k - 1), :, :]           # (k, w_in, w_out, cin, cout)
  g = jnp.where(valid[None, :, :, None, None], g, 0.0)
  g = jnp.transpose(g, (0, 1, 3, 2, 4))                 # (k, w_in, cin, w_out, cout)
  return g.reshape(k, w_in * cin, w_out * cout)


def _pool_rows(batch, h_out, h_in):
  rows = jnp.arange(batch * h_out)
  base = ((rows // h_out) * h_in + 2 * (rows % h_out))[:, None]
  cols = jnp.arange(batch * h_in)[None, :]
  return 0.5 * ((cols == base) | (cols == base + 1)).astype(jnp.float32)


def _pool_cols(w_in, w_out, c):
  jin = jnp.arange(w_in)[:, None]
  jout = jnp.arange(w_out)[None, :]
  m = 0.5 * ((jin == 2 * jout) | (jin == 2 * jout + 1)).astype(jnp.float32)
  return jnp.kron(m, jnp.eye(c, dtype=jnp.float32))     # (w_in*c, w_out*c)


def _chan_fold(w, c):
  return jnp.tile(jnp.eye(c, dtype=jnp.float32), (w, 1))      # (w*c, c)


def _fc_row_select(batch, h, i):
  cols = jnp.arange(batch * h)[None, :]
  return (cols == (jnp.arange(batch) * h + i)[:, None]).astype(jnp.float32)


def build_operators(params, batch, *, num_classes=10, n_input_channels=1,
                    n_input_padding=2, in_hw=28):
  """Precompute every constant operator the fused kernel needs (~1 MiB)."""
  del n_input_channels  # implied by conv1_w
  assert num_classes <= _FC_PAD
  k = params["conv1_w"].shape[0]
  c1 = params["conv1_w"].shape[-1]
  c2 = params["conv2_w"].shape[-1]
  hp = in_hw + 2 * n_input_padding          # padded input    (32)
  h1 = hp - k + 1                           # conv1 output    (28)
  q1 = h1 // 2                              # pool1 output    (14)
  h2 = q1 - k + 1                           # conv2 output    (10)
  q2 = h2 // 2                              # pool2 output    (5)

  r1 = jnp.stack([_row_select(batch, h1, hp, d) for d in range(k)])
  g1 = _banded_weights(params["conv1_w"], hp, h1)
  r2 = jnp.stack([_row_select(batch, h2, q1, d) for d in range(k)])
  g2 = _banded_weights(params["conv2_w"], q1, h2)

  msum1 = _chan_fold(h1, c1)
  msum2 = _chan_fold(h2, c2)
  pr1 = _pool_rows(batch, q1, h1)
  pc1 = _pool_cols(h1, q1, c1)
  pr2 = _pool_rows(batch, q2, h2)
  pc2 = _pool_cols(h2, q2, c2)

  selfc = jnp.stack([_fc_row_select(batch, q2, i) for i in range(q2)])

  # fc0: fold the NCHW flatten (feature index = c*q2*q2 + i*q2 + j) into a
  # permuted weight, one (q2*c2, 128) slab per spatial row i; pad out to 128.
  w0 = params["fc0_w"].reshape(c2, q2, q2, -1)                 # (c, i, j, m)
  w0 = jnp.transpose(w0, (1, 2, 0, 3)).reshape(q2, q2 * c2, -1)
  d0 = w0.shape[-1]
  wfc0 = jnp.pad(w0, ((0, 0), (0, 0), (0, _FC_PAD - d0)))
  bfc0 = jnp.pad(params["fc0_b"], (0, _FC_PAD - d0)).reshape(1, _FC_PAD)

  d1i, d1o = params["fc1_w"].shape
  wfc1 = jnp.pad(params["fc1_w"], ((0, _FC_PAD - d1i), (0, _FC_PAD - d1o)))
  bfc1 = jnp.pad(params["fc1_b"], (0, _FC_PAD - d1o)).reshape(1, _FC_PAD)

  d2i, d2o = params["fc2_w"].shape
  wfc2 = jnp.pad(params["fc2_w"], ((0, _FC_PAD - d2i), (0, _FC_PAD - d2o)))
  bfc2 = jnp.pad(params["fc2_b"], (0, _FC_PAD - d2o)).reshape(1, _FC_PAD)

  ops = (r1, g1,
         msum1, msum1.T,
         params["bn1_g"].reshape(1, c1), params["bn1_b"].reshape(1, c1),
         pr1, pc1,
         r2, g2,
         msum2, msum2.T,
         params["bn2_g"].reshape(1, c2), params["bn2_b"].reshape(1, c2),
         pr2, pc2,
         selfc, wfc0, bfc0, wfc1, bfc1, wfc2, bfc2)
  meta = dict(batch=batch, k=k, hq2=q2, pad=n_input_padding,
              n1=float(batch * h1 * h1), n2=float(batch * h2 * h2),
              num_classes=num_classes)
  return ops, meta


# --------------------------------- forward --------------------------------- #

def lenet5_forward(x_nchw, ops, *, meta):
  """Single-pallas_call LeNet5 forward.  x: (B, Cin, 28, 28) float32 NCHW."""
  assert x_nchw.shape[0] == meta["batch"]
  pad = meta["pad"]
  x = x_nchw.astype(jnp.float32)
  if pad:
    x = jnp.pad(x, ((0, 0), (0, 0), (pad, pad), (pad, pad)))
  # NCHW -> rows=(b, i), cols=(j, c) matrix layout used throughout the kernel.
  x = jnp.transpose(x, (0, 2, 3, 1))
  b, hp, wp, cin = x.shape
  x2d = x.reshape(b * hp, wp * cin)

  kern = functools.partial(_lenet5_kernel, k=meta["k"], n1=meta["n1"],
                           n2=meta["n2"], hq2=meta["hq2"])
  vmem = pl.BlockSpec(memory_space=pltpu.MemorySpace.VMEM)
  out = pl.pallas_call(
      kern,
      out_shape=jax.ShapeDtypeStruct((b, _FC_PAD), jnp.float32),
      in_specs=[vmem] * (1 + len(ops)),
      out_specs=vmem,
  )(x2d, *ops)
  return out[:, :meta["num_classes"]]


# -------------------------------- parameters -------------------------------- #

def init_params(key, num_classes=10, n_input_channels=1):
  """Deterministic synthetic init (PyTorch-style uniform(-1/sqrt(fan_in))).

  Conv biases are intentionally absent: with training-mode BatchNorm (the
  nn.Module default state, implemented here) they are exactly cancelled by
  the batch-mean subtraction, so they are dead parameters for this forward.
  """
  ks = jax.random.split(key, 8)

  def u(k, shape, fan_in):
    bound = 1.0 / jnp.sqrt(jnp.float32(fan_in))
    return jax.random.uniform(k, shape, jnp.float32, -bound, bound)

  p = {}
  p["conv1_w"] = u(ks[0], (5, 5, n_input_channels, 6), 5 * 5 * n_input_channels)
  p["bn1_g"] = jnp.ones((6,), jnp.float32)
  p["bn1_b"] = jnp.zeros((6,), jnp.float32)
  p["conv2_w"] = u(ks[1], (5, 5, 6, 16), 5 * 5 * 6)
  p["bn2_g"] = jnp.ones((16,), jnp.float32)
  p["bn2_b"] = jnp.zeros((16,), jnp.float32)
  p["fc0_w"] = u(ks[2], (400, 120), 400)
  p["fc0_b"] = u(ks[3], (120,), 400)
  p["fc1_w"] = u(ks[4], (120, 84), 120)
  p["fc1_b"] = u(ks[5], (84,), 120)
  p["fc2_w"] = u(ks[6], (84, num_classes), 84)
  p["fc2_b"] = u(ks[7], (num_classes,), 84)
  return p


# ------------------------------ XLA reference ------------------------------- #

def lenet5_reference(params, x_nchw, *, n_input_padding=2):
  """Pure-JAX (XLA) reference, used only to sanity-check the fused kernel."""
  x = x_nchw.astype(jnp.float32)

  def conv(y, w, pad):
    return jax.lax.conv_general_dilated(
        y, w, window_strides=(1, 1), padding=[(pad, pad), (pad, pad)],
        dimension_numbers=("NCHW", "HWIO", "NCHW"))

  def bn_relu(y, g, b):
    mean = jnp.mean(y, axis=(0, 2, 3), keepdims=True)
    var = jnp.mean((y - mean) ** 2, axis=(0, 2, 3), keepdims=True)
    y = (y - mean) * jax.lax.rsqrt(var + _BN_EPS)
    return jnp.maximum(y * g.reshape(1, -1, 1, 1) + b.reshape(1, -1, 1, 1), 0.0)

  def pool(y):
    n, c, h, w = y.shape
    return y.reshape(n, c, h // 2, 2, w // 2, 2).mean(axis=(3, 5))

  y = pool(bn_relu(conv(x, params["conv1_w"], n_input_padding),
                   params["bn1_g"], params["bn1_b"]))
  y = pool(bn_relu(conv(y, params["conv2_w"], 0),
                   params["bn2_g"], params["bn2_b"]))
  y = y.reshape(y.shape[0], -1)                          # NCHW flatten
  y = jnp.maximum(y @ params["fc0_w"] + params["fc0_b"], 0.0)
  y = jnp.maximum(y @ params["fc1_w"] + params["fc1_b"], 0.0)
  return y @ params["fc2_w"] + params["fc2_b"]


if __name__ == "__main__":
  key = jax.random.PRNGKey(0)
  pkey, xkey = jax.random.split(key)
  params = init_params(pkey, num_classes=10, n_input_channels=1)

  # fc0 expects 16*5*5 = 400 features, which (with padding=2) implies a
  # 28x28 single-channel input: the standard MNIST LeNet-5 setup.
  x = jax.random.normal(xkey, (2, 1, 28, 28), dtype=jnp.float32)

  ops, meta = build_operators(params, batch=x.shape[0], num_classes=10,
                              n_input_channels=1, n_input_padding=2)
  forward = jax.jit(functools.partial(lenet5_forward, meta=meta))

  logits = jax.block_until_ready(forward(x, ops))

  assert logits.shape == (2, 10), logits.shape
  assert logits.dtype == jnp.float32, logits.dtype
  assert bool(jnp.all(jnp.isfinite(logits)))

  # Sanity-check the fused kernel against the plain-XLA reference (tolerance
  # is loose because default TPU matmul/conv precisions differ between paths).
  ref = lenet5_reference(params, x, n_input_padding=2)
  err = float(jnp.max(jnp.abs(logits - ref)))
  assert err < 5e-2, err

  print("KERNEL_OK")
</pallas_src>

<mosaic_0001>
module attributes {stable_mosaic.version = 11 : i64} {
  func.func @_lenet5_kernel(%arg0: memref<64x32xf32, #tpu.memory_space<vmem>>, %arg1: memref<5x56x64xf32, #tpu.memory_space<vmem>>, %arg2: memref<5x32x168xf32, #tpu.memory_space<vmem>>, %arg3: memref<168x6xf32, #tpu.memory_space<vmem>>, %arg4: memref<6x168xf32, #tpu.memory_space<vmem>>, %arg5: memref<1x6xf32, #tpu.memory_space<vmem>>, %arg6: memref<1x6xf32, #tpu.memory_space<vmem>>, %arg7: memref<28x56xf32, #tpu.memory_space<vmem>>, %arg8: memref<168x84xf32, #tpu.memory_space<vmem>>, %arg9: memref<5x20x28xf32, #tpu.memory_space<vmem>>, %arg10: memref<5x84x160xf32, #tpu.memory_space<vmem>>, %arg11: memref<160x16xf32, #tpu.memory_space<vmem>>, %arg12: memref<16x160xf32, #tpu.memory_space<vmem>>, %arg13: memref<1x16xf32, #tpu.memory_space<vmem>>, %arg14: memref<1x16xf32, #tpu.memory_space<vmem>>, %arg15: memref<10x20xf32, #tpu.memory_space<vmem>>, %arg16: memref<160x80xf32, #tpu.memory_space<vmem>>, %arg17: memref<5x2x10xf32, #tpu.memory_space<vmem>>, %arg18: memref<5x80x128xf32, #tpu.memory_space<vmem>>, %arg19: memref<1x128xf32, #tpu.memory_space<vmem>>, %arg20: memref<128x128xf32, #tpu.memory_space<vmem>>, %arg21: memref<1x128xf32, #tpu.memory_space<vmem>>, %arg22: memref<128x128xf32, #tpu.memory_space<vmem>>, %arg23: memref<1x128xf32, #tpu.memory_space<vmem>>, %arg24: memref<2x128xf32, #tpu.memory_space<vmem>>) attributes {dimension_semantics = [], scalar_prefetch = 0 : i64, scratch_operands = 0 : i64, tpu.core_type = #tpu.core_type<tc>} {
    %c0 = arith.constant 0 : index
    %c0_0 = arith.constant 0 : index
    %0 = vector.load %arg0[%c0, %c0_0] : memref<64x32xf32, #tpu.memory_space<vmem>>, vector<64x32xf32>
    %c0_1 = arith.constant 0 : index
    %c0_2 = arith.constant 0 : index
    %c0_3 = arith.constant 0 : index
    %1 = vector.load %arg1[%c0_1, %c0_2, %c0_3] : memref<5x56x64xf32, #tpu.memory_space<vmem>>, vector<1x56x64xf32>
    %2 = vector.shape_cast %1 : vector<1x56x64xf32> to vector<56x64xf32>
    %cst = arith.constant dense<0.000000e+00> : vector<56x32xf32>
    %3 = tpu.matmul %2, %0, %cst {dimension_numbers = #tpu.dot_dimension_numbers<[1], [0], [0], [1], [0, 0, 1, 1], [], []>} : vector<56x64xf32>, vector<64x32xf32>, vector<56x32xf32> -> vector<56x32xf32>
    %c0_4 = arith.constant 0 : index
    %c0_5 = arith.constant 0 : index
    %c0_6 = arith.constant 0 : index
    %4 = vector.load %arg2[%c0_4, %c0_5, %c0_6] : memref<5x32x168xf32, #tpu.memory_space<vmem>>, vector<1x32x168xf32>
    %5 = vector.shape_cast %4 : vector<1x32x168xf32> to vector<32x168xf32>
    %cst_7 = arith.constant dense<0.000000e+00> : vector<56x168xf32>
    %6 = tpu.matmul %3, %5, %cst_7 {dimension_numbers = #tpu.dot_dimension_numbers<[1], [0], [0], [1], [0, 0, 1, 1], [], []>} : vector<56x32xf32>, vector<32x168xf32>, vector<56x168xf32> -> vector<56x168xf32>
    %c1 = arith.constant 1 : index
    %c0_8 = arith.constant 0 : index
    %c0_9 = arith.constant 0 : index
    %7 = vector.load %arg1[%c1, %c0_8, %c0_9] : memref<5x56x64xf32, #tpu.memory_space<vmem>>, vector<1x56x64xf32>
    %8 = vector.shape_cast %7 : vector<1x56x64xf32> to vector<56x64xf32>
    %cst_10 = arith.constant dense<0.000000e+00> : vector<56x32xf32>
    %9 = tpu.matmul %8, %0, %cst_10 {dimension_numbers = #tpu.dot_dimension_numbers<[1], [0], [0], [1], [0, 0, 1, 1], [], []>} : vector<56x64xf32>, vector<64x32xf32>, vector<56x32xf32> -> vector<56x32xf32>
    %c1_11 = arith.constant 1 : index
    %c0_12 = arith.constant 0 : index
    %c0_13 = arith.constant 0 : index
    %10 = vector.load %arg2[%c1_11, %c0_12, %c0_13] : memref<5x32x168xf32, #tpu.memory_space<vmem>>, vector<1x32x168xf32>
    %11 = vector.shape_cast %10 : vector<1x32x168xf32> to vector<32x168xf32>
    %cst_14 = arith.constant dense<0.000000e+00> : vector<56x168xf32>
    %12 = tpu.matmul %9, %11, %cst_14 {dimension_numbers = #tpu.dot_dimension_numbers<[1], [0], [0], [1], [0, 0, 1, 1], [], []>} : vector<56x32xf32>, vector<32x168xf32>, vector<56x168xf32> -> vector<56x168xf32>
    %13 = arith.addf %6, %12 : vector<56x168xf32>
    %c2 = arith.constant 2 : index
    %c0_15 = arith.constant 0 : index
    %c0_16 = arith.constant 0 : index
    %14 = vector.load %arg1[%c2, %c0_15, %c0_16] : memref<5x56x64xf32, #tpu.memory_space<vmem>>, vector<1x56x64xf32>
    %15 = vector.shape_cast %14 : vector<1x56x64xf32> to vector<56x64xf32>
    %cst_17 = arith.constant dense<0.000000e+00> : vector<56x32xf32>
    %16 = tpu.matmul %15, %0, %cst_17 {dimension_numbers = #tpu.dot_dimension_numbers<[1], [0], [0], [1], [0, 0, 1, 1], [], []>} : vector<56x64xf32>, vector<64x32xf32>, vector<56x32xf32> -> vector<56x32xf32>
    %c2_18 = arith.constant 2 : index
    %c0_19 = arith.constant 0 : index
    %c0_20 = arith.constant 0 : index
    %17 = vector.load %arg2[%c2_18, %c0_19, %c0_20] : memref<5x32x168xf32, #tpu.memory_space<vmem>>, vector<1x32x168xf32>
    %18 = vector.shape_cast %17 : vector<1x32x168xf32> to vector<32x168xf32>
    %cst_21 = arith.constant dense<0.000000e+00> : vector<56x168xf32>
    %19 = tpu.matmul %16, %18, %cst_21 {dimension_numbers = #tpu.dot_dimension_numbers<[1], [0], [0], [1], [0, 0, 1, 1], [], []>} : vector<56x32xf32>, vector<32x168xf32>, vector<56x168xf32> -> vector<56x168xf32>
    %20 = arith.addf %13, %19 : vector<56x168xf32>
    %c3 = arith.constant 3 : index
    %c0_22 = arith.constant 0 : index
    %c0_23 = arith.constant 0 : index
    %21 = vector.load %arg1[%c3, %c0_22, %c0_23] : memref<5x56x64xf32, #tpu.memory_space<vmem>>, vector<1x56x64xf32>
    %22 = vector.shape_cast %21 : vector<1x56x64xf32> to vector<56x64xf32>
    %cst_24 = arith.constant dense<0.000000e+00> : vector<56x32xf32>
    %23 = tpu.matmul %22, %0, %cst_24 {dimension_numbers = #tpu.dot_dimension_numbers<[1], [0], [0], [1], [0, 0, 1, 1], [], []>} : vector<56x64xf32>, vector<64x32xf32>, vector<56x32xf32> -> vector<56x32xf32>
    %c3_25 = arith.constant 3 : index
    %c0_26 = arith.constant 0 : index
    %c0_27 = arith.constant 0 : index
    %24 = vector.load %arg2[%c3_25, %c0_26, %c0_27] : memref<5x32x168xf32, #tpu.memory_space<vmem>>, vector<1x32x168xf32>
    %25 = vector.shape_cast %24 : vector<1x32x168xf32> to vector<32x168xf32>
    %cst_28 = arith.constant dense<0.000000e+00> : vector<56x168xf32>
    %26 = tpu.matmul %23, %25, %cst_28 {dimension_numbers = #tpu.dot_dimension_numbers<[1], [0], [0], [1], [0, 0, 1, 1], [], []>} : vector<56x32xf32>, vector<32x168xf32>, vector<56x168xf32> -> vector<56x168xf32>
    %27 = arith.addf %20, %26 : vector<56x168xf32>
    %c4 = arith.constant 4 : index
    %c0_29 = arith.constant 0 : index
    %c0_30 = arith.constant 0 : index
    %28 = vector.load %arg1[%c4, %c0_29, %c0_30] : memref<5x56x64xf32, #tpu.memory_space<vmem>>, vector<1x56x64xf32>
    %29 = vector.shape_cast %28 : vector<1x56x64xf32> to vector<56x64xf32>
    %cst_31 = arith.constant dense<0.000000e+00> : vector<56x32xf32>
    %30 = tpu.matmul %29, %0, %cst_31 {dimension_numbers = #tpu.dot_dimension_numbers<[1], [0], [0], [1], [0, 0, 1, 1], [], []>} : vector<56x64xf32>, vector<64x32xf32>, vector<56x32xf32> -> vector<56x32xf32>
    %c4_32 = arith.constant 4 : index
    %c0_33 = arith.constant 0 : index
    %c0_34 = arith.constant 0 : index
    %31 = vector.load %arg2[%c4_32, %c0_33, %c0_34] : memref<5x32x168xf32, #tpu.memory_space<vmem>>, vector<1x32x168xf32>
    %32 = vector.shape_cast %31 : vector<1x32x168xf32> to vector<32x168xf32>
    %cst_35 = arith.constant dense<0.000000e+00> : vector<56x168xf32>
    %33 = tpu.matmul %30, %32, %cst_35 {dimension_numbers = #tpu.dot_dimension_numbers<[1], [0], [0], [1], [0, 0, 1, 1], [], []>} : vector<56x32xf32>, vector<32x168xf32>, vector<56x168xf32> -> vector<56x168xf32>
    %34 = arith.addf %27, %33 : vector<56x168xf32>
    %cst_36 = arith.constant dense<0.000000e+00> : vector<168xf32>
    %35 = vector.multi_reduction <add>, %34, %cst_36 [0] : vector<56x168xf32> to vector<168xf32>
    %36 = vector.shape_cast %35 : vector<168xf32> to vector<1x168xf32>
    %c0_37 = arith.constant 0 : index
    %c0_38 = arith.constant 0 : index
    %37 = vector.load %arg3[%c0_37, %c0_38] : memref<168x6xf32, #tpu.memory_space<vmem>>, vector<168x6xf32>
    %cst_39 = arith.constant dense<0.000000e+00> : vector<1x6xf32>
    %38 = tpu.matmul %36, %37, %cst_39 {dimension_numbers = #tpu.dot_dimension_numbers<[1], [0], [0], [1], [0, 0, 1, 1], [], []>} : vector<1x168xf32>, vector<168x6xf32>, vector<1x6xf32> -> vector<1x6xf32>
    %cst_40 = arith.constant 6.37755089E-4 : f32
    %39 = vector.broadcast %cst_40 : f32 to vector<1x6xf32>
    %40 = arith.mulf %38, %39 : vector<1x6xf32>
    %41 = arith.mulf %34, %34 : vector<56x168xf32>
    %cst_41 = arith.constant dense<0.000000e+00> : vector<168xf32>
    %42 = vector.multi_reduction <add>, %41, %cst_41 [0] : vector<56x168xf32> to vector<168xf32>
    %43 = vector.shape_cast %42 : vector<168xf32> to vector<1x168xf32>
    %c0_42 = arith.constant 0 : index
    %c0_43 = arith.constant 0 : index
    %44 = vector.load %arg3[%c0_42, %c0_43] : memref<168x6xf32, #tpu.memory_space<vmem>>, vector<168x6xf32>
    %cst_44 = arith.constant dense<0.000000e+00> : vector<1x6xf32>
    %45 = tpu.matmul %43, %44, %cst_44 {dimension_numbers = #tpu.dot_dimension_numbers<[1], [0], [0], [1], [0, 0, 1, 1], [], []>} : vector<1x168xf32>, vector<168x6xf32>, vector<1x6xf32> -> vector<1x6xf32>
    %cst_45 = arith.constant 6.37755089E-4 : f32
    %46 = vector.broadcast %cst_45 : f32 to vector<1x6xf32>
    %47 = arith.mulf %45, %46 : vector<1x6xf32>
    %48 = arith.mulf %40, %40 : vector<1x6xf32>
    %49 = arith.subf %47, %48 : vector<1x6xf32>
    %c0_46 = arith.constant 0 : index
    %c0_47 = arith.constant 0 : index
    %50 = vector.load %arg5[%c0_46, %c0_47] : memref<1x6xf32, #tpu.memory_space<vmem>>, vector<1x6xf32>
    %cst_48 = arith.constant 9.99999974E-6 : f32
    %51 = vector.broadcast %cst_48 : f32 to vector<1x6xf32>
    %52 = arith.addf %49, %51 : vector<1x6xf32>
    %53 = math.rsqrt %52 : vector<1x6xf32>
    %54 = arith.mulf %50, %53 : vector<1x6xf32>
    %c0_49 = arith.constant 0 : index
    %c0_50 = arith.constant 0 : index
    %55 = vector.load %arg6[%c0_49, %c0_50] : memref<1x6xf32, #tpu.memory_space<vmem>>, vector<1x6xf32>
    %56 = arith.mulf %40, %54 : vector<1x6xf32>
    %57 = arith.subf %55, %56 : vector<1x6xf32>
    %c0_51 = arith.constant 0 : index
    %c0_52 = arith.constant 0 : index
    %58 = vector.load %arg4[%c0_51, %c0_52] : memref<6x168xf32, #tpu.memory_space<vmem>>, vector<6x168xf32>
    %cst_53 = arith.constant dense<0.000000e+00> : vector<1x168xf32>
    %59 = tpu.matmul %54, %58, %cst_53 {dimension_numbers = #tpu.dot_dimension_numbers<[1], [0], [0], [1], [0, 0, 1, 1], [], []>} : vector<1x6xf32>, vector<6x168xf32>, vector<1x168xf32> -> vector<1x168xf32>
    %c0_54 = arith.constant 0 : index
    %c0_55 = arith.constant 0 : index
    %60 = vector.load %arg4[%c0_54, %c0_55] : memref<6x168xf32, #tpu.memory_space<vmem>>, vector<6x168xf32>
    %cst_56 = arith.constant dense<0.000000e+00> : vector<1x168xf32>
    %61 = tpu.matmul %57, %60, %cst_56 {dimension_numbers = #tpu.dot_dimension_numbers<[1], [0], [0], [1], [0, 0, 1, 1], [], []>} : vector<1x6xf32>, vector<6x168xf32>, vector<1x168xf32> -> vector<1x168xf32>
    %62 = vector.broadcast %59 : vector<1x168xf32> to vector<56x168xf32>
    %63 = arith.mulf %34, %62 : vector<56x168xf32>
    %64 = vector.broadcast %61 : vector<1x168xf32> to vector<56x168xf32>
    %65 = arith.addf %63, %64 : vector<56x168xf32>
    %cst_57 = arith.constant 0.000000e+00 : f32
    %66 = vector.broadcast %cst_57 : f32 to vector<56x168xf32>
    %67 = arith.maximumf %65, %66 : vector<56x168xf32>
    %c0_58 = arith.constant 0 : index
    %c0_59 = arith.constant 0 : index
    %68 = vector.load %arg7[%c0_58, %c0_59] : memref<28x56xf32, #tpu.memory_space<vmem>>, vector<28x56xf32>
    %c0_60 = arith.constant 0 : index
    %c0_61 = arith.constant 0 : index
    %69 = vector.load %arg8[%c0_60, %c0_61] : memref<168x84xf32, #tpu.memory_space<vmem>>, vector<168x84xf32>
    %cst_62 = arith.constant dense<0.000000e+00> : vector<56x84xf32>
    %70 = tpu.matmul %67, %69, %cst_62 {dimension_numbers = #tpu.dot_dimension_numbers<[1], [0], [0], [1], [0, 0, 1, 1], [], []>} : vector<56x168xf32>, vector<168x84xf32>, vector<56x84xf32> -> vector<56x84xf32>
    %cst_63 = arith.constant dense<0.000000e+00> : vector<28x84xf32>
    %71 = tpu.matmul %68, %70, %cst_63 {dimension_numbers = #tpu.dot_dimension_numbers<[1], [0], [0], [1], [0, 0, 1, 1], [], []>} : vector<28x56xf32>, vector<56x84xf32>, vector<28x84xf32> -> vector<28x84xf32>
    %c0_64 = arith.constant 0 : index
    %c0_65 = arith.constant 0 : index
    %c0_66 = arith.constant 0 : index
    %72 = vector.load %arg9[%c0_64, %c0_65, %c0_66] : memref<5x20x28xf32, #tpu.memory_space<vmem>>, vector<1x20x28xf32>
    %73 = vector.shape_cast %72 : vector<1x20x28xf32> to vector<20x28xf32>
    %cst_67 = arith.constant dense<0.000000e+00> : vector<20x84xf32>
    %74 = tpu.matmul %73, %71, %cst_67 {dimension_numbers = #tpu.dot_dimension_numbers<[1], [0], [0], [1], [0, 0, 1, 1], [], []>} : vector<20x28xf32>, vector<28x84xf32>, vector<20x84xf32> -> vector<20x84xf32>
    %c0_68 = arith.constant 0 : index
    %c0_69 = arith.constant 0 : index
    %c0_70 = arith.constant 0 : index
    %75 = vector.load %arg10[%c0_68, %c0_69, %c0_70] : memref<5x84x160xf32, #tpu.memory_space<vmem>>, vector<1x84x160xf32>
    %76 = vector.shape_cast %75 : vector<1x84x160xf32> to vector<84x160xf32>
    %cst_71 = arith.constant dense<0.000000e+00> : vector<20x160xf32>
    %77 = tpu.matmul %74, %76, %cst_71 {dimension_numbers = #tpu.dot_dimension_numbers<[1], [0], [0], [1], [0, 0, 1, 1], [], []>} : vector<20x84xf32>, vector<84x160xf32>, vector<20x160xf32> -> vector<20x160xf32>
    %c1_72 = arith.constant 1 : index
    %c0_73 = arith.constant 0 : index
    %c0_74 = arith.constant 0 : index
    %78 = vector.load %arg9[%c1_72, %c0_73, %c0_74] : memref<5x20x28xf32, #tpu.memory_space<vmem>>, vector<1x20x28xf32>
    %79 = vector.shape_cast %78 : vector<1x20x28xf32> to vector<20x28xf32>
    %cst_75 = arith.constant dense<0.000000e+00> : vector<20x84xf32>
    %80 = tpu.matmul %79, %71, %cst_75 {dimension_numbers = #tpu.dot_dimension_numbers<[1], [0], [0], [1], [0, 0, 1, 1], [], []>} : vector<20x28xf32>, vector<28x84xf32>, vector<20x84xf32> -> vector<20x84xf32>
    %c1_76 = arith.constant 1 : index
    %c0_77 = arith.constant 0 : index
    %c0_78 = arith.constant 0 : index
    %81 = vector.load %arg10[%c1_76, %c0_77, %c0_78] : memref<5x84x160xf32, #tpu.memory_space<vmem>>, vector<1x84x160xf32>
    %82 = vector.shape_cast %81 : vector<1x84x160xf32> to vector<84x160xf32>
    %cst_79 = arith.constant dense<0.000000e+00> : vector<20x160xf32>
    %83 = tpu.matmul %80, %82, %cst_79 {dimension_numbers = #tpu.dot_dimension_numbers<[1], [0], [0], [1], [0, 0, 1, 1], [], []>} : vector<20x84xf32>, vector<84x160xf32>, vector<20x160xf32> -> vector<20x160xf32>
    %84 = arith.addf %77, %83 : vector<20x160xf32>
    %c2_80 = arith.constant 2 : index
    %c0_81 = arith.constant 0 : index
    %c0_82 = arith.constant 0 : index
    %85 = vector.load %arg9[%c2_80, %c0_81, %c0_82] : memref<5x20x28xf32, #tpu.memory_space<vmem>>, vector<1x20x28xf32>
    %86 = vector.shape_cast %85 : vector<1x20x28xf32> to vector<20x28xf32>
    %cst_83 = arith.constant dense<0.000000e+00> : vector<20x84xf32>
    %87 = tpu.matmul %86, %71, %cst_83 {dimension_numbers = #tpu.dot_dimension_numbers<[1], [0], [0], [1], [0, 0, 1, 1], [], []>} : vector<20x28xf32>, vector<28x84xf32>, vector<20x84xf32> -> vector<20x84xf32>
    %c2_84 = arith.constant 2 : index
    %c0_85 = arith.constant 0 : index
    %c0_86 = arith.constant 0 : index
    %88 = vector.load %arg10[%c2_84, %c0_85, %c0_86] : memref<5x84x160xf32, #tpu.memory_space<vmem>>, vector<1x84x160xf32>
    %89 = vector.shape_cast %88 : vector<1x84x160xf32> to vector<84x160xf32>
    %cst_87 = arith.constant dense<0.000000e+00> : vector<20x160xf32>
    %90 = tpu.matmul %87, %89, %cst_87 {dimension_numbers = #tpu.dot_dimension_numbers<[1], [0], [0], [1], [0, 0, 1, 1], [], []>} : vector<20x84xf32>, vector<84x160xf32>, vector<20x160xf32> -> vector<20x160xf32>
    %91 = arith.addf %84, %90 : vector<20x160xf32>
    %c3_88 = arith.constant 3 : index
    %c0_89 = arith.constant 0 : index
    %c0_90 = arith.constant 0 : index
    %92 = vector.load %arg9[%c3_88, %c0_89, %c0_90] : memref<5x20x28xf32, #tpu.memory_space<vmem>>, vector<1x20x28xf32>
    %93 = vector.shape_cast %92 : vector<1x20x28xf32> to vector<20x28xf32>
    %cst_91 = arith.constant dense<0.000000e+00> : vector<20x84xf32>
    %94 = tpu.matmul %93, %71, %cst_91 {dimension_numbers = #tpu.dot_dimension_numbers<[1], [0], [0], [1], [0, 0, 1, 1], [], []>} : vector<20x28xf32>, vector<28x84xf32>, vector<20x84xf32> -> vector<20x84xf32>
    %c3_92 = arith.constant 3 : index
    %c0_93 = arith.constant 0 : index
    %c0_94 = arith.constant 0 : index
    %95 = vector.load %arg10[%c3_92, %c0_93, %c0_94] : memref<5x84x160xf32, #tpu.memory_space<vmem>>, vector<1x84x160xf32>
    %96 = vector.shape_cast %95 : vector<1x84x160xf32> to vector<84x160xf32>
    %cst_95 = arith.constant dense<0.000000e+00> : vector<20x160xf32>
    %97 = tpu.matmul %94, %96, %cst_95 {dimension_numbers = #tpu.dot_dimension_numbers<[1], [0], [0], [1], [0, 0, 1, 1], [], []>} : vector<20x84xf32>, vector<84x160xf32>, vector<20x160xf32> -> vector<20x160xf32>
    %98 = arith.addf %91, %97 : vector<20x160xf32>
    %c4_96 = arith.constant 4 : index
    %c0_97 = arith.constant 0 : index
    %c0_98 = arith.constant 0 : index
    %99 = vector.load %arg9[%c4_96, %c0_97, %c0_98] : memref<5x20x28xf32, #tpu.memory_space<vmem>>, vector<1x20x28xf32>
    %100 = vector.shape_cast %99 : vector<1x20x28xf32> to vector<20x28xf32>
    %cst_99 = arith.constant dense<0.000000e+00> : vector<20x84xf32>
    %101 = tpu.matmul %100, %71, %cst_99 {dimension_numbers = #tpu.dot_dimension_numbers<[1], [0], [0], [1], [0, 0, 1, 1], [], []>} : vector<20x28xf32>, vector<28x84xf32>, vector<20x84xf32> -> vector<20x84xf32>
    %c4_100 = arith.constant 4 : index
    %c0_101 = arith.constant 0 : index
    %c0_102 = arith.constant 0 : index
    %102 = vector.load %arg10[%c4_100, %c0_101, %c0_102] : memref<5x84x160xf32, #tpu.memory_space<vmem>>, vector<1x84x160xf32>
    %103 = vector.shape_cast %102 : vector<1x84x160xf32> to vector<84x160xf32>
    %cst_103 = arith.constant dense<0.000000e+00> : vector<20x160xf32>
    %104 = tpu.matmul %101, %103, %cst_103 {dimension_numbers = #tpu.dot_dimension_numbers<[1], [0], [0], [1], [0, 0, 1, 1], [], []>} : vector<20x84xf32>, vector<84x160xf32>, vector<20x160xf32> -> vector<20x160xf32>
    %105 = arith.addf %98, %104 : vector<20x160xf32>
    %cst_104 = arith.constant dense<0.000000e+00> : vector<160xf32>
    %106 = vector.multi_reduction <add>, %105, %cst_104 [0] : vector<20x160xf32> to vector<160xf32>
    %107 = vector.shape_cast %106 : vector<160xf32> to vector<1x160xf32>
    %c0_105 = arith.constant 0 : index
    %c0_106 = arith.constant 0 : index
    %108 = vector.load %arg11[%c0_105, %c0_106] : memref<160x16xf32, #tpu.memory_space<vmem>>, vector<160x16xf32>
    %cst_107 = arith.constant dense<0.000000e+00> : vector<1x16xf32>
    %109 = tpu.matmul %107, %108, %cst_107 {dimension_numbers = #tpu.dot_dimension_numbers<[1], [0], [0], [1], [0, 0, 1, 1], [], []>} : vector<1x160xf32>, vector<160x16xf32>, vector<1x16xf32> -> vector<1x16xf32>
    %cst_108 = arith.constant 5.000000e-03 : f32
    %110 = vector.broadcast %cst_108 : f32 to vector<1x16xf32>
    %111 = arith.mulf %109, %110 : vector<1x16xf32>
    %112 = arith.mulf %105, %105 : vector<20x160xf32>
    %cst_109 = arith.constant dense<0.000000e+00> : vector<160xf32>
    %113 = vector.multi_reduction <add>, %112, %cst_109 [0] : vector<20x160xf32> to vector<160xf32>
    %114 = vector.shape_cast %113 : vector<160xf32> to vector<1x160xf32>
    %c0_110 = arith.constant 0 : index
    %c0_111 = arith.constant 0 : index
    %115 = vector.load %arg11[%c0_110, %c0_111] : memref<160x16xf32, #tpu.memory_space<vmem>>, vector<160x16xf32>
    %cst_112 = arith.constant dense<0.000000e+00> : vector<1x16xf32>
    %116 = tpu.matmul %114, %115, %cst_112 {dimension_numbers = #tpu.dot_dimension_numbers<[1], [0], [0], [1], [0, 0, 1, 1], [], []>} : vector<1x160xf32>, vector<160x16xf32>, vector<1x16xf32> -> vector<1x16xf32>
    %cst_113 = arith.constant 5.000000e-03 : f32
    %117 = vector.broadcast %cst_113 : f32 to vector<1x16xf32>
    %118 = arith.mulf %116, %117 : vector<1x16xf32>
    %119 = arith.mulf %111, %111 : vector<1x16xf32>
    %120 = arith.subf %118, %119 : vector<1x16xf32>
    %c0_114 = arith.constant 0 : index
    %c0_115 = arith.constant 0 : index
    %121 = vector.load %arg13[%c0_114, %c0_115] : memref<1x16xf32, #tpu.memory_space<vmem>>, vector<1x16xf32>
    %cst_116 = arith.constant 9.99999974E-6 : f32
    %122 = vector.broadcast %cst_116 : f32 to vector<1x16xf32>
    %123 = arith.addf %120, %122 : vector<1x16xf32>
    %124 = math.rsqrt %123 : vector<1x16xf32>
    %125 = arith.mulf %121, %124 : vector<1x16xf32>
    %c0_117 = arith.constant 0 : index
    %c0_118 = arith.constant 0 : index
    %126 = vector.load %arg14[%c0_117, %c0_118] : memref<1x16xf32, #tpu.memory_space<vmem>>, vector<1x16xf32>
    %127 = arith.mulf %111, %125 : vector<1x16xf32>
    %128 = arith.subf %126, %127 : vector<1x16xf32>
    %c0_119 = arith.constant 0 : index
    %c0_120 = arith.constant 0 : index
    %129 = vector.load %arg12[%c0_119, %c0_120] : memref<16x160xf32, #tpu.memory_space<vmem>>, vector<16x160xf32>
    %cst_121 = arith.constant dense<0.000000e+00> : vector<1x160xf32>
    %130 = tpu.matmul %125, %129, %cst_121 {dimension_numbers = #tpu.dot_dimension_numbers<[1], [0], [0], [1], [0, 0, 1, 1], [], []>} : vector<1x16xf32>, vector<16x160xf32>, vector<1x160xf32> -> vector<1x160xf32>
    %c0_122 = arith.constant 0 : index
    %c0_123 = arith.constant 0 : index
    %131 = vector.load %arg12[%c0_122, %c0_123] : memref<16x160xf32, #tpu.memory_space<vmem>>, vector<16x160xf32>
    %cst_124 = arith.constant dense<0.000000e+00> : vector<1x160xf32>
    %132 = tpu.matmul %128, %131, %cst_124 {dimension_numbers = #tpu.dot_dimension_numbers<[1], [0], [0], [1], [0, 0, 1, 1], [], []>} : vector<1x16xf32>, vector<16x160xf32>, vector<1x160xf32> -> vector<1x160xf32>
    %133 = vector.broadcast %130 : vector<1x160xf32> to vector<20x160xf32>
    %134 = arith.mulf %105, %133 : vector<20x160xf32>
    %135 = vector.broadcast %132 : vector<1x160xf32> to vector<20x160xf32>
    %136 = arith.addf %134, %135 : vector<20x160xf32>
    %cst_125 = arith.constant 0.000000e+00 : f32
    %137 = vector.broadcast %cst_125 : f32 to vector<20x160xf32>
    %138 = arith.maximumf %136, %137 : vector<20x160xf32>
    %c0_126 = arith.constant 0 : index
    %c0_127 = arith.constant 0 : index
    %139 = vector.load %arg15[%c0_126, %c0_127] : memref<10x20xf32, #tpu.memory_space<vmem>>, vector<10x20xf32>
    %c0_128 = arith.constant 0 : index
    %c0_129 = arith.constant 0 : index
    %140 = vector.load %arg16[%c0_128, %c0_129] : memref<160x80xf32, #tpu.memory_space<vmem>>, vector<160x80xf32>
    %cst_130 = arith.constant dense<0.000000e+00> : vector<20x80xf32>
    %141 = tpu.matmul %138, %140, %cst_130 {dimension_numbers = #tpu.dot_dimension_numbers<[1], [0], [0], [1], [0, 0, 1, 1], [], []>} : vector<20x160xf32>, vector<160x80xf32>, vector<20x80xf32> -> vector<20x80xf32>
    %cst_131 = arith.constant dense<0.000000e+00> : vector<10x80xf32>
    %142 = tpu.matmul %139, %141, %cst_131 {dimension_numbers = #tpu.dot_dimension_numbers<[1], [0], [0], [1], [0, 0, 1, 1], [], []>} : vector<10x20xf32>, vector<20x80xf32>, vector<10x80xf32> -> vector<10x80xf32>
    %c0_132 = arith.constant 0 : index
    %c0_133 = arith.constant 0 : index
    %c0_134 = arith.constant 0 : index
    %143 = vector.load %arg17[%c0_132, %c0_133, %c0_134] : memref<5x2x10xf32, #tpu.memory_space<vmem>>, vector<1x2x10xf32>
    %144 = vector.shape_cast %143 : vector<1x2x10xf32> to vector<2x10xf32>
    %cst_135 = arith.constant dense<0.000000e+00> : vector<2x80xf32>
    %145 = tpu.matmul %144, %142, %cst_135 {dimension_numbers = #tpu.dot_dimension_numbers<[1], [0], [0], [1], [0, 0, 1, 1], [], []>} : vector<2x10xf32>, vector<10x80xf32>, vector<2x80xf32> -> vector<2x80xf32>
    %c0_136 = arith.constant 0 : index
    %c0_137 = arith.constant 0 : index
    %c0_138 = arith.constant 0 : index
    %146 = vector.load %arg18[%c0_136, %c0_137, %c0_138] : memref<5x80x128xf32, #tpu.memory_space<vmem>>, vector<1x80x128xf32>
    %147 = vector.shape_cast %146 : vector<1x80x128xf32> to vector<80x128xf32>
    %cst_139 = arith.constant dense<0.000000e+00> : vector<2x128xf32>
    %148 = tpu.matmul %145, %147, %cst_139 {dimension_numbers = #tpu.dot_dimension_numbers<[1], [0], [0], [1], [0, 0, 1, 1], [], []>} : vector<2x80xf32>, vector<80x128xf32>, vector<2x128xf32> -> vector<2x128xf32>
    %c1_140 = arith.constant 1 : index
    %c0_141 = arith.constant 0 : index
    %c0_142 = arith.constant 0 : index
    %149 = vector.load %arg17[%c1_140, %c0_141, %c0_142] : memref<5x2x10xf32, #tpu.memory_space<vmem>>, vector<1x2x10xf32>
    %150 = vector.shape_cast %149 : vector<1x2x10xf32> to vector<2x10xf32>
    %cst_143 = arith.constant dense<0.000000e+00> : vector<2x80xf32>
    %151 = tpu.matmul %150, %142, %cst_143 {dimension_numbers = #tpu.dot_dimension_numbers<[1], [0], [0], [1], [0, 0, 1, 1], [], []>} : vector<2x10xf32>, vector<10x80xf32>, vector<2x80xf32> -> vector<2x80xf32>
    %c1_144 = arith.constant 1 : index
    %c0_145 = arith.constant 0 : index
    %c0_146 = arith.constant 0 : index
    %152 = vector.load %arg18[%c1_144, %c0_145, %c0_146] : memref<5x80x128xf32, #tpu.memory_space<vmem>>, vector<1x80x128xf32>
    %153 = vector.shape_cast %152 : vector<1x80x128xf32> to vector<80x128xf32>
    %cst_147 = arith.constant dense<0.000000e+00> : vector<2x128xf32>
    %154 = tpu.matmul %151, %153, %cst_147 {dimension_numbers = #tpu.dot_dimension_numbers<[1], [0], [0], [1], [0, 0, 1, 1], [], []>} : vector<2x80xf32>, vector<80x128xf32>, vector<2x128xf32> -> vector<2x128xf32>
    %155 = arith.addf %148, %154 : vector<2x128xf32>
    %c2_148 = arith.constant 2 : index
    %c0_149 = arith.constant 0 : index
    %c0_150 = arith.constant 0 : index
    %156 = vector.load %arg17[%c2_148, %c0_149, %c0_150] : memref<5x2x10xf32, #tpu.memory_space<vmem>>, vector<1x2x10xf32>
    %157 = vector.shape_cast %156 : vector<1x2x10xf32> to vector<2x10xf32>
    %cst_151 = arith.constant dense<0.000000e+00> : vector<2x80xf32>
    %158 = tpu.matmul %157, %142, %cst_151 {dimension_numbers = #tpu.dot_dimension_numbers<[1], [0], [0], [1], [0, 0, 1, 1], [], []>} : vector<2x10xf32>, vector<10x80xf32>, vector<2x80xf32> -> vector<2x80xf32>
    %c2_152 = arith.constant 2 : index
    %c0_153 = arith.constant 0 : index
    %c0_154 = arith.constant 0 : index
    %159 = vector.load %arg18[%c2_152, %c0_153, %c0_154] : memref<5x80x128xf32, #tpu.memory_space<vmem>>, vector<1x80x128xf32>
    %160 = vector.shape_cast %159 : vector<1x80x128xf32> to vector<80x128xf32>
    %cst_155 = arith.constant dense<0.000000e+00> : vector<2x128xf32>
    %161 = tpu.matmul %158, %160, %cst_155 {dimension_numbers = #tpu.dot_dimension_numbers<[1], [0], [0], [1], [0, 0, 1, 1], [], []>} : vector<2x80xf32>, vector<80x128xf32>, vector<2x128xf32> -> vector<2x128xf32>
    %162 = arith.addf %155, %161 : vector<2x128xf32>
    %c3_156 = arith.constant 3 : index
    %c0_157 = arith.constant 0 : index
    %c0_158 = arith.constant 0 : index
    %163 = vector.load %arg17[%c3_156, %c0_157, %c0_158] : memref<5x2x10xf32, #tpu.memory_space<vmem>>, vector<1x2x10xf32>
    %164 = vector.shape_cast %163 : vector<1x2x10xf32> to vector<2x10xf32>
    %cst_159 = arith.constant dense<0.000000e+00> : vector<2x80xf32>
    %165 = tpu.matmul %164, %142, %cst_159 {dimension_numbers = #tpu.dot_dimension_numbers<[1], [0], [0], [1], [0, 0, 1, 1], [], []>} : vector<2x10xf32>, vector<10x80xf32>, vector<2x80xf32> -> vector<2x80xf32>
    %c3_160 = arith.constant 3 : index
    %c0_161 = arith.constant 0 : index
    %c0_162 = arith.constant 0 : index
    %166 = vector.load %arg18[%c3_160, %c0_161, %c0_162] : memref<5x80x128xf32, #tpu.memory_space<vmem>>, vector<1x80x128xf32>
    %167 = vector.shape_cast %166 : vector<1x80x128xf32> to vector<80x128xf32>
    %cst_163 = arith.constant dense<0.000000e+00> : vector<2x128xf32>
    %168 = tpu.matmul %165, %167, %cst_163 {dimension_numbers = #tpu.dot_dimension_numbers<[1], [0], [0], [1], [0, 0, 1, 1], [], []>} : vector<2x80xf32>, vector<80x128xf32>, vector<2x128xf32> -> vector<2x128xf32>
    %169 = arith.addf %162, %168 : vector<2x128xf32>
    %c4_164 = arith.constant 4 : index
    %c0_165 = arith.constant 0 : index
    %c0_166 = arith.constant 0 : index
    %170 = vector.load %arg17[%c4_164, %c0_165, %c0_166] : memref<5x2x10xf32, #tpu.memory_space<vmem>>, vector<1x2x10xf32>
    %171 = vector.shape_cast %170 : vector<1x2x10xf32> to vector<2x10xf32>
    %cst_167 = arith.constant dense<0.000000e+00> : vector<2x80xf32>
    %172 = tpu.matmul %171, %142, %cst_167 {dimension_numbers = #tpu.dot_dimension_numbers<[1], [0], [0], [1], [0, 0, 1, 1], [], []>} : vector<2x10xf32>, vector<10x80xf32>, vector<2x80xf32> -> vector<2x80xf32>
    %c4_168 = arith.constant 4 : index
    %c0_169 = arith.constant 0 : index
    %c0_170 = arith.constant 0 : index
    %173 = vector.load %arg18[%c4_168, %c0_169, %c0_170] : memref<5x80x128xf32, #tpu.memory_space<vmem>>, vector<1x80x128xf32>
    %174 = vector.shape_cast %173 : vector<1x80x128xf32> to vector<80x128xf32>
    %cst_171 = arith.constant dense<0.000000e+00> : vector<2x128xf32>
    %175 = tpu.matmul %172, %174, %cst_171 {dimension_numbers = #tpu.dot_dimension_numbers<[1], [0], [0], [1], [0, 0, 1, 1], [], []>} : vector<2x80xf32>, vector<80x128xf32>, vector<2x128xf32> -> vector<2x128xf32>
    %176 = arith.addf %169, %175 : vector<2x128xf32>
    %c0_172 = arith.constant 0 : index
    %c0_173 = arith.constant 0 : index
    %177 = vector.load %arg19[%c0_172, %c0_173] : memref<1x128xf32, #tpu.memory_space<vmem>>, vector<1x128xf32>
    %178 = vector.broadcast %177 : vector<1x128xf32> to vector<2x128xf32>
    %179 = arith.addf %176, %178 : vector<2x128xf32>
    %cst_174 = arith.constant 0.000000e+00 : f32
    %180 = vector.broadcast %cst_174 : f32 to vector<2x128xf32>
    %181 = arith.maximumf %179, %180 : vector<2x128xf32>
    %c0_175 = arith.constant 0 : index
    %c0_176 = arith.constant 0 : index
    %182 = vector.load %arg20[%c0_175, %c0_176] : memref<128x128xf32, #tpu.memory_space<vmem>>, vector<128x128xf32>
    %cst_177 = arith.constant dense<0.000000e+00> : vector<2x128xf32>
    %183 = tpu.matmul %181, %182, %cst_177 {dimension_numbers = #tpu.dot_dimension_numbers<[1], [0], [0], [1], [0, 0, 1, 1], [], []>} : vector<2x128xf32>, vector<128x128xf32>, vector<2x128xf32> -> vector<2x128xf32>
    %c0_178 = arith.constant 0 : index
    %c0_179 = arith.constant 0 : index
    %184 = vector.load %arg21[%c0_178, %c0_179] : memref<1x128xf32, #tpu.memory_space<vmem>>, vector<1x128xf32>
    %185 = vector.broadcast %184 : vector<1x128xf32> to vector<2x128xf32>
    %186 = arith.addf %183, %185 : vector<2x128xf32>
    %cst_180 = arith.constant 0.000000e+00 : f32
    %187 = vector.broadcast %cst_180 : f32 to vector<2x128xf32>
    %188 = arith.maximumf %186, %187 : vector<2x128xf32>
    %c0_181 = arith.constant 0 : index
    %c0_182 = arith.constant 0 : index
    %189 = vector.load %arg22[%c0_181, %c0_182] : memref<128x128xf32, #tpu.memory_space<vmem>>, vector<128x128xf32>
    %cst_183 = arith.constant dense<0.000000e+00> : vector<2x128xf32>
    %190 = tpu.matmul %188, %189, %cst_183 {dimension_numbers = #tpu.dot_dimension_numbers<[1], [0], [0], [1], [0, 0, 1, 1], [], []>} : vector<2x128xf32>, vector<128x128xf32>, vector<2x128xf32> -> vector<2x128xf32>
    %c0_184 = arith.constant 0 : index
    %c0_185 = arith.constant 0 : index
    %191 = vector.load %arg23[%c0_184, %c0_185] : memref<1x128xf32, #tpu.memory_space<vmem>>, vector<1x128xf32>
    %192 = vector.broadcast %191 : vector<1x128xf32> to vector<2x128xf32>
    %193 = arith.addf %190, %192 : vector<2x128xf32>
    %c0_186 = arith.constant 0 : index
    %c0_187 = arith.constant 0 : index
    %194 = vector.load %arg24[%c0_186, %c0_187] : memref<2x128xf32, #tpu.memory_space<vmem>>, vector<2x128xf32>
    tpu.vector_store %arg24[%c0_186, %c0_187], %193 {strides = array<i32>} : memref<2x128xf32, #tpu.memory_space<vmem>>, vector<2x128xf32>,
    return
  }
}

</mosaic_0001>

<bundles_post_ra>
// kernel: lenet5_forward.1
= control target key start
LH: loop header
LB: loop body
LE: loop exit
PB: predicated region body
PF: predicated region fallthrough
CT: control target
= control target key end

     0   :  { %s8825_s0 = inlined_call_operand.vmem [shape: f32[64,32], index: 0, kind: input, shape index: {}]   ;;  %s8826_s1 = inlined_call_operand.vmem [shape: f32[5,56,64], index: 1, kind: input, shape index: {}]   ;;  %s8827_s2 = inlined_call_operand.vmem [shape: f32[5,32,168], index: 2, kind: input, shape index: {}]   ;;  %s8828_s3 = inlined_call_operand.vmem [shape: f32[168,6], index: 3, kind: input, shape index: {}]   ;;  %s8829_s4 = inlined_call_operand.vmem [shape: f32[6,168], index: 4, kind: input, shape index: {}]   ;;  %s8830_s5 = inlined_call_operand.vmem [shape: f32[1,6], index: 5, kind: input, shape index: {}]   ;;  %s8831_s6 = inlined_call_operand.vmem [shape: f32[1,6], index: 6, kind: input, shape index: {}]   ;;  %s8832_s7 = inlined_call_operand.vmem [shape: f32[28,56], index: 7, kind: input, shape index: {}]   ;;  %s8833_s8 = inlined_call_operand.vmem [shape: f32[168,84], index: 8, kind: input, shape index: {}]   ;;  %s8834_s9 = inlined_call_operand.vmem [shape: f32[5,20,28], index: 9, kind: input, shape index: {}]   ;;  %s8835_s10 = inlined_call_operand.vmem [shape: f32[5,84,160], index: 10, kind: input, shape index: {}]   ;;  %s8836_s11 = inlined_call_operand.vmem [shape: f32[160,16], index: 11, kind: input, shape index: {}]   ;;  %s8837_s12 = inlined_call_operand.vmem [shape: f32[16,160], index: 12, kind: input, shape index: {}]   ;;  %s8838_s13 = inlined_call_operand.vmem [shape: f32[1,16], index: 13, kind: input, shape index: {}]   ;;  %s8839_s14 = inlined_call_operand.vmem [shape: f32[1,16], index: 14, kind: input, shape index: {}]   ;;  %s8840_s15 = inlined_call_operand.vmem [shape: f32[10,20], index: 15, kind: input, shape index: {}]   ;;  %s8841_s16 = inlined_call_operand.vmem [shape: f32[160,80], index: 16, kind: input, shape index: {}]   ;;  %s8842_s17 = inlined_call_operand.vmem [shape: f32[5,2,10], index: 17, kind: input, shape index: {}]   ;;  %s8843_s18 = inlined_call_operand.vmem [shape: f32[5,80,128], index: 18, kind: input, shape index: {}]   ;;  %s8844_s19 = inlined_call_operand.vmem [shape: f32[1,128], index: 19, kind: input, shape index: {}]   ;;  %s8845_s20 = inlined_call_operand.vmem [shape: f32[128,128], index: 20, kind: input, shape index: {}]   ;;  %s8846_s21 = inlined_call_operand.vmem [shape: f32[1,128], index: 21, kind: input, shape index: {}]   ;;  %s8847_s22 = inlined_call_operand.vmem [shape: f32[128,128], index: 22, kind: input, shape index: {}]   ;;  %s8848_s23 = inlined_call_operand.vmem [shape: f32[1,128], index: 23, kind: input, shape index: {}]   ;;  %s8849_s24 = inlined_call_operand.hbm [shape: f32[2,128], index: 24, kind: output, shape index: {}]  }
   0x1   :  { %8857 = sst [smem:[#allocation5_spill]] %s8825_s0 }
   0x2   :  { %8858 = sst [smem:[#allocation6_spill]] %s8826_s1 }
   0x3   :  { %8859 = sst [smem:[#allocation7_spill]] %s8827_s2 }
   0x4   :  { %8860 = sst [smem:[#allocation8_spill]] %s8828_s3 }
   0x5   :  { %8861 = sst [smem:[#allocation9_spill]] %s8829_s4 }
   0x6   :  { %8862 = sst [smem:[#allocation10_spill]] %s8830_s5 }
   0x7   :  { %8863 = sst [smem:[#allocation11_spill]] %s8831_s6 }
   0x8   :  { %8864 = sst [smem:[#allocation12_spill]] %s8832_s7 }
   0x9   :  { %8865 = sst [smem:[#allocation13_spill]] %s8833_s8 }
   0xa   :  { %s8866_s27 = sld [smem:[#allocation5_spill]]  ;;  %v6695_v3 = vmov 0.0|0.0   ;;  %vm6696_vm0 = vmmov 0   ;;  %v6697_v6 = vmov 0.0   ;;  %s8867_s2 = sld [smem:[#allocation6_spill]]  ;;  %vm93_vm1 = vcmask 523264  }
   0xb   :  { %6012 = vmatprep.subr.bf16.mxu1 %v6695_v3  ;;  %5534 = vmatprep.mubr.msk.f32.mxu1 %vm6696_vm0, %v6697_v6  ;;  %s8868_s7 = sld [smem:[#allocation7_spill]] }
   0xc   :  { %6000 = vmatprep.subr.bf16.mxu0 %v6695_v3  ;;  %5497 = vmatprep.mubr.msk.f32.mxu0 %vm6696_vm0, %v6697_v6 }
  0x10   :  { %v78_v0 = vld [vmem:[%s8866_s27] sm:$0xff]  ;;  %v79_v1 = vld [vmem:[%s8866_s27 + $0x8] sm:$0xff]  ;;  %v80_v2 = vld [vmem:[%s8866_s27 + $0x10] sm:$0xff] }
  0x11   :  { %v6835_v4 = vpack.c.bf16 %v79_v1, %v78_v0  ;;  %v81_v5 = vld [vmem:[%s8866_s27 + $0x18] sm:$0xff]  ;;  %v82_v8 = vld [vmem:[%s8866_s27 + $0x20] sm:$0xff]  ;;  %v83_v9 = vld [vmem:[%s8866_s27 + $0x28] sm:$0xff] }
  0x12   :  { %v6846_v7 = vpack.c.bf16 %v81_v5, %v80_v2  ;;  %v6858_v10 = vpack.c.bf16 %v83_v9, %v82_v8  ;;  %v84_v11 = vld [vmem:[%s8866_s27 + $0x30] sm:$0xff]  ;;  %v85_v12 = vld [vmem:[%s8866_s27 + $0x38] sm:$0xff]  ;;  %v4907_v15 = vld [vmem:[%s8868_s7 + $0x48] sm:$0xff] }
  0x13   :  { %6014 = vmatpush3.bf16.msra.mxu1 %v6835_v4  ;;  %6002 = vmatpush3.bf16.msra.mxu0 %v6835_v4  ;;  %v6870_v13 = vpack.c.bf16 %v85_v12, %v84_v11  ;;  %v4892_v14 = vld [vmem:[%s8867_s2 + $0x38] sm:$0xff]  ;;  %v86_v17 = vld [vmem:[%s8867_s2] sm:$0xff]  ;;  %v4908_v20 = vld [vmem:[%s8868_s7 + $0x50] sm:$0xff] }
  0x14   :  { %6015 = vmatprep.subr.bf16.mxu1 %v6695_v3  ;;  %6003 = vmatprep.subr.bf16.mxu0 %v6695_v3  ;;  %v4909_v16 = vld [vmem:[%s8868_s7 + $0x58] sm:$0xff]  ;;  %v4906_v19 = vld [vmem:[%s8868_s7 + $0x40] sm:$0xff]  ;;  %v4911_v22 = vld [vmem:[%s8868_s7 + $0x68] sm:$0xff] }
  0x15   :  { %v6024_v18 = vpack.c.bf16 %v4909_v16, %v4907_v15  ;;  %v6026_v21 = vpack.c.bf16 %v4908_v20, %v4906_v19  ;;  %v4913_v23 = vld [vmem:[%s8868_s7 + $0x78] sm:$0xff] }
  0x17   :  { %6017 = vmatpush3.bf16.msra.mxu1 %v6846_v7  ;;  %6005 = vmatpush3.bf16.msra.mxu0 %v6846_v7 }
  0x18   :  { %6018 = vmatprep.subr.bf16.mxu1 %v6695_v3  ;;  %6006 = vmatprep.subr.bf16.mxu0 %v6695_v3 }
  0x1b   :  { %6020 = vmatpush3.bf16.msra.mxu1 %v6858_v10  ;;  %6008 = vmatpush3.bf16.msra.mxu0 %v6858_v10 }
  0x1c   :  { %6021 = vmatprep.subr.bf16.mxu1 %v6695_v3  ;;  %6009 = vmatprep.subr.bf16.mxu0 %v6695_v3 }
  0x1f   :  { %6023 = vmatpush3.bf16.msra.mxu1 %v6870_v13  ;;  %6011 = vmatpush3.bf16.msra.mxu0 %v6870_v13 }
  0x20   :  { %6040 = vmatprep.subr.bf16.mxu1 %v6695_v3  ;;  %6025 = vmatprep.subr.bf16.mxu0 %v6024_v18 }
  0x21   :  { %29 = vsyncpa [#allocation3], 0  ;;  %v4910_v24 = vld [vmem:[%s8868_s7 + $0x60] sm:$0xff]  ;;  %v4912_v25 = vld [vmem:[%s8868_s7 + $0x70] sm:$0xff]  ;;  %v6028_v28 = vpack.c.bf16 %v4913_v23, %v4911_v22  ;;  %vm361_vm2 = vcmask 261120   ;;  %s8869_s27 = sld [smem:[#allocation8_spill]] }
  0x22   :  { %5535 = vmatmul.mubr.msk.f32.vlgmr.msra.gmra.mrb[0].mxu1 %vm93_vm1, %v4892_v14  ;;  %5498 = vmatmul.mubr.msk.f32.vlgmr.msra.gmra.mrb[0].mxu0 %vm93_vm1, %v86_v17  ;;  %v4893_v26 = vld [vmem:[%s8867_s2 + $0x40] sm:$0xff]  ;;  %v87_v27 = vld [vmem:[%s8867_s2 + $0x8] sm:$0xff]  ;;  %v6030_v29 = vpack.c.bf16 %v4912_v25, %v4910_v24  ;;  %v88_v31 = vld [vmem:[%s8867_s2 + $0x10] sm:$0xff]  ;;  %vm1470_vm3 = vcmask 326656   ;;  %s8870_s0 = sld [smem:[#allocation9_spill]]  ;;  %vm1719_vm4 = vcmask 1045504  }
  0x23   :  { %5537 = vmatprep.mubr.msk.f32.mxu1 %vm6696_vm0, %v6697_v6  ;;  %6042 = vmatpush3.bf16.msra.mxu1 %v6835_v4  ;;  %v4894_v30 = vld [vmem:[%s8867_s2 + $0x48] sm:$0xff]  ;;  %v4895_v32 = vld [vmem:[%s8867_s2 + $0x50] sm:$0xff]  ;;  %v89_v33 = vld [vmem:[%s8867_s2 + $0x18] sm:$0xff]  ;;  %s8871_s8 = sld [smem:[#allocation13_spill]]  ;;  %s8872_s4 = sld [smem:[#allocation10_spill]]  ;;  %vm1715_vm5 = vcmask 48128  }
  0x24   :  { %5500 = vmatprep.mubr.msk.f32.mxu0 %vm6696_vm0, %v6697_v6  ;;  %6043 = vmatprep.subr.bf16.mxu1 %v6695_v3  ;;  %v4896_v34 = vld [vmem:[%s8867_s2 + $0x58] sm:$0xff]  ;;  %v90_v35 = vld [vmem:[%s8867_s2 + $0x20] sm:$0xff]  ;;  %v91_v37 = vld [vmem:[%s8867_s2 + $0x28] sm:$0xff]  ;;  %s8873_s26 = sld [smem:[#allocation11_spill]]  ;;  %s8874_s6 = sld [smem:[#allocation12_spill]]  ;;  %vm2075_vm6 = vcmask 457728  }
  0x25   :  { %6027 = vmatpush1.bf16.msra.mxu0 %v6026_v21  ;;  %v4897_v36 = vld [vmem:[%s8867_s2 + $0x60] sm:$0xff]  ;;  %v4898_v38 = vld [vmem:[%s8867_s2 + $0x68] sm:$0xff]  ;;  %v92_v39 = vld [vmem:[%s8867_s2 + $0x30] sm:$0xff]  ;;  %vm2186_vm7 = vcmask 1043456   ;;  %vm6698_vm8 = vmmov 1   ;;  %vm2176_vm10 = vcmask 228352  }
  0x26   :  { %5538 = vmatmul.mubr.msk.f32.gmra.mrb[2].mxu1 %vm93_vm1, %v4893_v26  ;;  %5501 = vmatmul.mubr.msk.f32.gmra.mrb[2].mxu0 %vm93_vm1, %v87_v27  ;;  %v4928_v40 = vld [vmem:[%s8867_s2 + $0x70] sm:$0xff]  ;;  %v4929_v41 = vld [vmem:[%s8867_s2 + $0x78] sm:$0xff]  ;;  %v4930_v42 = vld [vmem:[%s8867_s2 + $0x80] sm:$0xff]  ;;  %vm2408_vm11 = vcmask 687104   ;;  %vm3277_vm12 = vcmask 257024   ;;  %vm3493_vm13 = vcmask 130048  }
  0x27   :  { %5540 = vmatprep.mubr.msk.f32.mxu1 %vm6696_vm0, %v6697_v6  ;;  %5503 = vmatprep.mubr.msk.f32.mxu0 %vm6696_vm0, %v6697_v6  ;;  %v4931_v43 = vld [vmem:[%s8867_s2 + $0x88] sm:$0xff]  ;;  %v4932_v44 = vld [vmem:[%s8867_s2 + $0x90] sm:$0xff]  ;;  %v4933_v45 = vld [vmem:[%s8867_s2 + $0x98] sm:$0xff]  ;;  %vm3787_vm14 = vcmask 162816   ;;  %vm3877_vm15 = vcmask 1041408  }
  0x28   :  { %6045 = vmatpush3.bf16.msra.mxu1 %v6846_v7  ;;  %6029 = vmatprep.subr.bf16.mxu0 %v6028_v28  ;;  %v4934_v46 = vld [vmem:[%s8867_s2 + $0xa0] sm:$0xff]  ;;  %v4957_v47 = vld [vmem:[%s8867_s2 + $0xa8] sm:$0xff]  ;;  %v4958_v48 = vld [vmem:[%s8867_s2 + $0xb0] sm:$0xff] }
  0x29   :  { %6046 = vmatprep.subr.bf16.mxu1 %v6695_v3  ;;  %6031 = vmatpush1.bf16.msra.mxu0 %v6030_v29  ;;  %v4959_v49 = vld [vmem:[%s8867_s2 + $0xb8] sm:$0xff]  ;;  %v4960_v50 = vld [vmem:[%s8867_s2 + $0xc0] sm:$0xff]  ;;  %v4961_v51 = vld [vmem:[%s8867_s2 + $0xc8] sm:$0xff] }
  0x2a   :  { %5541 = vmatmul.mubr.msk.f32.gmra.mrb[4].mxu1 %vm93_vm1, %v4894_v30  ;;  %5504 = vmatmul.mubr.msk.f32.gmra.mrb[4].mxu0 %vm93_vm1, %v88_v31  ;;  %v4962_v52 = vld [vmem:[%s8867_s2 + $0xd0] sm:$0xff]  ;;  %v4963_v53 = vld [vmem:[%s8867_s2 + $0xd8] sm:$0xff]  ;;  %v4986_v54 = vld [vmem:[%s8867_s2 + $0xe0] sm:$0xff] }
  0x2b   :  { %5543 = vmatprep.mubr.msk.f32.mxu1 %vm6696_vm0, %v6697_v6  ;;  %5506 = vmatprep.mubr.msk.f32.mxu0 %vm6696_vm0, %v6697_v6  ;;  %v216_v55 = vld [vmem:[%s8868_s7 + $0x8] sm:$0xff]  ;;  %v218_v56 = vld [vmem:[%s8868_s7 + $0x18] sm:$0xff]  ;;  %v4988_v59 = vld [vmem:[%s8867_s2 + $0xf0] sm:$0xff] }
  0x2c   :  { %6048 = vmatpush3.bf16.msra.mxu1 %v6858_v10  ;;  %v4987_v57 = vld [vmem:[%s8867_s2 + $0xe8] sm:$0xff]  ;;  %v6032_v58 = vpack.c.bf16 %v218_v56, %v216_v55  ;;  %v4989_v60 = vld [vmem:[%s8867_s2 + $0xf8] sm:$0xff]  ;;  %v4990_v61 = vld [vmem:[%s8867_s2 + $0x100] sm:$0xff] }
  0x2d   :  { %6049 = vmatprep.subr.bf16.mxu1 %v6695_v3  ;;  %v4991_v62 = vld [vmem:[%s8867_s2 + $0x108] sm:$0xff]  ;;  %v4992_v63 = vld [vmem:[%s8867_s2 + $0x110] sm:$0xff]  ;;  %v215_v0 = vld [vmem:[%s8868_s7] sm:$0xff] }
  0x2e   :  { %5544 = vmatmul.mubr.msk.f32.gmra.mrb[6].mxu1 %vm93_vm1, %v4895_v32  ;;  %5507 = vmatmul.mubr.msk.f32.gmra.mrb[6].mxu0 %vm93_vm1, %v89_v33  ;;  %v217_v1 = vld [vmem:[%s8868_s7 + $0x10] sm:$0xff]  ;;  %v220_v2 = vld [vmem:[%s8868_s7 + $0x28] sm:$0xff]  ;;  %v219_v8 = vld [vmem:[%s8868_s7 + $0x20] sm:$0xff] }
  0x2f   :  { %5546 = vmatprep.mubr.msk.f32.mxu1 %vm6696_vm0, %v6697_v6  ;;  %5509 = vmatprep.mubr.msk.f32.mxu0 %vm6696_vm0, %v6697_v6  ;;  %v6034_v5 = vpack.c.bf16 %v217_v1, %v215_v0  ;;  %v221_v9 = vld [vmem:[%s8868_s7 + $0x30] sm:$0xff]  ;;  %v4943_v12 = vld [vmem:[%s8868_s7 + $0x88] sm:$0xff]  ;;  %vm7657_vm9 = vmpackc.low %vm2186_vm7, %vm6698_vm8 }
  0x30   :  { %6051 = vmatpush3.bf16.msra.mxu1 %v6870_v13  ;;  %6033 = vmatprep.subr.bf16.mxu0 %v6032_v58  ;;  %v6038_v16 = vpack.c.bf16 %v221_v9, %v219_v8 }
  0x31   :  { %6060 = vmatprep.subr.bf16.mxu1 %v6695_v3 }
  0x32   :  { %5547 = vmatmul.mubr.msk.f32.gmra.mrb[8].mxu1 %vm93_vm1, %v4896_v34  ;;  %5510 = vmatmul.mubr.msk.f32.gmra.mrb[8].mxu0 %vm93_vm1, %v90_v35 }
  0x33   :  { %5549 = vmatprep.mubr.msk.f32.mxu1 %vm6696_vm0, %v6697_v6  ;;  %5512 = vmatprep.mubr.msk.f32.mxu0 %vm6696_vm0, %v6697_v6 }
  0x36   :  { %5550 = vmatmul.mubr.msk.f32.gmra.mrb[10].mxu1 %vm93_vm1, %v4897_v36  ;;  %5513 = vmatmul.mubr.msk.f32.gmra.mrb[10].mxu0 %vm93_vm1, %v91_v37 }
  0x37   :  { %5552 = vmatprep.mubr.msk.f32.mxu1 %vm6696_vm0, %v6697_v6  ;;  %5515 = vmatprep.mubr.msk.f32.mxu0 %vm6696_vm0, %v6697_v6 }
  0x3a   :  { %5553 = vmatmul.mubr.msk.f32.gmra.mrb[12].mxu1 %vm93_vm1, %v4898_v38  ;;  %5516 = vmatmul.mubr.msk.f32.gmra.mrb[12].mxu0 %vm93_vm1, %v92_v39  ;;  %v4942_v38 = vld [vmem:[%s8868_s7 + $0x80] sm:$0xff]  ;;  %v4944_v39 = vld [vmem:[%s8868_s7 + $0x90] sm:$0xff] }
  0x3b   :  { %5571 = vmatprep.mubr.msk.f32.mxu1 %vm6696_vm0, %v6697_v6  ;;  %447 = vmatprep.mubr.f32.mxu0 %v6697_v6 }
  0x3e   :  { %5572 = vmatmul.mubr.msk.f32.vlgmr.msra.gmra.mrb[14].mxu1 %vm93_vm1, %v4928_v40 }
  0x3f   :  { %6062 = vmatpush3.bf16.msra.mxu1 %v6835_v4  ;;  %5574 = vmatprep.mubr.msk.f32.mxu1 %vm6696_vm0, %v6697_v6 }
  0x40   :  { %6063 = vmatprep.subr.bf16.mxu1 %v6695_v3 }
  0x42   :  { %5575 = vmatmul.mubr.msk.f32.gmra.mrb[16].mxu1 %vm93_vm1, %v4929_v41  ;;  %v4947_v41 = vld [vmem:[%s8868_s7 + $0xa8] sm:$0xff] }
  0x43   :  { %5577 = vmatprep.mubr.msk.f32.mxu1 %vm6696_vm0, %v6697_v6  ;;  %6065 = vmatpush3.bf16.msra.mxu1 %v6846_v7 }
  0x44   :  { %6066 = vmatprep.subr.bf16.mxu1 %v6695_v3 }
  0x46   :  { %5578 = vmatmul.mubr.msk.f32.gmra.mrb[18].mxu1 %vm93_vm1, %v4930_v42  ;;  %v4949_v42 = vld [vmem:[%s8868_s7 + $0xb8] sm:$0xff] }
  0x47   :  { %5580 = vmatprep.mubr.msk.f32.mxu1 %vm6696_vm0, %v6697_v6  ;;  %6068 = vmatpush3.bf16.msra.mxu1 %v6858_v10 }
  0x48   :  { %6069 = vmatprep.subr.bf16.mxu1 %v6695_v3 }
  0x4a   :  { %5581 = vmatmul.mubr.msk.f32.gmra.mrb[20].mxu1 %vm93_vm1, %v4931_v43 }
  0x4b   :  { %5583 = vmatprep.mubr.msk.f32.mxu1 %vm6696_vm0, %v6697_v6  ;;  %6071 = vmatpush3.bf16.msra.mxu1 %v6870_v13 }
  0x4c   :  { %6080 = vmatprep.subr.bf16.mxu1 %v6695_v3 }
  0x4e   :  { %5584 = vmatmul.mubr.msk.f32.gmra.mrb[22].mxu1 %vm93_vm1, %v4932_v44 }
  0x4f   :  { %5586 = vmatprep.mubr.msk.f32.mxu1 %vm6696_vm0, %v6697_v6 }
  0x52   :  { %5587 = vmatmul.mubr.msk.f32.gmra.mrb[24].mxu1 %vm93_vm1, %v4933_v45 }
  0x53   :  { %5589 = vmatprep.mubr.msk.f32.mxu1 %vm6696_vm0, %v6697_v6 }
  0x56   :  { %5590 = vmatmul.mubr.msk.f32.gmra.mrb[26].mxu1 %vm93_vm1, %v4934_v46  ;;  %v6054_v46 = vpack.c.bf16 %v4944_v39, %v4942_v38  ;;  %v5004_v38 = vld [vmem:[%s8868_s7 + $0x120] sm:$0xff]  ;;  %v5006_v39 = vld [vmem:[%s8868_s7 + $0x130] sm:$0xff] }
  0x57   :  { %5608 = vmatprep.mubr.msk.f32.mxu1 %vm6696_vm0, %v6697_v6 }
  0x5a   :  { %5609 = vmatmul.mubr.msk.f32.vlgmr.msra.gmra.mrb[28].mxu1 %vm93_vm1, %v4957_v47  ;;  %v6056_v47 = vpack.c.bf16 %v4949_v42, %v4947_v41  ;;  %v6098_v42 = vpack.c.bf16 %v5006_v39, %v5004_v38 }
  0x5b   :  { %6082 = vmatpush3.bf16.msra.mxu1 %v6835_v4  ;;  %5611 = vmatprep.mubr.msk.f32.mxu1 %vm6696_vm0, %v6697_v6  ;;  %v222_v4 = vld [vmem:[%s8868_s7 + $0x38] sm:$0xff] }
  0x5c   :  { %6083 = vmatprep.subr.bf16.mxu1 %v6695_v3 }
  0x5e   :  { %5612 = vmatmul.mubr.msk.f32.gmra.mrb[30].mxu1 %vm93_vm1, %v4958_v48  ;;  %v4946_v48 = vld [vmem:[%s8868_s7 + $0xa0] sm:$0xff] }
  0x5f   :  { %5614 = vmatprep.mubr.msk.f32.mxu1 %vm6696_vm0, %v6697_v6  ;;  %6085 = vmatpush3.bf16.msra.mxu1 %v6846_v7  ;;  %v6036_v7 = vpack.c.bf16 %v222_v4, %v220_v2  ;;  %v4971_v2 = vld [vmem:[%s8868_s7 + $0xc0] sm:$0xff]  ;;  %v4973_v4 = vld [vmem:[%s8868_s7 + $0xd0] sm:$0xff] }
  0x60   :  { %6086 = vmatprep.subr.bf16.mxu1 %v6695_v3 }
  0x62   :  { %5615 = vmatmul.mubr.msk.f32.gmra.mrb[32].mxu1 %vm93_vm1, %v4959_v49  ;;  %v4948_v49 = vld [vmem:[%s8868_s7 + $0xb0] sm:$0xff] }
  0x63   :  { %5617 = vmatprep.mubr.msk.f32.mxu1 %vm6696_vm0, %v6697_v6  ;;  %6088 = vmatpush3.bf16.msra.mxu1 %v6858_v10 }
  0x64   :  { %6089 = vmatprep.subr.bf16.mxu1 %v6695_v3 }
  0x66   :  { %5618 = vmatmul.mubr.msk.f32.gmra.mrb[34].mxu1 %vm93_vm1, %v4960_v50 }
  0x67   :  { %5620 = vmatprep.mubr.msk.f32.mxu1 %vm6696_vm0, %v6697_v6  ;;  %6091 = vmatpush3.bf16.msra.mxu1 %v6870_v13  ;;  %v4945_v13 = vld [vmem:[%s8868_s7 + $0x98] sm:$0xff] }
  0x68   :  { %6100 = vmatprep.subr.bf16.mxu1 %v6695_v3  ;;  %v6052_v17 = vpack.c.bf16 %v4945_v13, %v4943_v12  ;;  %v4975_v12 = vld [vmem:[%s8868_s7 + $0xe0] sm:$0xff]  ;;  %v4977_v13 = vld [vmem:[%s8868_s7 + $0xf0] sm:$0xff] }
  0x6a   :  { %5621 = vmatmul.mubr.msk.f32.gmra.mrb[36].mxu1 %vm93_vm1, %v4961_v51  ;;  %v4972_v51 = vld [vmem:[%s8868_s7 + $0xc8] sm:$0xff] }
  0x6b   :  { %5623 = vmatprep.mubr.msk.f32.mxu1 %vm6696_vm0, %v6697_v6 }
  0x6e   :  { %5624 = vmatmul.mubr.msk.f32.gmra.mrb[38].mxu1 %vm93_vm1, %v4962_v52  ;;  %v4974_v52 = vld [vmem:[%s8868_s7 + $0xd8] sm:$0xff] }
  0x6f   :  { %5626 = vmatprep.mubr.msk.f32.mxu1 %vm6696_vm0, %v6697_v6  ;;  %v6072_v55 = vpack.c.bf16 %v4974_v52, %v4972_v51 }
  0x72   :  { %5627 = vmatmul.mubr.msk.f32.gmra.mrb[40].mxu1 %vm93_vm1, %v4963_v53 }
  0x73   :  { %5645 = vmatprep.mubr.msk.f32.mxu1 %vm6696_vm0, %v6697_v6 }
  0x76   :  { %5646 = vmatmul.mubr.msk.f32.vlgmr.msra.gmra.mrb[42].mxu1 %vm93_vm1, %v4986_v54  ;;  %v6058_v54 = vpack.c.bf16 %v4948_v49, %v4946_v48 }
  0x77   :  { %5648 = vmatprep.mubr.msk.f32.mxu1 %vm6696_vm0, %v6697_v6 }
  0x7a   :  { %5649 = vmatmul.mubr.msk.f32.gmra.mrb[44].mxu1 %vm93_vm1, %v4987_v57 }
  0x7b   :  { %5651 = vmatprep.mubr.msk.f32.mxu1 %vm6696_vm0, %v6697_v6 }
  0x7e   :  { %5652 = vmatmul.mubr.msk.f32.gmra.mrb[46].mxu1 %vm93_vm1, %v4988_v59 }
  0x7f   :  { %5654 = vmatprep.mubr.msk.f32.mxu1 %vm6696_vm0, %v6697_v6 }
  0x82   :  { %5655 = vmatmul.mubr.msk.f32.gmra.mrb[48].mxu1 %vm93_vm1, %v4989_v60 }
  0x83   :  { %5657 = vmatprep.mubr.msk.f32.mxu1 %vm6696_vm0, %v6697_v6 }
  0x86   :  { %5658 = vmatmul.mubr.msk.f32.gmra.mrb[50].mxu1 %vm93_vm1, %v4990_v61 }
  0x87   :  { %5660 = vmatprep.mubr.msk.f32.mxu1 %vm6696_vm0, %v6697_v6 }
  0x8a   :  { %5661 = vmatmul.mubr.msk.f32.gmra.mrb[52].mxu1 %vm93_vm1, %v4991_v62 }
  0x8b   :  { %5663 = vmatprep.mubr.msk.f32.mxu1 %vm6696_vm0, %v6697_v6 }
  0x8e   :  { %5664 = vmatmul.mubr.msk.f32.gmra.mrb[54].mxu1 %vm93_vm1, %v4992_v63  ;;  %vm8480_vm1 = vmpackc.low %vm3877_vm15, %vm6698_vm8 }
  0xf5   :  { %v318_v10 = vpop.f32.mrb[0].mxu1  ;;  %v181_v11 = vpop.f32.mrb[0].mxu0 }
  0xf6   :  { %v5536_v14 = vpop.f32.mrb[1].mxu1  ;;  %4914 = vmatmul.mubr.msk.f32.vlgmr.msra.gmra.mrb[14].mxu0 %vm361_vm2, %v318_v10  ;;  %v5499_v15 = vpop.f32.mrb[1].mxu0  ;;  %v6074_v10 = vpack.c.bf16 %v4973_v4, %v4971_v2  ;;  %v1498_v4 = vld [vmem:[%s8869_s27 + $0x40] sm:$0xff] }
  0xf7   :  { %6035 = vmatpush1.bf16.msra.mxu0 %v6034_v5  ;;  %453 = vmatprep.mubr.f32.mxu0 %v6697_v6  ;;  %v4976_v5 = vld [vmem:[%s8868_s7 + $0xe8] sm:$0xff] }
  0xf8   :  { %6037 = vmatprep.subr.bf16.mxu0 %v6036_v7  ;;  %v4978_v7 = vld [vmem:[%s8868_s7 + $0xf8] sm:$0xff]  ;;  %v5001_v15 = vld [vmem:[%s8868_s7 + $0x108] sm:$0xff] }
  0xf9   :  { %v323_v18 = vpop.f32.mrb[2].mxu1  ;;  %v186_v19 = vpop.f32.mrb[2].mxu0 }
  0xfa   :  { %v5539_v20 = vpop.f32.mrb[3].mxu1  ;;  %4915 = vmatmul.mubr.msk.f32.gmra.mrb[16].mxu0 %vm361_vm2, %v323_v18  ;;  %v5502_v21 = vpop.f32.mrb[3].mxu0  ;;  %v6078_v18 = vpack.c.bf16 %v4977_v13, %v4975_v12  ;;  %v1503_v12 = vld [vmem:[%s8869_s27 + $0x68] sm:$0xff] }
  0xfb   :  { %459 = vmatprep.mubr.f32.mxu0 %v6697_v6  ;;  %6039 = vmatpush1.bf16.msra.mxu0 %v6038_v16  ;;  %v5003_v16 = vld [vmem:[%s8868_s7 + $0x118] sm:$0xff] }
  0xfc   :  { %6053 = vmatprep.subr.bf16.mxu0 %v6052_v17 }
  0xfd   :  { %v328_v22 = vpop.f32.mrb[4].mxu1  ;;  %v191_v23 = vpop.f32.mrb[4].mxu0 }
  0xfe   :  { %v5542_v24 = vpop.f32.mrb[5].mxu1  ;;  %4916 = vmatmul.mubr.msk.f32.gmra.mrb[18].mxu0 %vm361_vm2, %v328_v22  ;;  %v5505_v25 = vpop.f32.mrb[5].mxu0 }
  0xff   :  { %465 = vmatprep.mubr.f32.mxu0 %v6697_v6 }
 0x101   :  { %v333_v26 = vpop.f32.mrb[6].mxu1  ;;  %v196_v27 = vpop.f32.mrb[6].mxu0 }
 0x102   :  { %v5545_v28 = vpop.f32.mrb[7].mxu1  ;;  %4917 = vmatmul.mubr.msk.f32.gmra.mrb[20].mxu0 %vm361_vm2, %v333_v26  ;;  %v5508_v29 = vpop.f32.mrb[7].mxu0 }
 0x103   :  { %471 = vmatprep.mubr.f32.mxu0 %v6697_v6 }
 0x105   :  { %v338_v30 = vpop.f32.mrb[8].mxu1  ;;  %v201_v31 = vpop.f32.mrb[8].mxu0 }
 0x106   :  { %v5548_v32 = vpop.f32.mrb[9].mxu1  ;;  %4918 = vmatmul.mubr.msk.f32.gmra.mrb[22].mxu0 %vm361_vm2, %v338_v30  ;;  %v5511_v33 = vpop.f32.mrb[9].mxu0  ;;  %v5000_v30 = vld [vmem:[%s8868_s7 + $0x100] sm:$0xff] }
 0x107   :  { %477 = vmatprep.mubr.f32.mxu0 %v6697_v6  ;;  %v5005_v32 = vld [vmem:[%s8868_s7 + $0x128] sm:$0xff]  ;;  %v5007_v33 = vld [vmem:[%s8868_s7 + $0x138] sm:$0xff] }
 0x109   :  { %v343_v34 = vpop.f32.mrb[10].mxu1  ;;  %v206_v35 = vpop.f32.mrb[10].mxu0 }
 0x10a   :  { %v5551_v36 = vpop.f32.mrb[11].mxu1  ;;  %4919 = vmatmul.mubr.msk.f32.gmra.mrb[24].mxu0 %vm361_vm2, %v343_v34  ;;  %v5514_v37 = vpop.f32.mrb[11].mxu0 }
 0x10b   :  { %483 = vmatprep.mubr.f32.mxu0 %v6697_v6  ;;  %v6096_v37 = vpack.c.bf16 %v5007_v33, %v5005_v32 }
 0x10d   :  { %v348_v40 = vpop.f32.mrb[12].mxu1  ;;  %v211_v43 = vpop.f32.mrb[12].mxu0 }
 0x10e   :  { %v5554_v44 = vpop.f32.mrb[13].mxu1  ;;  %4920 = vmatmul.mubr.msk.f32.gmra.mrb[26].mxu0 %vm361_vm2, %v348_v40  ;;  %v5517_v45 = vpop.f32.mrb[13].mxu0 }
 0x10f   :  { %575 = vmatprep.mubr.f32.mxu0 %v6697_v6 }
 0x111   :  { %v713_v50 = vpop.f32.mrb[14].mxu1 }
 0x112   :  { %4921 = vmatmul.mubr.msk.f32.vlgmr.msra.gmra.mrb[14].mxu0 %vm361_vm2, %v181_v11  ;;  %v5573_v53 = vpop.f32.mrb[15].mxu1  ;;  %v6076_v11 = vpack.c.bf16 %v4978_v7, %v4976_v5  ;;  %v1499_v5 = vld [vmem:[%s8869_s27 + $0x48] sm:$0xff] }
 0x113   :  { %6055 = vmatpush1.bf16.msra.mxu0 %v6054_v46  ;;  %581 = vmatprep.mubr.f32.mxu0 %v6697_v6  ;;  %v7345_v7 = vpack.c.bf16 %v1499_v5, %v1498_v4 }
 0x114   :  { %6057 = vmatprep.subr.bf16.mxu0 %v6056_v47 }
 0x115   :  { %v718_v56 = vpop.f32.mrb[16].mxu1 }
 0x116   :  { %4922 = vmatmul.mubr.msk.f32.gmra.mrb[16].mxu0 %vm361_vm2, %v186_v19  ;;  %v5576_v57 = vpop.f32.mrb[17].mxu1  ;;  %v6092_v19 = vpack.c.bf16 %v5003_v16, %v5001_v15  ;;  %v1505_v15 = vld [vmem:[%s8869_s27 + $0x78] sm:$0xff] }
 0x117   :  { %587 = vmatprep.mubr.f32.mxu0 %v6697_v6  ;;  %6059 = vmatpush1.bf16.msra.mxu0 %v6058_v54 }
 0x118   :  { %6073 = vmatprep.subr.bf16.mxu0 %v6072_v55  ;;  %v1490_v55 = vld [vmem:[%s8869_s27] sm:$0xff] }
 0x119   :  { %v723_v58 = vpop.f32.mrb[18].mxu1 }
 0x11a   :  { %4923 = vmatmul.mubr.msk.f32.gmra.mrb[18].mxu0 %vm361_vm2, %v191_v23  ;;  %v5579_v59 = vpop.f32.mrb[19].mxu1 }
 0x11b   :  { %593 = vmatprep.mubr.f32.mxu0 %v6697_v6  ;;  %v1493_v59 = vld [vmem:[%s8869_s27 + $0x18] sm:$0xff] }
 0x11d   :  { %v728_v60 = vpop.f32.mrb[20].mxu1 }
 0x11e   :  { %4924 = vmatmul.mubr.msk.f32.gmra.mrb[20].mxu0 %vm361_vm2, %v196_v27  ;;  %v5582_v61 = vpop.f32.mrb[21].mxu1 }
 0x11f   :  { %599 = vmatprep.mubr.f32.mxu0 %v6697_v6  ;;  %v1494_v61 = vld [vmem:[%s8869_s27 + $0x20] sm:$0xff] }
 0x121   :  { %v733_v62 = vpop.f32.mrb[22].mxu1 }
 0x122   :  { %4925 = vmatmul.mubr.msk.f32.gmra.mrb[22].mxu0 %vm361_vm2, %v201_v31  ;;  %v5585_v63 = vpop.f32.mrb[23].mxu1  ;;  %v5002_v31 = vld [vmem:[%s8868_s7 + $0x110] sm:$0xff] }
 0x123   :  { %605 = vmatprep.mubr.f32.mxu0 %v6697_v6  ;;  %v6094_v36 = vpack.c.bf16 %v5002_v31, %v5000_v30 }
 0x125   :  { %v738_v0 = vpop.f32.mrb[24].mxu1 }
 0x126   :  { %4926 = vmatmul.mubr.msk.f32.gmra.mrb[24].mxu0 %vm361_vm2, %v206_v35  ;;  %v5588_v1 = vpop.f32.mrb[25].mxu1 }
 0x127   :  { %611 = vmatprep.mubr.f32.mxu0 %v6697_v6  ;;  %v1497_v1 = vld [vmem:[%s8869_s27 + $0x38] sm:$0xff] }
 0x129   :  { %v743_v8 = vpop.f32.mrb[26].mxu1 }
 0x12a   :  { %4927 = vmatmul.mubr.msk.f32.gmra.mrb[26].mxu0 %vm361_vm2, %v211_v43  ;;  %v5591_v9 = vpop.f32.mrb[27].mxu1 }
 0x12b   :  { %841 = vmatprep.mubr.f32.mxu0 %v6697_v6  ;;  %v1501_v9 = vld [vmem:[%s8869_s27 + $0x58] sm:$0xff] }
 0x12d   :  { %v993_v14 = vpop.f32.mrb[28].mxu1 }
 0x12e   :  { %4950 = vmatmul.mubr.msk.f32.vlgmr.msra.gmra.mrb[14].mxu0 %vm361_vm2, %v713_v50  ;;  %v5610_v17 = vpop.f32.mrb[29].mxu1 }
 0x12f   :  { %6075 = vmatpush1.bf16.msra.mxu0 %v6074_v10  ;;  %847 = vmatprep.mubr.f32.mxu0 %v6697_v6  ;;  %v1506_v17 = vld [vmem:[%s8869_s27 + $0x80] sm:$0xff] }
 0x130   :  { %6077 = vmatprep.subr.bf16.mxu0 %v6076_v11  ;;  %v1502_v11 = vld [vmem:[%s8869_s27 + $0x60] sm:$0xff] }
 0x131   :  { %v998_v20 = vpop.f32.mrb[30].mxu1  ;;  %v7365_v13 = vpack.c.bf16 %v1503_v12, %v1502_v11 }
 0x132   :  { %4951 = vmatmul.mubr.msk.f32.gmra.mrb[16].mxu0 %vm361_vm2, %v718_v56  ;;  %v5613_v21 = vpop.f32.mrb[31].mxu1  ;;  %v1491_v56 = vld [vmem:[%s8869_s27 + $0x8] sm:$0xff] }
 0x133   :  { %853 = vmatprep.mubr.f32.mxu0 %v6697_v6  ;;  %6079 = vmatpush1.bf16.msra.mxu0 %v6078_v18  ;;  %v7305_v57 = vpack.c.bf16 %v1491_v56, %v1490_v55  ;;  %v1507_v18 = vld [vmem:[%s8869_s27 + $0x88] sm:$0xff]  ;;  %v1509_v21 = vld [vmem:[%s8869_s27 + $0x98] sm:$0xff] }
 0x134   :  { %6093 = vmatprep.subr.bf16.mxu0 %v6092_v19  ;;  %v7385_v19 = vpack.c.bf16 %v1507_v18, %v1506_v17 }
 0x135   :  { %v1003_v22 = vpop.f32.mrb[32].mxu1  ;;  %6102 = vmatpush1.bf16.msra.mxu1 %v7305_v57 }
 0x136   :  { %4952 = vmatmul.mubr.msk.f32.gmra.mrb[18].mxu0 %vm361_vm2, %v723_v58  ;;  %v5616_v23 = vpop.f32.mrb[33].mxu1  ;;  %6103 = vmatprep.subr.bf16.mxu1 %v6695_v3  ;;  %v1492_v58 = vld [vmem:[%s8869_s27 + $0x10] sm:$0xff] }
 0x137   :  { %859 = vmatprep.mubr.f32.mxu0 %v6697_v6  ;;  %v7402_v23 = vld [vmem:[%s8869_s27 + $0xa0] sm:$0xff] }
 0x139   :  { %v1008_v24 = vpop.f32.mrb[34].mxu1 }
 0x13a   :  { %4953 = vmatmul.mubr.msk.f32.gmra.mrb[20].mxu0 %vm361_vm2, %v728_v60  ;;  %v5619_v25 = vpop.f32.mrb[35].mxu1  ;;  %v7315_v60 = vpack.c.bf16 %v1493_v59, %v1492_v58 }
 0x13b   :  { %865 = vmatprep.mubr.f32.mxu0 %v6697_v6 }
 0x13c   :  { %6105 = vmatpush1.bf16.msra.mxu1 %v7315_v60 }
 0x13d   :  { %v1013_v26 = vpop.f32.mrb[36].mxu1  ;;  %6106 = vmatprep.subr.bf16.mxu1 %v6695_v3 }
 0x13e   :  { %4954 = vmatmul.mubr.msk.f32.gmra.mrb[22].mxu0 %vm361_vm2, %v733_v62  ;;  %v5622_v27 = vpop.f32.mrb[37].mxu1  ;;  %v1495_v62 = vld [vmem:[%s8869_s27 + $0x28] sm:$0xff] }
 0x13f   :  { %871 = vmatprep.mubr.f32.mxu0 %v6697_v6  ;;  %v7325_v63 = vpack.c.bf16 %v1495_v62, %v1494_v61 }
 0x141   :  { %v1018_v28 = vpop.f32.mrb[38].mxu1  ;;  %6108 = vmatpush1.bf16.msra.mxu1 %v7325_v63 }
 0x142   :  { %4955 = vmatmul.mubr.msk.f32.gmra.mrb[24].mxu0 %vm361_vm2, %v738_v0  ;;  %v5625_v29 = vpop.f32.mrb[39].mxu1  ;;  %6109 = vmatprep.subr.bf16.mxu1 %v6695_v3  ;;  %v1496_v0 = vld [vmem:[%s8869_s27 + $0x30] sm:$0xff] }
 0x143   :  { %877 = vmatprep.mubr.f32.mxu0 %v6697_v6  ;;  %v7335_v2 = vpack.c.bf16 %v1497_v1, %v1496_v0 }
 0x145   :  { %v1023_v34 = vpop.f32.mrb[40].mxu1  ;;  %6111 = vmatpush1.bf16.msra.mxu1 %v7335_v2 }
 0x146   :  { %4956 = vmatmul.mubr.msk.f32.gmra.mrb[26].mxu0 %vm361_vm2, %v743_v8  ;;  %v5628_v35 = vpop.f32.mrb[41].mxu1  ;;  %6112 = vmatprep.subr.bf16.mxu1 %v6695_v3  ;;  %v1500_v8 = vld [vmem:[%s8869_s27 + $0x50] sm:$0xff] }
 0x147   :  { %1121 = vmatprep.mubr.f32.mxu0 %v6697_v6  ;;  %v7355_v10 = vpack.c.bf16 %v1501_v9, %v1500_v8 }
 0x149   :  { %v1273_v40 = vpop.f32.mrb[42].mxu1  ;;  %6114 = vmatpush1.bf16.msra.mxu1 %v7345_v7 }
 0x14a   :  { %4979 = vmatmul.mubr.msk.f32.vlgmr.msra.gmra.mrb[14].mxu0 %vm361_vm2, %v993_v14  ;;  %v5647_v41 = vpop.f32.mrb[43].mxu1  ;;  %6115 = vmatprep.subr.bf16.mxu1 %v6695_v3  ;;  %v1504_v14 = vld [vmem:[%s8869_s27 + $0x70] sm:$0xff] }
 0x14b   :  { %6095 = vmatpush1.bf16.msra.mxu0 %v6094_v36  ;;  %1127 = vmatprep.mubr.f32.mxu0 %v6697_v6  ;;  %v7375_v16 = vpack.c.bf16 %v1505_v15, %v1504_v14 }
 0x14c   :  { %6097 = vmatprep.subr.bf16.mxu0 %v6096_v37 }
 0x14d   :  { %v1278_v43 = vpop.f32.mrb[44].mxu1  ;;  %6117 = vmatpush1.bf16.msra.mxu1 %v7355_v10 }
 0x14e   :  { %4980 = vmatmul.mubr.msk.f32.gmra.mrb[16].mxu0 %vm361_vm2, %v998_v20  ;;  %v5650_v44 = vpop.f32.mrb[45].mxu1  ;;  %6118 = vmatprep.subr.bf16.mxu1 %v6695_v3  ;;  %v1508_v20 = vld [vmem:[%s8869_s27 + $0x90] sm:$0xff] }
 0x14f   :  { %1133 = vmatprep.mubr.f32.mxu0 %v6697_v6  ;;  %6099 = vmatpush1.bf16.msra.mxu0 %v6098_v42 }
 0x151   :  { %v1283_v45 = vpop.f32.mrb[46].mxu1  ;;  %6120 = vmatpush1.bf16.msra.mxu1 %v7365_v13 }
 0x152   :  { %4981 = vmatmul.mubr.msk.f32.gmra.mrb[18].mxu0 %vm361_vm2, %v1003_v22  ;;  %v5653_v46 = vpop.f32.mrb[47].mxu1  ;;  %6121 = vmatprep.subr.bf16.mxu1 %v6695_v3  ;;  %v7395_v22 = vpack.c.bf16 %v1509_v21, %v1508_v20 }
 0x153   :  { %1139 = vmatprep.mubr.f32.mxu0 %v6697_v6 }
 0x155   :  { %v1288_v47 = vpop.f32.mrb[48].mxu1  ;;  %6123 = vmatpush1.bf16.msra.mxu1 %v7375_v16 }
 0x156   :  { %4982 = vmatmul.mubr.msk.f32.gmra.mrb[20].mxu0 %vm361_vm2, %v1008_v24  ;;  %v5656_v48 = vpop.f32.mrb[49].mxu1  ;;  %6124 = vmatprep.subr.bf16.mxu1 %v6695_v3 }
 0x157   :  { %1145 = vmatprep.mubr.f32.mxu0 %v6697_v6 }
 0x159   :  { %v1293_v49 = vpop.f32.mrb[50].mxu1  ;;  %6126 = vmatpush1.bf16.msra.mxu1 %v7385_v19 }
 0x15a   :  { %4983 = vmatmul.mubr.msk.f32.gmra.mrb[22].mxu0 %vm361_vm2, %v1013_v26  ;;  %v5659_v50 = vpop.f32.mrb[51].mxu1  ;;  %6127 = vmatprep.subr.bf16.mxu1 %v6695_v3 }
 0x15b   :  { %1151 = vmatprep.mubr.f32.mxu0 %v6697_v6 }
 0x15d   :  { %v1298_v51 = vpop.f32.mrb[52].mxu1  ;;  %6129 = vmatpush1.bf16.msra.mxu1 %v7395_v22 }
 0x15e   :  { %4984 = vmatmul.mubr.msk.f32.gmra.mrb[24].mxu0 %vm361_vm2, %v1018_v28  ;;  %v5662_v52 = vpop.f32.mrb[53].mxu1  ;;  %1554 = vmatprep.subr.mxu1 %v6697_v6 }
 0x15f   :  { %1157 = vmatprep.mubr.f32.mxu0 %v6697_v6 }
 0x161   :  { %v1303_v53 = vpop.f32.mrb[54].mxu1  ;;  %1555 = vmatpush1.msra.mxu1 %v7402_v23 }
 0x162   :  { %4985 = vmatmul.mubr.msk.f32.gmra.mrb[26].mxu0 %vm361_vm2, %v1023_v34  ;;  %v5665_v54 = vpop.f32.mrb[55].mxu1  ;;  %6130 = vmatprep.subr.bf16.mxu1 %v6695_v3 }
 0x163   :  { %1401 = vmatprep.mubr.f32.mxu0 %v6697_v6 }
 0x166   :  { %5008 = vmatmul.mubr.msk.f32.vlgmr.msra.gmra.mrb[14].mxu0 %vm361_vm2, %v1273_v40 }
 0x167   :  { %1407 = vmatprep.mubr.f32.mxu0 %v6697_v6 }
 0x16a   :  { %5009 = vmatmul.mubr.msk.f32.gmra.mrb[16].mxu0 %vm361_vm2, %v1278_v43 }
 0x16b   :  { %1413 = vmatprep.mubr.f32.mxu0 %v6697_v6 }
 0x16e   :  { %5010 = vmatmul.mubr.msk.f32.gmra.mrb[18].mxu0 %vm361_vm2, %v1283_v45 }
 0x16f   :  { %1419 = vmatprep.mubr.f32.mxu0 %v6697_v6 }
 0x172   :  { %5011 = vmatmul.mubr.msk.f32.gmra.mrb[20].mxu0 %vm361_vm2, %v1288_v47 }
 0x173   :  { %1425 = vmatprep.mubr.f32.mxu0 %v6697_v6 }
 0x176   :  { %5012 = vmatmul.mubr.msk.f32.gmra.mrb[22].mxu0 %vm361_vm2, %v1293_v49 }
 0x177   :  { %1431 = vmatprep.mubr.f32.mxu0 %v6697_v6 }
 0x17a   :  { %5013 = vmatmul.mubr.msk.f32.gmra.mrb[24].mxu0 %vm361_vm2, %v1298_v51 }
 0x17b   :  { %1437 = vmatprep.mubr.f32.mxu0 %v6697_v6 }
 0x17e   :  { %5014 = vmatmul.mubr.msk.f32.gmra.mrb[26].mxu0 %vm361_vm2, %v1303_v53 }
 0x17f   :  { %1790 = vmatprep.mubr.f32.mxu0 %v6697_v6 }
 0x239   :  { %v7406_v24 = vpop.f32.mrb[14].mxu0 }
 0x23a   :  { %v7408_v25 = vpop.f32.mrb[15].mxu0  ;;  %v1585_v28 = vmul.f32 %v7406_v24, %v7406_v24 }
 0x23b   :  { %v1586_v26 = vmul.f32 %v7408_v25, %v7408_v25  ;;  %v1471_v32 = vsel %vm1470_vm3, %v7408_v25, 0.0 }
 0x23d   :  { %v7412_v27 = vpop.f32.mrb[16].mxu0  ;;  %v1611_v37 = vsel %vm1470_vm3, %v1586_v26, 0.0 }
 0x23e   :  { %v1458_v29 = vadd.f32 %v7412_v27, %v7406_v24  ;;  %v1587_v30 = vmul.f32 %v7412_v27, %v7412_v27  ;;  %v7420_v31 = vpop.f32.mrb[17].mxu0 }
 0x23f   :  { %v1472_v33 = vsel %vm1470_vm3, %v7420_v31, 0.0  ;;  %v1588_v34 = vmul.f32 %v7420_v31, %v7420_v31 }
 0x240   :  { %v1599_v35 = vadd.f32 %v1587_v30, %v1585_v28  ;;  %v1473_v36 = vadd.f32 %v1472_v33, %v1471_v32 }
 0x241   :  { %v1612_v38 = vsel %vm1470_vm3, %v1588_v34, 0.0  ;;  %v7430_v39 = vpop.f32.mrb[18].mxu0 }
 0x242   :  { %v1613_v40 = vadd.f32 %v1612_v38, %v1611_v37  ;;  %v1459_v41 = vadd.f32 %v1458_v29, %v7430_v39  ;;  %v1589_v42 = vmul.f32 %v7430_v39, %v7430_v39  ;;  %v7435_v43 = vpop.f32.mrb[19].mxu0 }
 0x243   :  { %v1474_v44 = vsel %vm1470_vm3, %v7435_v43, 0.0  ;;  %v1590_v45 = vmul.f32 %v7435_v43, %v7435_v43 }
 0x244   :  { %v1600_v46 = vadd.f32 %v1599_v35, %v1589_v42  ;;  %v1475_v47 = vadd.f32 %v1474_v44, %v1473_v36 }
 0x245   :  { %v1614_v48 = vsel %vm1470_vm3, %v1590_v45, 0.0  ;;  %v7442_v49 = vpop.f32.mrb[20].mxu0 }
 0x246   :  { %v1615_v50 = vadd.f32 %v1614_v48, %v1613_v40  ;;  %v1460_v51 = vadd.f32 %v1459_v41, %v7442_v49  ;;  %v1591_v52 = vmul.f32 %v7442_v49, %v7442_v49  ;;  %v7447_v53 = vpop.f32.mrb[21].mxu0 }
 0x247   :  { %v1476_v54 = vsel %vm1470_vm3, %v7447_v53, 0.0  ;;  %v1592_v55 = vmul.f32 %v7447_v53, %v7447_v53 }
 0x248   :  { %v1601_v56 = vadd.f32 %v1600_v46, %v1591_v52  ;;  %v1477_v58 = vadd.f32 %v1476_v54, %v1475_v47 }
 0x249   :  { %v1616_v59 = vsel %vm1470_vm3, %v1592_v55, 0.0  ;;  %v7454_v61 = vpop.f32.mrb[22].mxu0 }
 0x24a   :  { %v1617_v62 = vadd.f32 %v1616_v59, %v1615_v50  ;;  %v1461_v0 = vadd.f32 %v1460_v51, %v7454_v61  ;;  %v1593_v1 = vmul.f32 %v7454_v61, %v7454_v61  ;;  %v7459_v4 = vpop.f32.mrb[23].mxu0 }
 0x24b   :  { %v1478_v5 = vsel %vm1470_vm3, %v7459_v4, 0.0  ;;  %v1594_v8 = vmul.f32 %v7459_v4, %v7459_v4 }
 0x24c   :  { %v1602_v9 = vadd.f32 %v1601_v56, %v1593_v1  ;;  %v1479_v11 = vadd.f32 %v1478_v5, %v1477_v58 }
 0x24d   :  { %v1618_v12 = vsel %vm1470_vm3, %v1594_v8, 0.0  ;;  %v7466_v14 = vpop.f32.mrb[24].mxu0 }
 0x24e   :  { %v1619_v15 = vadd.f32 %v1618_v12, %v1617_v62  ;;  %v1462_v17 = vadd.f32 %v1461_v0, %v7466_v14  ;;  %v1595_v18 = vmul.f32 %v7466_v14, %v7466_v14  ;;  %v7471_v20 = vpop.f32.mrb[25].mxu0  ;;  %v1936_v12 = vld [vmem:[%s8871_s8 + $0x18] sm:$0xff] }
 0x24f   :  { %v1480_v21 = vsel %vm1470_vm3, %v7471_v20, 0.0  ;;  %v1596_v26 = vmul.f32 %v7471_v20, %v7471_v20 }
 0x250   :  { %v1603_v28 = vadd.f32 %v1602_v9, %v1595_v18  ;;  %v1481_v29 = vadd.f32 %v1480_v21, %v1479_v11  ;;  %v1938_v18 = vld [vmem:[%s8871_s8 + $0x28] sm:$0xff] }
 0x251   :  { %v1620_v30 = vsel %vm1470_vm3, %v1596_v26, 0.0  ;;  %v7478_v32 = vpop.f32.mrb[26].mxu0  ;;  %v1939_v26 = vld [vmem:[%s8871_s8 + $0x30] sm:$0xff] }
 0x252   :  { %v1621_v33 = vadd.f32 %v1620_v30, %v1619_v15  ;;  %v1463_v34 = vadd.f32 %v1462_v17, %v7478_v32  ;;  %v1597_v35 = vmul.f32 %v7478_v32, %v7478_v32  ;;  %v7483_v36 = vpop.f32.mrb[27].mxu0  ;;  %v1937_v17 = vld [vmem:[%s8871_s8 + $0x20] sm:$0xff] }
 0x253   :  { %v1482_v37 = vsel %vm1470_vm3, %v7483_v36, 0.0  ;;  %v1598_v38 = vmul.f32 %v7483_v36, %v7483_v36  ;;  %v6167_v21 = vpack.c.bf16 %v1938_v18, %v1937_v17  ;;  %v1941_v30 = vld [vmem:[%s8871_s8 + $0x40] sm:$0xff] }
 0x254   :  { %v1464_v40 = vrot.slane %v1463_v34, 4  ;;  %v1604_v41 = vadd.f32 %v1603_v28, %v1597_v35  ;;  %v1483_v42 = vadd.f32 %v1482_v37, %v1481_v29  ;;  %v1940_v28 = vld [vmem:[%s8871_s8 + $0x38] sm:$0xff]  ;;  %v1943_v35 = vld [vmem:[%s8871_s8 + $0x50] sm:$0xff] }
 0x255   :  { %v1622_v44 = vsel %vm1470_vm3, %v1598_v38, 0.0  ;;  %v6170_v29 = vpack.c.bf16 %v1940_v28, %v1939_v26  ;;  %v1944_v37 = vld [vmem:[%s8871_s8 + $0x58] sm:$0xff] }
 0x256   :  { %v1465_v45 = vadd.f32 %v1464_v40, %v1463_v34  ;;  %v1484_v46 = vrot.slane %v1483_v42, 4  ;;  %v1623_v47 = vadd.f32 %v1622_v44, %v1621_v33  ;;  %v1942_v33 = vld [vmem:[%s8871_s8 + $0x48] sm:$0xff]  ;;  %v6176_v38 = vpack.c.bf16 %v1944_v37, %v1943_v35  ;;  %v1945_v40 = vld [vmem:[%s8871_s8 + $0x60] sm:$0xff] }
 0x257   :  { %v6173_v34 = vpack.c.bf16 %v1942_v33, %v1941_v30 }
 0x258   :  { %v1466_v48 = vrot.slane %v1465_v45, 2  ;;  %v1485_v50 = vadd.f32 %v1484_v46, %v1483_v42  ;;  %v1624_v51 = vrot.slane %v1623_v47, 4 }
 0x25a   :  { %v1467_v52 = vadd.f32 %v1466_v48, %v1465_v45  ;;  %v1486_v54 = vrot.slane %v1485_v50, 2  ;;  %v1625_v55 = vadd.f32 %v1624_v51, %v1623_v47 }
 0x25c   :  { %v1487_v56 = vadd.f32 %v1486_v54, %v1485_v50  ;;  %v1626_v58 = vrot.slane %v1625_v55, 2  ;;  %v1468_v59 = vrot.slane %v1467_v52, 1 }
 0x25e   :  { %v1488_v62 = vrot.slane %v1487_v56, 1  ;;  %v1627_v0 = vadd.f32 %v1626_v58, %v1625_v55  ;;  %v1469_v8 = vadd.f32 %v1468_v59, %v1467_v52  ;;  %v1706_v55 = vld [vmem:[%s8872_s4] sm:$0x1] }
 0x25f   :  { %v1710_v59 = vld [vmem:[%s8873_s26] sm:$0x1] }
 0x260   :  { %v1489_v1 = vadd.f32 %v1488_v62, %v1487_v56  ;;  %v1628_v5 = vrot.slane %v1627_v0, 1 }
 0x262   :  { %5015 = vmatprep.mubr.msk.f32.mxu1 %vm1470_vm3, %v1489_v1  ;;  %v1629_v9 = vadd.f32 %v1628_v5, %v1627_v0  ;;  %v1947_v1 = vld [vmem:[%s8871_s8 + $0x70] sm:$0xff]  ;;  %v1948_v5 = vld [vmem:[%s8871_s8 + $0x78] sm:$0xff] }
 0x263   :  { %1579 = vmatmul.mubr.f32.vlgmr.msra.gmra.mrb[56].mxu1 %v1469_v8  ;;  %v6182_v8 = vpack.c.bf16 %v1948_v5, %v1947_v1  ;;  %v1929_v5 = vld [vmem:[%s8874_s6] sm:$0xff] }
 0x264   :  { %6132 = vmatpush1.bf16.msra.mxu1 %v7305_v57  ;;  %5016 = vmatprep.mubr.msk.f32.mxu1 %vm1470_vm3, %v1629_v9  ;;  %v1605_v57 = vrot.slane %v1604_v41, 4  ;;  %v1949_v9 = vld [vmem:[%s8871_s8 + $0x80] sm:$0xff] }
 0x265   :  { %6133 = vmatprep.subr.bf16.mxu1 %v6695_v3 }
 0x268   :  { %6135 = vmatpush1.bf16.msra.mxu1 %v7315_v60  ;;  %v1606_v60 = vadd.f32 %v1605_v57, %v1604_v41  ;;  %v1946_v41 = vld [vmem:[%s8871_s8 + $0x68] sm:$0xff] }
 0x269   :  { %6136 = vmatprep.subr.bf16.mxu1 %v6695_v3  ;;  %v6179_v42 = vpack.c.bf16 %v1946_v41, %v1945_v40  ;;  %v1950_v57 = vld [vmem:[%s8871_s8 + $0x88] sm:$0xff] }
 0x26c   :  { %6138 = vmatpush1.bf16.msra.mxu1 %v7325_v63  ;;  %v1607_v63 = vrot.slane %v1606_v60, 2 }
 0x26d   :  { %6139 = vmatprep.subr.bf16.mxu1 %v6695_v3 }
 0x270   :  { %6141 = vmatpush1.bf16.msra.mxu1 %v7335_v2  ;;  %v1608_v2 = vadd.f32 %v1607_v63, %v1606_v60  ;;  %v6185_v60 = vpack.c.bf16 %v1950_v57, %v1949_v9  ;;  %v1951_v63 = vld [vmem:[%s8871_s8 + $0x90] sm:$0xff] }
 0x271   :  { %6142 = vmatprep.subr.bf16.mxu1 %v6695_v3 }
 0x274   :  { %6144 = vmatpush1.bf16.msra.mxu1 %v7345_v7  ;;  %v1609_v7 = vrot.slane %v1608_v2, 1 }
 0x275   :  { %6145 = vmatprep.subr.bf16.mxu1 %v6695_v3 }
 0x278   :  { %6147 = vmatpush1.bf16.msra.mxu1 %v7355_v10  ;;  %v1610_v10 = vadd.f32 %v1609_v7, %v1608_v2  ;;  %v1952_v2 = vld [vmem:[%s8871_s8 + $0x98] sm:$0xff] }
 0x279   :  { %6148 = vmatprep.subr.bf16.mxu1 %v6695_v3  ;;  %v6188_v7 = vpack.c.bf16 %v1952_v2, %v1951_v63 }
 0x27c   :  { %6150 = vmatpush1.bf16.msra.mxu1 %v7365_v13  ;;  %v1714_v13 = vld [vmem:[%s8870_s0 + $0x8] sm:$0x3f] }
 0x27d   :  { %6151 = vmatprep.subr.bf16.mxu1 %v6695_v3  ;;  %5017 = vmatprep.subr.msk.mxu0 %vm1719_vm4, %v1714_v13 }
 0x280   :  { %6153 = vmatpush1.bf16.msra.mxu1 %v7375_v16  ;;  %v1713_v16 = vld [vmem:[%s8870_s0] sm:$0x3f] }
 0x281   :  { %6154 = vmatprep.subr.bf16.mxu1 %v6695_v3  ;;  %5018 = vmatpush1.msk.msra.mxu0 %vm1719_vm4, %v1713_v16 }
 0x282   :  { %5020 = vmatprep.subr.msk.mxu0 %vm1719_vm4, %v1714_v13  ;;  %v1871_v13 = vlaneseq }
 0x284   :  { %6156 = vmatpush1.bf16.msra.mxu1 %v7385_v19  ;;  %v1933_v19 = vld [vmem:[%s8871_s8] sm:$0xff] }
 0x285   :  { %6157 = vmatprep.subr.bf16.mxu1 %v6695_v3 }
 0x288   :  { %6159 = vmatpush1.bf16.msra.mxu1 %v7395_v22  ;;  %v1934_v22 = vld [vmem:[%s8871_s8 + $0x8] sm:$0xff] }
 0x289   :  { %1673 = vmatprep.subr.mxu1 %v6697_v6  ;;  %v6161_v11 = vpack.c.bf16 %v1934_v22, %v1933_v19 }
 0x28c   :  { %1674 = vmatpush1.msra.mxu1 %v7402_v23  ;;  %v1935_v23 = vld [vmem:[%s8871_s8 + $0x10] sm:$0xff] }
 0x28d   :  { %1698 = vmatmul.mubr.f32.vlgmr.msra.gmra.mrb[58].mxu1 %v1610_v10  ;;  %6160 = vmatprep.subr.bf16.mxu1 %v6695_v3  ;;  %v6164_v15 = vpack.c.bf16 %v1936_v12, %v1935_v23  ;;  %v1953_v10 = vld [vmem:[%s8871_s8 + $0xa0] sm:$0xff] }
 0x28e   :  { %6162 = vmatpush1.bf16.msra.mxu1 %v6161_v11 }
 0x28f   :  { %6163 = vmatprep.subr.bf16.mxu1 %v6695_v3 }
 0x292   :  { %6165 = vmatpush1.bf16.msra.mxu1 %v6164_v15 }
 0x293   :  { %6166 = vmatprep.subr.bf16.mxu1 %v6695_v3 }
 0x296   :  { %6168 = vmatpush1.bf16.msra.mxu1 %v6167_v21 }
 0x297   :  { %6169 = vmatprep.subr.bf16.mxu1 %v6695_v3 }
 0x29a   :  { %6171 = vmatpush1.bf16.msra.mxu1 %v6170_v29 }
 0x29b   :  { %6172 = vmatprep.subr.bf16.mxu1 %v6695_v3 }
 0x29e   :  { %6174 = vmatpush1.bf16.msra.mxu1 %v6173_v34 }
 0x29f   :  { %6175 = vmatprep.subr.bf16.mxu1 %v6695_v3 }
 0x2a2   :  { %6177 = vmatpush1.bf16.msra.mxu1 %v6176_v38 }
 0x2a3   :  { %6178 = vmatprep.subr.bf16.mxu1 %v6695_v3 }
 0x2a6   :  { %6180 = vmatpush1.bf16.msra.mxu1 %v6179_v42 }
 0x2a7   :  { %6181 = vmatprep.subr.bf16.mxu1 %v6695_v3 }
 0x2aa   :  { %6183 = vmatpush1.bf16.msra.mxu1 %v6182_v8 }
 0x2ab   :  { %6184 = vmatprep.subr.bf16.mxu1 %v6695_v3 }
 0x2ae   :  { %6186 = vmatpush1.bf16.msra.mxu1 %v6185_v60 }
 0x2af   :  { %6187 = vmatprep.subr.bf16.mxu1 %v6695_v3 }
 0x2b2   :  { %6189 = vmatpush1.bf16.msra.mxu1 %v6188_v7 }
 0x2b3   :  { %2015 = vmatprep.subr.mxu1 %v6697_v6 }
 0x2b6   :  { %2016 = vmatpush1.msra.mxu1 %v1953_v10 }
 0x2b7   :  { %6256 = vmatprep.subr.bf16.mxu1 %v6695_v3 }
 0x336   :  { %v1580_v44 = vpop.f32.mrb[56].mxu1 }
 0x337   :  { %v1582_v45 = vpop.f32.mrb[57].mxu1  ;;  %v1584_v46 = vmul.f32 0.0006377551, %v1580_v44 }
 0x339   :  { %v1704_v48 = vmul.f32 %v1584_v46, %v1584_v46 }
 0x360   :  { %v1699_v47 = vpop.f32.mrb[58].mxu1 }
 0x361   :  { %v1703_v50 = vmul.f32 0.0006377551, %v1699_v47  ;;  %v1701_v51 = vpop.f32.mrb[59].mxu1 }
 0x363   :  { %v1705_v52 = vsub.f32 %v1703_v50, %v1704_v48 }
 0x365   :  { %v1707_v54 = vadd.f32 1e-05, %v1705_v52 }
 0x367   :  { %6667 = vrsqrt.f32 %v1707_v54 }
 0x371   :  { %v6668_v56 = vpop.eup %6667 }
 0x372   :  { %v1709_v58 = vmul.f32 %v6668_v56, %v1706_v55 }
 0x374   :  { %5019 = vmatmul.mubr.msk.f32.vlgmr.msra.gmra.mrb[28].mxu0 %vm1715_vm5, %v1709_v58  ;;  %v1711_v62 = vmul.f32 %v1709_v58, %v1584_v46 }
 0x375   :  { %5021 = vmatpush1.msk.msra.mxu0 %vm1719_vm4, %v1713_v16  ;;  %1864 = vmatprep.mubr.f32.mxu0 %v6697_v6  ;;  %v1872_v16 = vshrl.u32 %v1871_v13, 7 }
 0x376   :  { %v1712_v0 = vsub.f32 %v1710_v59, %v1711_v62 }
 0x377   :  { %v7605_v19 = vsub.s32 0, %v1872_v16 }
 0x378   :  { %5022 = vmatmul.mubr.msk.f32.vlgmr.msra.gmra.mrb[30].mxu0 %vm1715_vm5, %v1712_v0 }
 0x379   :  { %5680 = vmatprep.mubr.msk.f32.mxu0 %vm2075_vm6, %v1929_v5  ;;  %v5058_v5 = vld [vmem:[%s8835_s10 + $0x118] sm:$0xff] }
 0x447   :  { %v1792_v22 = vpop.f32.mrb[28].mxu0 }
 0x448   :  { %v1874_v23 = vrot.slane %v1792_v22, %v7605_v19  ;;  %v1794_v11 = vpop.f32.mrb[29].mxu0 }
 0x449   :  { %v1878_v12 = vrot.slane %v1794_v11, %v7605_v19 }
 0x44a   :  { %v1879_v15 = vmul.f32 %v1874_v23, %v7406_v24  ;;  %v1881_v17 = vmul.f32 %v1874_v23, %v7412_v27  ;;  %v1883_v18 = vmul.f32 %v1874_v23, %v7430_v39  ;;  %v1885_v21 = vmul.f32 %v1874_v23, %v7442_v49 }
 0x44b   :  { %v1866_v26 = vpop.f32.mrb[30].mxu0  ;;  %v1880_v28 = vmul.f32 %v1878_v12, %v7408_v25  ;;  %v1882_v29 = vmul.f32 %v1878_v12, %v7420_v31  ;;  %v1884_v30 = vmul.f32 %v1878_v12, %v7435_v43  ;;  %v1886_v33 = vmul.f32 %v1878_v12, %v7447_v53 }
 0x44c   :  { %v1896_v34 = vrot.slane %v1866_v26, %v7605_v19  ;;  %v1868_v35 = vpop.f32.mrb[31].mxu0  ;;  %v1888_v24 = vmul.f32 %v1878_v12, %v7459_v4  ;;  %v1887_v27 = vmul.f32 %v1874_v23, %v7454_v61  ;;  %v1890_v39 = vmul.f32 %v1878_v12, %v7471_v20  ;;  %v1931_v26 = vld [vmem:[%s8874_s6 + $0x10] sm:$0xff] }
 0x44d   :  { %v1900_v49 = vrot.slane %v1868_v35, %v7605_v19  ;;  %v1889_v37 = vmul.f32 %v1874_v23, %v7466_v14  ;;  %v1892_v25 = vmul.f32 %v1878_v12, %v7483_v36  ;;  %v1891_v31 = vmul.f32 %v1874_v23, %v7478_v32 }
 0x44e   :  { %v1901_v43 = vadd.f32 %v1896_v34, %v1879_v15  ;;  %v1903_v38 = vadd.f32 %v1896_v34, %v1881_v17  ;;  %v1905_v53 = vadd.f32 %v1896_v34, %v1883_v18  ;;  %v1907_v40 = vadd.f32 %v1896_v34, %v1885_v21  ;;  %v1930_v21 = vld [vmem:[%s8874_s6 + $0x8] sm:$0xff] }
 0x44f   :  { %v1902_v41 = vadd.f32 %v1900_v49, %v1880_v28  ;;  %v1904_v42 = vadd.f32 %v1900_v49, %v1882_v29  ;;  %v1906_v44 = vadd.f32 %v1900_v49, %v1884_v30  ;;  %v1908_v4 = vadd.f32 %v1900_v49, %v1886_v33  ;;  %v1932_v28 = vld [vmem:[%s8874_s6 + $0x18] sm:$0xf] }
 0x450   :  { %v1915_v61 = vmax.f32 %v1901_v43, 0.0  ;;  %v1910_v46 = vadd.f32 %v1900_v49, %v1888_v24  ;;  %v1909_v20 = vadd.f32 %v1896_v34, %v1887_v27  ;;  %v1912_v47 = vadd.f32 %v1900_v49, %v1890_v39  ;;  %v2173_v39 = vld [vmem:[%s8834_s9] sm:$0xff]  ;;  %v5078_v43 = vld [vmem:[%s8834_s9 + $0x38] sm:$0xff]  ;;  %v3292_v24 = vld [vmem:[%s8836_s11 + $0x30] sm:$0xff] }
 0x451   :  { %v1916_v45 = vmax.f32 %v1902_v41, 0.0  ;;  %v1911_v48 = vadd.f32 %v1896_v34, %v1889_v37  ;;  %v1918_v14 = vmax.f32 %v1904_v42, 0.0  ;;  %v1914_v36 = vadd.f32 %v1900_v49, %v1892_v25  ;;  %v5077_v49 = vld [vmem:[%s8834_s9 + $0x30] sm:$0xff]  ;;  %v5046_v37 = vld [vmem:[%s8835_s10 + $0xb8] sm:$0xff]  ;;  %v5048_v25 = vld [vmem:[%s8835_s10 + $0xc8] sm:$0xff] }
 0x452   :  { %v1913_v50 = vadd.f32 %v1896_v34, %v1891_v31  ;;  %v1917_v32 = vmax.f32 %v1903_v38, 0.0  ;;  %v1920_v51 = vmax.f32 %v1906_v44, 0.0  ;;  %v1919_v52 = vmax.f32 %v1905_v53, 0.0  ;;  %v2174_v31 = vld [vmem:[%s8834_s9 + $0x8] sm:$0xff]  ;;  %v2175_v53 = vld [vmem:[%s8834_s9 + $0x10] sm:$0xf] }
 0x453   :  { %5023 = vmatprep.mubr.msk.f32.mxu1 %vm1470_vm3, %v1916_v45  ;;  %v1922_v54 = vmax.f32 %v1908_v4, 0.0  ;;  %v1921_v55 = vmax.f32 %v1907_v40, 0.0  ;;  %v1924_v56 = vmax.f32 %v1910_v46, 0.0  ;;  %v1923_v58 = vmax.f32 %v1909_v20, 0.0  ;;  %v5079_v40 = vld [vmem:[%s8834_s9 + $0x40] sm:$0xf] }
 0x454   :  { %2040 = vmatmul.mubr.f32.vlgmr.msra.gmra.mrb[60].mxu1 %v1915_v61  ;;  %v1926_v59 = vmax.f32 %v1912_v47, 0.0  ;;  %v1925_v62 = vmax.f32 %v1911_v48, 0.0  ;;  %v1928_v0 = vmax.f32 %v1914_v36, 0.0  ;;  %v1927_v1 = vmax.f32 %v1913_v50, 0.0  ;;  %v5045_v41 = vld [vmem:[%s8835_s10 + $0xb0] sm:$0xff]  ;;  %v5047_v42 = vld [vmem:[%s8835_s10 + $0xc0] sm:$0xff] }
 0x455   :  { %5024 = vmatprep.mubr.msk.f32.mxu1 %vm1470_vm3, %v1918_v14  ;;  %v6216_v38 = vpack.c.bf16 %v5048_v25, %v5046_v37  ;;  %v5038_v44 = vld [vmem:[%s8834_s9 + $0x18] sm:$0xff]  ;;  %v5111_v4 = vld [vmem:[%s8834_s9 + $0x48] sm:$0xff]  ;;  %v6218_v45 = vpack.c.bf16 %v5047_v42, %v5045_v41  ;;  %v5049_v20 = vld [vmem:[%s8835_s10 + $0xd0] sm:$0xff] }
 0x456   :  { %v5050_v61 = vld [vmem:[%s8835_s10 + $0xd8] sm:$0xff]  ;;  %v5052_v46 = vld [vmem:[%s8835_s10 + $0xe8] sm:$0xff]  ;;  %v5051_v47 = vld [vmem:[%s8835_s10 + $0xe0] sm:$0xff] }
 0x457   :  { %v5039_v48 = vld [vmem:[%s8834_s9 + $0x20] sm:$0xff]  ;;  %v5112_v14 = vld [vmem:[%s8834_s9 + $0x50] sm:$0xff]  ;;  %v6220_v36 = vpack.c.bf16 %v5052_v46, %v5050_v61  ;;  %v5054_v50 = vld [vmem:[%s8835_s10 + $0xf8] sm:$0xff] }
 0x458   :  { %2045 = vmatmul.mubr.f32.gmra.mrb[62].mxu1 %v1917_v32  ;;  %v5056_v32 = vld [vmem:[%s8835_s10 + $0x108] sm:$0xff]  ;;  %v2270_v41 = vld [vmem:[%s8835_s10] sm:$0xff]  ;;  %v2272_v42 = vld [vmem:[%s8835_s10 + $0x10] sm:$0xff] }
 0x459   :  { %5025 = vmatprep.mubr.msk.f32.mxu1 %vm1470_vm3, %v1920_v51  ;;  %v6222_v51 = vpack.c.bf16 %v5051_v47, %v5049_v20  ;;  %v6238_v47 = vpack.c.bf16 %v2272_v42, %v2270_v41  ;;  %v5091_v41 = vld [vmem:[%s8835_s10 + $0x198] sm:$0xff]  ;;  %v2290_v42 = vld [vmem:[%s8835_s10 + $0xa0] sm:$0xf] }
 0x45c   :  { %2050 = vmatmul.mubr.f32.gmra.mrb[64].mxu1 %v1919_v52  ;;  %v5053_v52 = vld [vmem:[%s8835_s10 + $0xf0] sm:$0xff] }
 0x45d   :  { %5026 = vmatprep.mubr.msk.f32.mxu1 %vm1470_vm3, %v1922_v54  ;;  %v5055_v54 = vld [vmem:[%s8835_s10 + $0x100] sm:$0xff] }
 0x460   :  { %2055 = vmatmul.mubr.f32.gmra.mrb[66].mxu1 %v1921_v55  ;;  %v5040_v55 = vld [vmem:[%s8834_s9 + $0x28] sm:$0xf] }
 0x461   :  { %5027 = vmatprep.mubr.msk.f32.mxu1 %vm1470_vm3, %v1924_v56  ;;  %v5113_v56 = vld [vmem:[%s8834_s9 + $0x58] sm:$0xf] }
 0x464   :  { %2060 = vmatmul.mubr.f32.gmra.mrb[68].mxu1 %v1923_v58  ;;  %v6224_v58 = vpack.c.bf16 %v5056_v32, %v5054_v50  ;;  %v2279_v32 = vld [vmem:[%s8835_s10 + $0x48] sm:$0xff] }
 0x465   :  { %5028 = vmatprep.mubr.msk.f32.mxu1 %vm1470_vm3, %v1926_v59  ;;  %v6226_v59 = vpack.c.bf16 %v5055_v54, %v5053_v52 }
 0x468   :  { %2065 = vmatmul.mubr.f32.gmra.mrb[70].mxu1 %v1925_v62  ;;  %v5145_v62 = vld [vmem:[%s8834_s9 + $0x60] sm:$0xff] }
 0x469   :  { %5029 = vmatprep.mubr.msk.f32.mxu1 %vm1470_vm3, %v1928_v0  ;;  %v5146_v0 = vld [vmem:[%s8834_s9 + $0x68] sm:$0xff]  ;;  %vm4047_vm3 = vcmask 654336  }
 0x46c   :  { %2070 = vmatmul.mubr.f32.gmra.mrb[72].mxu1 %v1927_v1  ;;  %v5147_v1 = vld [vmem:[%s8834_s9 + $0x70] sm:$0xf] }
 0x46d   :  { %5728 = vmatprep.mubr.msk.f32.mxu1 %vm6696_vm0, %v6697_v6 }
 0x527   :  { %v2041_v8 = vpop.f32.mrb[60].mxu1 }
 0x528   :  { %v2043_v9 = vpop.f32.mrb[61].mxu1 }
 0x529   :  { %v5057_v9 = vld [vmem:[%s8835_s10 + $0x110] sm:$0xff] }
 0x52b   :  { %v2046_v57 = vpop.f32.mrb[62].mxu1 }
 0x52c   :  { %v6190_v60 = vpack.c.bf16 %v2046_v57, %v2041_v8  ;;  %v2048_v63 = vpop.f32.mrb[63].mxu1  ;;  %v5060_v8 = vld [vmem:[%s8835_s10 + $0x128] sm:$0xff] }
 0x52d   :  { %v6228_v57 = vpack.c.bf16 %v5060_v8, %v5058_v5 }
 0x52e   :  { %6191 = vmatprep.subr.bf16.mxu0 %v6190_v60 }
 0x52f   :  { %v2051_v2 = vpop.f32.mrb[64].mxu1  ;;  %6193 = vmatpush3.bf16.msra.mxu0 %v6190_v60  ;;  %v5059_v60 = vld [vmem:[%s8835_s10 + $0x120] sm:$0xff] }
 0x530   :  { %v2053_v7 = vpop.f32.mrb[65].mxu1  ;;  %v6230_v63 = vpack.c.bf16 %v5059_v60, %v5057_v9 }
 0x531   :  { %v5064_v7 = vld [vmem:[%s8835_s10 + $0x148] sm:$0xff] }
 0x533   :  { %v2056_v10 = vpop.f32.mrb[66].mxu1 }
 0x534   :  { %v6194_v13 = vpack.c.bf16 %v2056_v10, %v2051_v2  ;;  %v2058_v16 = vpop.f32.mrb[67].mxu1  ;;  %v5062_v2 = vld [vmem:[%s8835_s10 + $0x138] sm:$0xff]  ;;  %v5061_v10 = vld [vmem:[%s8835_s10 + $0x130] sm:$0xff] }
 0x535   :  { %v5063_v16 = vld [vmem:[%s8835_s10 + $0x140] sm:$0xff] }
 0x536   :  { %6195 = vmatprep.subr.bf16.mxu0 %v6194_v13 }
 0x537   :  { %v2061_v22 = vpop.f32.mrb[68].mxu1  ;;  %6197 = vmatpush3.bf16.msra.mxu0 %v6194_v13  ;;  %v6232_v13 = vpack.c.bf16 %v5064_v7, %v5062_v2  ;;  %v2282_v2 = vld [vmem:[%s8835_s10 + $0x60] sm:$0xff]  ;;  %v2284_v7 = vld [vmem:[%s8835_s10 + $0x70] sm:$0xff] }
 0x538   :  { %v2063_v23 = vpop.f32.mrb[69].mxu1 }
 0x539   :  { %v5066_v23 = vld [vmem:[%s8835_s10 + $0x158] sm:$0xf] }
 0x53b   :  { %v2066_v11 = vpop.f32.mrb[70].mxu1 }
 0x53c   :  { %v6198_v12 = vpack.c.bf16 %v2066_v11, %v2061_v22  ;;  %v2068_v15 = vpop.f32.mrb[71].mxu1  ;;  %v6234_v22 = vpack.c.bf16 %v5063_v16, %v5061_v10  ;;  %v5065_v11 = vld [vmem:[%s8835_s10 + $0x150] sm:$0xf]  ;;  %v2287_v10 = vld [vmem:[%s8835_s10 + $0x88] sm:$0xff] }
 0x53d   :  { %v2273_v15 = vld [vmem:[%s8835_s10 + $0x18] sm:$0xff] }
 0x53e   :  { %6199 = vmatprep.subr.bf16.mxu0 %v6198_v12 }
 0x53f   :  { %v2071_v17 = vpop.f32.mrb[72].mxu1  ;;  %6201 = vmatpush3.bf16.msra.mxu0 %v6198_v12  ;;  %v2271_v12 = vld [vmem:[%s8835_s10 + $0x8] sm:$0xff] }
 0x540   :  { %v2073_v18 = vpop.f32.mrb[73].mxu1  ;;  %5678 = vmatprep.subr.mxu0 %v2071_v17 }
 0x541   :  { %v3286_v18 = vld [vmem:[%s8836_s11] sm:$0xff] }
 0x543   :  { %5679 = vmatpush3.msra.mxu0 %v2071_v17  ;;  %v6236_v17 = vpack.c.bf16 %v2273_v15, %v2271_v12  ;;  %v6250_v12 = vpack.c.bf16 %v2284_v7, %v2282_v2  ;;  %v5119_v2 = vld [vmem:[%s8835_s10 + $0x218] sm:$0xff]  ;;  %v5121_v7 = vld [vmem:[%s8835_s10 + $0x228] sm:$0xff] }
 0x544   :  { %5681 = vmatmul.mubr.msk.f32.vlgmr.msra.gmra.mrb[32].mxu0 %vm2075_vm6, %v1930_v21  ;;  %6202 = vmatprep.subr.bf16.mxu0 %v6695_v3  ;;  %v3287_v21 = vld [vmem:[%s8836_s11 + $0x8] sm:$0xff] }
 0x545   :  { %5683 = vmatprep.mubr.msk.f32.mxu0 %vm2075_vm6, %v1931_v26  ;;  %v3288_v26 = vld [vmem:[%s8836_s11 + $0x10] sm:$0xff] }
 0x548   :  { %5684 = vmatmul.mubr.msk.f32.gmra.mrb[34].mxu0 %vm2075_vm6, %v1932_v28  ;;  %v7848_v28 = vpack.c.bf16 %v3287_v21, %v3286_v18  ;;  %v2288_v18 = vld [vmem:[%s8835_s10 + $0x90] sm:$0xff] }
 0x549   :  { %5694 = vmatprep.mubr.msk.f32.mxu0 %vm6696_vm0, %v6697_v6 }
 0x617   :  { %v5682_v29 = vpop.f32.mrb[32].mxu0 }
 0x618   :  { %v2154_v30 = vpop.f32.mrb[33].mxu0 }
 0x619   :  { %v6203_v33 = vpack.c.bf16 %v5682_v29, %v2154_v30  ;;  %v3289_v29 = vld [vmem:[%s8836_s11 + $0x18] sm:$0xff] }
 0x61a   :  { %v7854_v30 = vpack.c.bf16 %v3289_v29, %v3288_v26 }
 0x61b   :  { %v5685_v34 = vpop.f32.mrb[34].mxu0  ;;  %6204 = vmatpush3.bf16.msra.mxu0 %v6203_v33  ;;  %6258 = vmatpush3.bf16.msra.mxu1 %v6203_v33 }
 0x61c   :  { %v2164_v35 = vpop.f32.mrb[35].mxu0  ;;  %6205 = vmatprep.subr.bf16.mxu0 %v6695_v3  ;;  %6259 = vmatprep.subr.bf16.mxu1 %v6695_v3 }
 0x61d   :  { %v6206_v27 = vpack.c.bf16 %v5685_v34, %v2164_v35  ;;  %v3291_v34 = vld [vmem:[%s8836_s11 + $0x28] sm:$0xff] }
 0x61f   :  { %6208 = vmatpush3.bf16.msk.msra.mxu0 %vm7657_vm9, %v6206_v27  ;;  %6262 = vmatpush3.bf16.msk.msra.mxu1 %vm7657_vm9, %v6206_v27 }
 0x620   :  { %6209 = vmatprep.subr.bf16.mxu0 %v6695_v3  ;;  %6283 = vmatprep.subr.bf16.mxu1 %v6695_v3 }
 0x622   :  { %5695 = vmatmul.mubr.msk.f32.vlgmr.msra.gmra.mrb[36].mxu0 %vm2176_vm10, %v2173_v39  ;;  %5729 = vmatmul.mubr.msk.f32.vlgmr.msra.gmra.mrb[74].mxu1 %vm2176_vm10, %v5077_v49 }
 0x623   :  { %6211 = vmatpush3.bf16.msra.mxu0 %v6203_v33  ;;  %6285 = vmatpush3.bf16.msra.mxu1 %v6203_v33 }
 0x624   :  { %5697 = vmatprep.mubr.msk.f32.mxu0 %vm6696_vm0, %v6697_v6  ;;  %5731 = vmatprep.mubr.msk.f32.mxu1 %vm6696_vm0, %v6697_v6 }
 0x625   :  { %6212 = vmatprep.subr.bf16.mxu0 %v6695_v3  ;;  %6286 = vmatprep.subr.bf16.mxu1 %v6695_v3 }
 0x626   :  { %5698 = vmatmul.mubr.msk.f32.gmra.mrb[38].mxu0 %vm2176_vm10, %v2174_v31  ;;  %5732 = vmatmul.mubr.msk.f32.gmra.mrb[76].mxu1 %vm2176_vm10, %v5078_v43 }
 0x627   :  { %6215 = vmatpush3.bf16.msk.msra.mxu0 %vm7657_vm9, %v6206_v27  ;;  %6289 = vmatpush3.bf16.msk.msra.mxu1 %vm7657_vm9, %v6206_v27 }
 0x628   :  { %5700 = vmatprep.mubr.msk.f32.mxu0 %vm6696_vm0, %v6697_v6  ;;  %5734 = vmatprep.mubr.msk.f32.mxu1 %vm6696_vm0, %v6697_v6 }
 0x629   :  { %6310 = vmatprep.subr.bf16.mxu1 %v6695_v3  ;;  %6217 = vmatprep.subr.bf16.mxu0 %v6216_v38 }
 0x62a   :  { %5701 = vmatmul.mubr.msk.f32.gmra.mrb[40].mxu0 %vm2176_vm10, %v2175_v53  ;;  %5735 = vmatmul.mubr.msk.f32.gmra.mrb[78].mxu1 %vm2176_vm10, %v5079_v40 }
 0x62b   :  { %5711 = vmatprep.mubr.msk.f32.mxu0 %vm6696_vm0, %v6697_v6  ;;  %5745 = vmatprep.mubr.msk.f32.mxu1 %vm6696_vm0, %v6697_v6 }
 0x62e   :  { %5712 = vmatmul.mubr.msk.f32.vlgmr.msra.gmra.mrb[42].mxu0 %vm2176_vm10, %v5038_v44  ;;  %5746 = vmatmul.mubr.msk.f32.vlgmr.msra.gmra.mrb[80].mxu1 %vm2176_vm10, %v5111_v4  ;;  %v2275_v4 = vld [vmem:[%s8835_s10 + $0x28] sm:$0xff] }
 0x62f   :  { %6312 = vmatpush3.bf16.msra.mxu1 %v6203_v33  ;;  %5714 = vmatprep.mubr.msk.f32.mxu0 %vm6696_vm0, %v6697_v6  ;;  %v3290_v33 = vld [vmem:[%s8836_s11 + $0x20] sm:$0xff] }
 0x630   :  { %6313 = vmatprep.subr.bf16.mxu1 %v6695_v3  ;;  %5748 = vmatprep.mubr.msk.f32.mxu1 %vm6696_vm0, %v6697_v6  ;;  %v7864_v35 = vpack.c.bf16 %v3291_v34, %v3290_v33  ;;  %v2291_v33 = vld [vmem:[%s8835_s10 + $0xa8] sm:$0xf] }
 0x631   :  { %6219 = vmatpush1.bf16.msra.mxu0 %v6218_v45  ;;  %v2277_v45 = vld [vmem:[%s8835_s10 + $0x38] sm:$0xff]  ;;  %v5085_v34 = vld [vmem:[%s8835_s10 + $0x168] sm:$0xff] }
 0x632   :  { %5715 = vmatmul.mubr.msk.f32.gmra.mrb[44].mxu0 %vm2176_vm10, %v5039_v48  ;;  %5749 = vmatmul.mubr.msk.f32.gmra.mrb[82].mxu1 %vm2176_vm10, %v5112_v14  ;;  %v6240_v48 = vpack.c.bf16 %v2277_v45, %v2275_v4  ;;  %v2274_v14 = vld [vmem:[%s8835_s10 + $0x20] sm:$0xff] }
 0x633   :  { %6316 = vmatpush3.bf16.msk.msra.mxu1 %vm7657_vm9, %v6206_v27  ;;  %5717 = vmatprep.mubr.msk.f32.mxu0 %vm6696_vm0, %v6697_v6  ;;  %v3293_v27 = vld [vmem:[%s8836_s11 + $0x38] sm:$0xff] }
 0x634   :  { %5751 = vmatprep.mubr.msk.f32.mxu1 %vm6696_vm0, %v6697_v6  ;;  %6221 = vmatprep.subr.bf16.mxu0 %v6220_v36  ;;  %v7874_v39 = vpack.c.bf16 %v3293_v27, %v3292_v24  ;;  %v2276_v36 = vld [vmem:[%s8835_s10 + $0x30] sm:$0xff]  ;;  %v5087_v24 = vld [vmem:[%s8835_s10 + $0x178] sm:$0xff] }
 0x635   :  { %6223 = vmatpush1.bf16.msra.mxu0 %v6222_v51  ;;  %6337 = vmatprep.subr.bf16.mxu1 %v6695_v3  ;;  %v2281_v51 = vld [vmem:[%s8835_s10 + $0x58] sm:$0xff]  ;;  %v6263_v4 = vpack.c.bf16 %v5087_v24, %v5085_v34 }
 0x636   :  { %5718 = vmatmul.mubr.msk.f32.gmra.mrb[46].mxu0 %vm2176_vm10, %v5040_v55  ;;  %5752 = vmatmul.mubr.msk.f32.gmra.mrb[84].mxu1 %vm2176_vm10, %v5113_v56  ;;  %v6242_v56 = vpack.c.bf16 %v2276_v36, %v2274_v14  ;;  %v5093_v36 = vld [vmem:[%s8835_s10 + $0x1a8] sm:$0xff] }
 0x637   :  { %5762 = vmatprep.mubr.msk.f32.mxu1 %vm6696_vm0, %v6697_v6  ;;  %6225 = vmatprep.subr.bf16.mxu0 %v6224_v58  ;;  %v6244_v58 = vpack.c.bf16 %v2281_v51, %v2279_v32 }
 0x638   :  { %2488 = vmatprep.mubr.f32.mxu0 %v6697_v6 }
 0x639   :  { %6227 = vmatpush1.bf16.msra.mxu0 %v6226_v59  ;;  %v2278_v59 = vld [vmem:[%s8835_s10 + $0x40] sm:$0xff] }
 0x63a   :  { %5763 = vmatmul.mubr.msk.f32.vlgmr.msra.gmra.mrb[86].mxu1 %vm2176_vm10, %v5145_v62  ;;  %6229 = vmatprep.subr.bf16.mxu0 %v6228_v57  ;;  %v2280_v62 = vld [vmem:[%s8835_s10 + $0x50] sm:$0xff] }
 0x63b   :  { %5765 = vmatprep.mubr.msk.f32.mxu1 %vm6696_vm0, %v6697_v6  ;;  %6339 = vmatpush1.bf16.msra.mxu1 %v7848_v28  ;;  %v6246_v60 = vpack.c.bf16 %v2280_v62, %v2278_v59  ;;  %v5096_v62 = vld [vmem:[%s8835_s10 + $0x1c0] sm:$0xff] }
 0x63c   :  { %6340 = vmatprep.subr.bf16.mxu1 %v6695_v3 }
 0x63d   :  { %6231 = vmatpush1.bf16.msra.mxu0 %v6230_v63 }
 0x63e   :  { %5766 = vmatmul.mubr.msk.f32.gmra.mrb[88].mxu1 %vm2176_vm10, %v5146_v0  ;;  %6233 = vmatprep.subr.bf16.mxu0 %v6232_v13  ;;  %v2283_v0 = vld [vmem:[%s8835_s10 + $0x68] sm:$0xff]  ;;  %v2289_v13 = vld [vmem:[%s8835_s10 + $0x98] sm:$0xff] }
 0x63f   :  { %5768 = vmatprep.mubr.msk.f32.mxu1 %vm6696_vm0, %v6697_v6  ;;  %6342 = vmatpush1.bf16.msra.mxu1 %v7854_v30  ;;  %v6252_v15 = vpack.c.bf16 %v2289_v13, %v2287_v10  ;;  %v5118_v10 = vld [vmem:[%s8835_s10 + $0x210] sm:$0xff]  ;;  %v5120_v13 = vld [vmem:[%s8835_s10 + $0x220] sm:$0xff] }
 0x640   :  { %6343 = vmatprep.subr.bf16.mxu1 %v6695_v3 }
 0x641   :  { %6235 = vmatpush1.bf16.msra.mxu0 %v6234_v22 }
 0x642   :  { %5769 = vmatmul.mubr.msk.f32.gmra.mrb[90].mxu1 %vm2176_vm10, %v5147_v1  ;;  %5067 = vmatprep.subr.msk.mxu0 %vm2186_vm7, %v5066_v23  ;;  %v2285_v1 = vld [vmem:[%s8835_s10 + $0x78] sm:$0xff] }
 0x643   :  { %6345 = vmatpush1.bf16.msra.mxu1 %v7864_v35  ;;  %v6248_v63 = vpack.c.bf16 %v2285_v1, %v2283_v0  ;;  %v5098_v0 = vld [vmem:[%s8835_s10 + $0x1d0] sm:$0xff]  ;;  %v5101_v1 = vld [vmem:[%s8835_s10 + $0x1e8] sm:$0xff] }
 0x644   :  { %6346 = vmatprep.subr.bf16.mxu1 %v6695_v3 }
 0x645   :  { %5068 = vmatpush1.msk.msra.mxu0 %vm2186_vm7, %v5065_v11 }
 0x646   :  { %6237 = vmatprep.subr.bf16.mxu0 %v6236_v17  ;;  %v2286_v17 = vld [vmem:[%s8835_s10 + $0x80] sm:$0xff] }
 0x647   :  { %6348 = vmatpush1.bf16.msra.mxu1 %v7874_v39  ;;  %v6254_v29 = vpack.c.bf16 %v2288_v18, %v2286_v17  ;;  %v5122_v18 = vld [vmem:[%s8835_s10 + $0x230] sm:$0xff] }
 0x648   :  { %6349 = vmatprep.subr.bf16.mxu1 %v6695_v3 }
 0x6f5   :  { %v7879_v49 = vpop.f32.mrb[36].mxu0  ;;  %v7881_v37 = vpop.f32.mrb[74].mxu1 }
 0x6f6   :  { %v5696_v25 = vpop.f32.mrb[37].mxu0  ;;  %v5730_v31 = vpop.f32.mrb[75].mxu1 }
 0x6f7   :  { %v5084_v25 = vld [vmem:[%s8835_s10 + $0x160] sm:$0xff]  ;;  %v5086_v31 = vld [vmem:[%s8835_s10 + $0x170] sm:$0xff] }
 0x6f8   :  { %v6265_v45 = vpack.c.bf16 %v5086_v31, %v5084_v25  ;;  %v5126_v25 = vld [vmem:[%s8835_s10 + $0x250] sm:$0xff]  ;;  %v5128_v31 = vld [vmem:[%s8835_s10 + $0x260] sm:$0xff] }
 0x6f9   :  { %v7883_v43 = vpop.f32.mrb[38].mxu0  ;;  %v7885_v38 = vpop.f32.mrb[76].mxu1 }
 0x6fa   :  { %v5699_v53 = vpop.f32.mrb[39].mxu0  ;;  %v5733_v40 = vpop.f32.mrb[77].mxu1 }
 0x6fb   :  { %v5089_v40 = vld [vmem:[%s8835_s10 + $0x188] sm:$0xff] }
 0x6fd   :  { %v7893_v44 = vpop.f32.mrb[40].mxu0  ;;  %v7901_v61 = vpop.f32.mrb[78].mxu1 }
 0x6fe   :  { %v5702_v46 = vpop.f32.mrb[41].mxu0  ;;  %v5736_v20 = vpop.f32.mrb[79].mxu1 }
 0x6ff   :  { %v6267_v20 = vpack.c.bf16 %v5091_v41, %v5089_v40  ;;  %v6300_v40 = vpack.c.bf16 %v5128_v31, %v5126_v25  ;;  %v3300_v31 = vld [vmem:[%s8836_s11 + $0x70] sm:$0xff] }
 0x701   :  { %v2371_v50 = vpop.f32.mrb[42].mxu0  ;;  %v7915_v52 = vpop.f32.mrb[80].mxu1 }
 0x702   :  { %v5713_v54 = vpop.f32.mrb[43].mxu0  ;;  %5069 = vmatmul.mubr.msk.f32.vlgmr.msra.gmra.mrb[48].mxu0 %vm2408_vm11, %v2371_v50  ;;  %v5747_v55 = vpop.f32.mrb[81].mxu1  ;;  %v5095_v50 = vld [vmem:[%s8835_s10 + $0x1b8] sm:$0xff] }
 0x703   :  { %6239 = vmatpush1.bf16.msra.mxu0 %v6238_v47  ;;  %2494 = vmatprep.mubr.f32.mxu0 %v6697_v6  ;;  %v5088_v47 = vld [vmem:[%s8835_s10 + $0x180] sm:$0xff]  ;;  %v6271_v51 = vpack.c.bf16 %v5095_v50, %v5093_v36  ;;  %v5094_v55 = vld [vmem:[%s8835_s10 + $0x1b0] sm:$0xff]  ;;  %v5153_v50 = vld [vmem:[%s8835_s10 + $0x2c8] sm:$0xff] }
 0x704   :  { %6241 = vmatprep.subr.bf16.mxu0 %v6240_v48  ;;  %v5090_v48 = vld [vmem:[%s8835_s10 + $0x190] sm:$0xff]  ;;  %v5092_v54 = vld [vmem:[%s8835_s10 + $0x1a0] sm:$0xff] }
 0x705   :  { %v2376_v5 = vpop.f32.mrb[44].mxu0  ;;  %v7931_v8 = vpop.f32.mrb[82].mxu1  ;;  %v6269_v32 = vpack.c.bf16 %v5090_v48, %v5088_v47  ;;  %v5134_v48 = vld [vmem:[%s8835_s10 + $0x290] sm:$0xff] }
 0x706   :  { %v5716_v9 = vpop.f32.mrb[45].mxu0  ;;  %5070 = vmatmul.mubr.msk.f32.gmra.mrb[50].mxu0 %vm2408_vm11, %v2376_v5  ;;  %v5750_v57 = vpop.f32.mrb[83].mxu1  ;;  %v6277_v5 = vpack.c.bf16 %v5098_v0, %v5096_v62  ;;  %v5156_v0 = vld [vmem:[%s8835_s10 + $0x2e0] sm:$0xff] }
 0x707   :  { %6243 = vmatpush1.bf16.msra.mxu0 %v6242_v56  ;;  %2500 = vmatprep.mubr.f32.mxu0 %v6697_v6  ;;  %v5097_v56 = vld [vmem:[%s8835_s10 + $0x1c8] sm:$0xff]  ;;  %v5100_v57 = vld [vmem:[%s8835_s10 + $0x1e0] sm:$0xff] }
 0x708   :  { %6245 = vmatprep.subr.bf16.mxu0 %v6244_v58  ;;  %v6273_v58 = vpack.c.bf16 %v5094_v55, %v5092_v54  ;;  %v5154_v54 = vld [vmem:[%s8835_s10 + $0x2d0] sm:$0xff]  ;;  %v5157_v55 = vld [vmem:[%s8835_s10 + $0x2e8] sm:$0xff] }
 0x709   :  { %v2381_v16 = vpop.f32.mrb[46].mxu0  ;;  %v7947_v22 = vpop.f32.mrb[84].mxu1 }
 0x70a   :  { %v5719_v23 = vpop.f32.mrb[47].mxu0  ;;  %5071 = vmatmul.mubr.msk.f32.gmra.mrb[52].mxu0 %vm2408_vm11, %v2381_v16  ;;  %v5753_v11 = vpop.f32.mrb[85].mxu1  ;;  %v5123_v16 = vld [vmem:[%s8835_s10 + $0x238] sm:$0xff] }
 0x70b   :  { %6247 = vmatpush1.bf16.msra.mxu0 %v6246_v60  ;;  %2586 = vmatprep.mubr.f32.mxu0 %v6697_v6  ;;  %v5102_v60 = vld [vmem:[%s8835_s10 + $0x1f0] sm:$0xff]  ;;  %v5125_v23 = vld [vmem:[%s8835_s10 + $0x248] sm:$0xff]  ;;  %v5104_v11 = vld [vmem:[%s8835_s10 + $0x200] sm:$0xf] }
 0x70c   :  { %6249 = vmatprep.subr.bf16.mxu0 %v6248_v63  ;;  %v6281_v63 = vpack.c.bf16 %v5102_v60, %v5100_v57  ;;  %v6294_v17 = vpack.c.bf16 %v5125_v23, %v5123_v16  ;;  %v5160_v60 = vld [vmem:[%s8835_s10 + $0x300] sm:$0xff]  ;;  %v5169_v16 = vld [vmem:[%s8835_s10 + $0x348] sm:$0xff] }
 0x70d   :  { %v7957_v21 = vpop.f32.mrb[86].mxu1 }
 0x70e   :  { %v5764_v26 = vpop.f32.mrb[87].mxu1 }
 0x70f   :  { %6251 = vmatpush1.bf16.msra.mxu0 %v6250_v12  ;;  %v6290_v12 = vpack.c.bf16 %v5121_v7, %v5119_v2  ;;  %v5124_v26 = vld [vmem:[%s8835_s10 + $0x240] sm:$0xff] }
 0x710   :  { %6253 = vmatprep.subr.bf16.mxu0 %v6252_v15  ;;  %v6292_v15 = vpack.c.bf16 %v5120_v13, %v5118_v10  ;;  %v6296_v34 = vpack.c.bf16 %v5124_v26, %v5122_v18  ;;  %v5164_v10 = vld [vmem:[%s8835_s10 + $0x320] sm:$0xff]  ;;  %v5166_v13 = vld [vmem:[%s8835_s10 + $0x330] sm:$0xff] }
 0x711   :  { %v7968_v27 = vpop.f32.mrb[88].mxu1  ;;  %v6331_v23 = vpack.c.bf16 %v5166_v13, %v5164_v10  ;;  %v5172_v18 = vld [vmem:[%s8835_s10 + $0x360] sm:$0xf] }
 0x712   :  { %v5767_v53 = vpop.f32.mrb[89].mxu1  ;;  %v3294_v26 = vld [vmem:[%s8836_s11 + $0x40] sm:$0xff] }
 0x713   :  { %6255 = vmatpush1.bf16.msra.mxu0 %v6254_v29  ;;  %v5127_v29 = vld [vmem:[%s8835_s10 + $0x258] sm:$0xff] }
 0x714   :  { %5072 = vmatprep.subr.msk.mxu0 %vm2186_vm7, %v2291_v33  ;;  %v5129_v33 = vld [vmem:[%s8835_s10 + $0x268] sm:$0xff]  ;;  %v5131_v53 = vld [vmem:[%s8835_s10 + $0x278] sm:$0xff] }
 0x715   :  { %v7986_v46 = vpop.f32.mrb[90].mxu1  ;;  %v6298_v24 = vpack.c.bf16 %v5129_v33, %v5127_v29 }
 0x716   :  { %v5770_v14 = vpop.f32.mrb[91].mxu1 }
 0x717   :  { %5073 = vmatpush1.msk.msra.mxu0 %vm2186_vm7, %v2290_v42  ;;  %v5130_v42 = vld [vmem:[%s8835_s10 + $0x270] sm:$0xff]  ;;  %v5136_v14 = vld [vmem:[%s8835_s10 + $0x2a0] sm:$0xff] }
 0x718   :  { %5074 = vmatmul.mubr.msk.f32.vlgmr.msra.gmra.mrb[48].mxu0 %vm2408_vm11, %v7879_v49  ;;  %6264 = vmatprep.subr.bf16.mxu0 %v6263_v4  ;;  %v5099_v49 = vld [vmem:[%s8835_s10 + $0x1d8] sm:$0xff]  ;;  %v5132_v4 = vld [vmem:[%s8835_s10 + $0x280] sm:$0xff]  ;;  %v6308_v36 = vpack.c.bf16 %v5136_v14, %v5134_v48 }
 0x719   :  { %6266 = vmatpush1.bf16.msra.mxu0 %v6265_v45  ;;  %2592 = vmatprep.mubr.f32.mxu0 %v6697_v6  ;;  %v6275_v59 = vpack.c.bf16 %v5099_v49, %v5097_v56  ;;  %v5135_v45 = vld [vmem:[%s8835_s10 + $0x298] sm:$0xff]  ;;  %v5138_v49 = vld [vmem:[%s8835_s10 + $0x2b0] sm:$0xf] }
 0x71a   :  { %6268 = vmatprep.subr.bf16.mxu0 %v6267_v20  ;;  %v6304_v20 = vpack.c.bf16 %v5132_v4, %v5130_v42  ;;  %v5159_v56 = vld [vmem:[%s8835_s10 + $0x2f8] sm:$0xff]  ;;  %v3304_v4 = vld [vmem:[%s8836_s11 + $0x90] sm:$0xff] }
 0x71b   :  { %v6321_v62 = vpack.c.bf16 %v5159_v56, %v5157_v55 }
 0x71c   :  { %5075 = vmatmul.mubr.msk.f32.gmra.mrb[50].mxu0 %vm2408_vm11, %v7883_v43  ;;  %v5103_v43 = vld [vmem:[%s8835_s10 + $0x1f8] sm:$0xff] }
 0x71d   :  { %6270 = vmatpush1.bf16.msra.mxu0 %v6269_v32  ;;  %2598 = vmatprep.mubr.f32.mxu0 %v6697_v6  ;;  %v6279_v9 = vpack.c.bf16 %v5103_v43, %v5101_v1  ;;  %v5155_v32 = vld [vmem:[%s8835_s10 + $0x2d8] sm:$0xff]  ;;  %v5158_v1 = vld [vmem:[%s8835_s10 + $0x2f0] sm:$0xff]  ;;  %v5161_v43 = vld [vmem:[%s8835_s10 + $0x308] sm:$0xff] }
 0x71e   :  { %6272 = vmatprep.subr.bf16.mxu0 %v6271_v51  ;;  %v5152_v51 = vld [vmem:[%s8835_s10 + $0x2c0] sm:$0xff] }
 0x720   :  { %5076 = vmatmul.mubr.msk.f32.gmra.mrb[52].mxu0 %vm2408_vm11, %v7893_v44  ;;  %v5105_v44 = vld [vmem:[%s8835_s10 + $0x208] sm:$0xf] }
 0x721   :  { %6274 = vmatpush1.bf16.msra.mxu0 %v6273_v58  ;;  %2800 = vmatprep.mubr.f32.mxu0 %v6697_v6  ;;  %v6317_v58 = vpack.c.bf16 %v5155_v32, %v5153_v50 }
 0x722   :  { %6276 = vmatprep.subr.bf16.mxu0 %v6275_v59  ;;  %v6319_v59 = vpack.c.bf16 %v5154_v54, %v5152_v51 }
 0x725   :  { %6278 = vmatpush1.bf16.msra.mxu0 %v6277_v5  ;;  %v5163_v5 = vld [vmem:[%s8835_s10 + $0x318] sm:$0xff] }
 0x726   :  { %6280 = vmatprep.subr.bf16.mxu0 %v6279_v9  ;;  %v6323_v9 = vpack.c.bf16 %v5158_v1, %v5156_v0  ;;  %v6325_v57 = vpack.c.bf16 %v5163_v5, %v5161_v43 }
 0x729   :  { %6282 = vmatpush1.bf16.msra.mxu0 %v6281_v63  ;;  %v5162_v63 = vld [vmem:[%s8835_s10 + $0x310] sm:$0xff] }
 0x72a   :  { %5106 = vmatprep.subr.msk.mxu0 %vm2186_vm7, %v5105_v44  ;;  %v5165_v44 = vld [vmem:[%s8835_s10 + $0x328] sm:$0xff]  ;;  %v6327_v2 = vpack.c.bf16 %v5162_v63, %v5160_v60 }
 0x72d   :  { %5107 = vmatpush1.msk.msra.mxu0 %vm2186_vm7, %v5104_v11 }
 0x72e   :  { %6291 = vmatprep.subr.bf16.mxu0 %v6290_v12  ;;  %5108 = vmatmul.mubr.msk.f32.vlgmr.msra.gmra.mrb[48].mxu0 %vm2408_vm11, %v7881_v37  ;;  %v5133_v37 = vld [vmem:[%s8835_s10 + $0x288] sm:$0xff]  ;;  %v5168_v12 = vld [vmem:[%s8835_s10 + $0x340] sm:$0xff] }
 0x72f   :  { %6293 = vmatpush1.bf16.msra.mxu0 %v6292_v15  ;;  %2806 = vmatprep.mubr.f32.mxu0 %v6697_v6  ;;  %v6302_v41 = vpack.c.bf16 %v5133_v37, %v5131_v53  ;;  %v5170_v15 = vld [vmem:[%s8835_s10 + $0x350] sm:$0xff]  ;;  %v3301_v53 = vld [vmem:[%s8836_s11 + $0x78] sm:$0xff] }
 0x730   :  { %6295 = vmatprep.subr.bf16.mxu0 %v6294_v17  ;;  %v6335_v17 = vpack.c.bf16 %v5170_v15, %v5168_v12  ;;  %v8247_v37 = vpack.c.bf16 %v3301_v53, %v3300_v31 }
 0x732   :  { %5109 = vmatmul.mubr.msk.f32.gmra.mrb[50].mxu0 %vm2408_vm11, %v7885_v38  ;;  %v5137_v38 = vld [vmem:[%s8835_s10 + $0x2a8] sm:$0xff] }
 0x733   :  { %6297 = vmatpush1.bf16.msra.mxu0 %v6296_v34  ;;  %2812 = vmatprep.mubr.f32.mxu0 %v6697_v6  ;;  %v6306_v47 = vpack.c.bf16 %v5137_v38, %v5135_v45  ;;  %v3298_v34 = vld [vmem:[%s8836_s11 + $0x60] sm:$0xff]  ;;  %v3305_v45 = vld [vmem:[%s8836_s11 + $0x98] sm:$0xff] }
 0x734   :  { %6299 = vmatprep.subr.bf16.mxu0 %v6298_v24  ;;  %v3299_v24 = vld [vmem:[%s8836_s11 + $0x68] sm:$0xff]  ;;  %v8267_v38 = vpack.c.bf16 %v3305_v45, %v3304_v4 }
 0x735   :  { %v8237_v25 = vpack.c.bf16 %v3299_v24, %v3298_v34 }
 0x736   :  { %5110 = vmatmul.mubr.msk.f32.gmra.mrb[52].mxu0 %vm2408_vm11, %v7901_v61  ;;  %v5139_v61 = vld [vmem:[%s8835_s10 + $0x2b8] sm:$0xf] }
 0x737   :  { %6301 = vmatpush1.bf16.msra.mxu0 %v6300_v40  ;;  %3020 = vmatprep.mubr.f32.mxu0 %v6697_v6  ;;  %v3302_v40 = vld [vmem:[%s8836_s11 + $0x80] sm:$0xff] }
 0x738   :  { %6303 = vmatprep.subr.bf16.mxu0 %v6302_v41  ;;  %v3303_v41 = vld [vmem:[%s8836_s11 + $0x88] sm:$0xff] }
 0x739   :  { %v8257_v42 = vpack.c.bf16 %v3303_v41, %v3302_v40  ;;  %v3489_v40 = vld [vmem:[%s8837_s12] sm:$0xff]  ;;  %v3491_v41 = vld [vmem:[%s8837_s12 + $0x10] sm:$0xff] }
 0x73b   :  { %6305 = vmatpush1.bf16.msra.mxu0 %v6304_v20 }
 0x73c   :  { %6307 = vmatprep.subr.bf16.mxu0 %v6306_v47 }
 0x73f   :  { %6309 = vmatpush1.bf16.msra.mxu0 %v6308_v36 }
 0x740   :  { %5140 = vmatprep.subr.msk.mxu0 %vm2186_vm7, %v5139_v61 }
 0x743   :  { %5141 = vmatpush1.msk.msra.mxu0 %vm2186_vm7, %v5138_v49 }
 0x744   :  { %6318 = vmatprep.subr.bf16.mxu0 %v6317_v58  ;;  %5142 = vmatmul.mubr.msk.f32.vlgmr.msra.gmra.mrb[48].mxu0 %vm2408_vm11, %v7915_v52  ;;  %v5167_v52 = vld [vmem:[%s8835_s10 + $0x338] sm:$0xff] }
 0x745   :  { %6320 = vmatpush1.bf16.msra.mxu0 %v6319_v59  ;;  %3026 = vmatprep.mubr.f32.mxu0 %v6697_v6  ;;  %v6329_v7 = vpack.c.bf16 %v5167_v52, %v5165_v44 }
 0x746   :  { %6322 = vmatprep.subr.bf16.mxu0 %v6321_v62 }
 0x748   :  { %5143 = vmatmul.mubr.msk.f32.gmra.mrb[50].mxu0 %vm2408_vm11, %v7931_v8  ;;  %v5171_v8 = vld [vmem:[%s8835_s10 + $0x358] sm:$0xff] }
 0x749   :  { %6324 = vmatpush1.bf16.msra.mxu0 %v6323_v9  ;;  %3032 = vmatprep.mubr.f32.mxu0 %v6697_v6  ;;  %v6333_v11 = vpack.c.bf16 %v5171_v8, %v5169_v16 }
 0x74a   :  { %6326 = vmatprep.subr.bf16.mxu0 %v6325_v57 }
 0x74c   :  { %5144 = vmatmul.mubr.msk.f32.gmra.mrb[52].mxu0 %vm2408_vm11, %v7947_v22  ;;  %v5173_v22 = vld [vmem:[%s8835_s10 + $0x368] sm:$0xf] }
 0x74d   :  { %6328 = vmatpush1.bf16.msra.mxu0 %v6327_v2  ;;  %3240 = vmatprep.mubr.f32.mxu0 %v6697_v6 }
 0x74e   :  { %6330 = vmatprep.subr.bf16.mxu0 %v6329_v7 }
 0x751   :  { %6332 = vmatpush1.bf16.msra.mxu0 %v6331_v23 }
 0x752   :  { %6334 = vmatprep.subr.bf16.mxu0 %v6333_v11 }
 0x755   :  { %6336 = vmatpush1.bf16.msra.mxu0 %v6335_v17 }
 0x756   :  { %5174 = vmatprep.subr.msk.mxu0 %vm2186_vm7, %v5173_v22 }
 0x759   :  { %5175 = vmatpush1.msk.msra.mxu0 %vm2186_vm7, %v5172_v18 }
 0x75a   :  { %5176 = vmatmul.mubr.msk.f32.vlgmr.msra.gmra.mrb[48].mxu0 %vm2408_vm11, %v7957_v21  ;;  %v3295_v21 = vld [vmem:[%s8836_s11 + $0x48] sm:$0xff] }
 0x75b   :  { %3246 = vmatprep.mubr.f32.mxu0 %v6697_v6  ;;  %v8217_v29 = vpack.c.bf16 %v3295_v21, %v3294_v26 }
 0x75d   :  { %6351 = vmatpush1.bf16.msra.mxu1 %v8217_v29 }
 0x75e   :  { %5177 = vmatmul.mubr.msk.f32.gmra.mrb[50].mxu0 %vm2408_vm11, %v7968_v27  ;;  %6352 = vmatprep.subr.bf16.mxu1 %v6695_v3  ;;  %v3296_v27 = vld [vmem:[%s8836_s11 + $0x50] sm:$0xff] }
 0x75f   :  { %3252 = vmatprep.mubr.f32.mxu0 %v6697_v6 }
 0x762   :  { %5178 = vmatmul.mubr.msk.f32.gmra.mrb[52].mxu0 %vm2408_vm11, %v7986_v46  ;;  %v3297_v46 = vld [vmem:[%s8836_s11 + $0x58] sm:$0xff]  ;;  %s6699_s11 = smov [#allocation2]  }
 0x763   :  { %3561 = vmatprep.mubr.f32.mxu0 %v6697_v6  ;;  %v8227_v33 = vpack.c.bf16 %v3297_v46, %v3296_v27  ;;  %s4877_s1 = sshll.u32 %s6699_s11, 4  ;;  %s4878_s1 = int_to_ptr.vmem [resolvable:$true] %s4877_s1 }
 0x764   :  { %p6676_p1 = scmp.lt.s32.totalorder %s4878_s1, %s4878_s1 }
 0x765   :  { %6354 = vmatpush1.bf16.msra.mxu1 %v8227_v33 }
 0x766   :  { %6355 = vmatprep.subr.bf16.mxu1 %v6695_v3 }
 0x769   :  { %6357 = vmatpush1.bf16.msra.mxu1 %v8237_v25 }
 0x76a   :  { %6358 = vmatprep.subr.bf16.mxu1 %v6695_v3 }
 0x76d   :  { %6360 = vmatpush1.bf16.msra.mxu1 %v8247_v37 }
 0x76e   :  { %6361 = vmatprep.subr.bf16.mxu1 %v6695_v3 }
 0x771   :  { %6363 = vmatpush1.bf16.msra.mxu1 %v8257_v42 }
 0x772   :  { %6364 = vmatprep.subr.bf16.mxu1 %v6695_v3 }
 0x775   :  { %6366 = vmatpush1.bf16.msra.mxu1 %v8267_v38 }
 0x776   :  { %6367 = vmatprep.subr.bf16.mxu1 %v6695_v3 }
 0x82d   :  { %v8271_v20 = vpop.f32.mrb[48].mxu0 }
 0x82e   :  { %v8273_v47 = vpop.f32.mrb[49].mxu0  ;;  %v3380_v36 = vmul.f32 %v8271_v20, %v8271_v20 }
 0x82f   :  { %v3381_v48 = vmul.f32 %v8273_v47, %v8273_v47  ;;  %v3274_v51 = vsel %vm361_vm2, %v8273_v47, 0.0 }
 0x831   :  { %v8277_v14 = vpop.f32.mrb[50].mxu0  ;;  %v3395_v58 = vsel %vm361_vm2, %v3381_v48, 0.0 }
 0x832   :  { %v3265_v61 = vadd.f32 %v8277_v14, %v8271_v20  ;;  %v3382_v50 = vmul.f32 %v8277_v14, %v8277_v14  ;;  %v8285_v32 = vpop.f32.mrb[51].mxu0 }
 0x833   :  { %v3275_v54 = vsel %vm361_vm2, %v8285_v32, 0.0  ;;  %v3383_v55 = vmul.f32 %v8285_v32, %v8285_v32 }
 0x834   :  { %v3386_v56 = vadd.f32 %v3382_v50, %v3380_v36  ;;  %v3276_v49 = vadd.f32 %v3275_v54, %v3274_v51 }
 0x835   :  { %v3396_v59 = vsel %vm361_vm2, %v3383_v55, 0.0  ;;  %v8295_v62 = vpop.f32.mrb[52].mxu0  ;;  %v3482_v55 = vld [vmem:[%s8838_s13] sm:$0x1] }
 0x836   :  { %v3397_v0 = vadd.f32 %v3396_v59, %v3395_v58  ;;  %v3266_v1 = vsel %vm2186_vm7, %v8295_v62, 0.0  ;;  %v3384_v43 = vmul.f32 %v8295_v62, %v8295_v62  ;;  %v8301_v5 = vpop.f32.mrb[53].mxu0  ;;  %v3678_v58 = vld [vmem:[%s8841_s16] sm:$0xff]  ;;  %v3679_v59 = vld [vmem:[%s8841_s16 + $0x8] sm:$0xff] }
 0x837   :  { %v3267_v9 = vadd.f32 %v3266_v1, %v3265_v61  ;;  %v3278_v57 = vsel %vm3277_vm12, %v8301_v5, 0.0  ;;  %v3385_v60 = vmul.f32 %v8301_v5, %v8301_v5 }
 0x838   :  { %v3387_v63 = vsel %vm2186_vm7, %v3384_v43, 0.0  ;;  %v3279_v44 = vadd.f32 %v3278_v57, %v3276_v49  ;;  %v6406_v43 = vpack.c.bf16 %v3679_v59, %v3678_v58  ;;  %v3680_v57 = vld [vmem:[%s8841_s16 + $0x10] sm:$0xff] }
 0x839   :  { %v3268_v52 = vrot.slane %v3267_v9, 4  ;;  %v3388_v2 = vadd.f32 %v3387_v63, %v3386_v56  ;;  %v3398_v7 = vsel %vm3277_vm12, %v3385_v60, 0.0  ;;  %v3681_v60 = vld [vmem:[%s8841_s16 + $0x18] sm:$0xff] }
 0x83a   :  { %v3280_v10 = vrot.slane %v3279_v44, 4  ;;  %v3399_v13 = vadd.f32 %v3398_v7, %v3397_v0  ;;  %v3486_v0 = vld [vmem:[%s8839_s14] sm:$0x1]  ;;  %v6409_v63 = vpack.c.bf16 %v3681_v60, %v3680_v57  ;;  %v3684_v7 = vld [vmem:[%s8841_s16 + $0x30] sm:$0xff]  ;;  %v3952_v60 = vld [vmem:[%s8843_s18 + $0x8] sm:$0xff] }
 0x83b   :  { %v3269_v16 = vadd.f32 %v3268_v52, %v3267_v9  ;;  %v3389_v53 = vrot.slane %v3388_v2, 4  ;;  %v3683_v52 = vld [vmem:[%s8841_s16 + $0x28] sm:$0xff]  ;;  %v3951_v57 = vld [vmem:[%s8843_s18] sm:$0xff] }
 0x83c   :  { %v3281_v8 = vadd.f32 %v3280_v10, %v3279_v44  ;;  %v3400_v23 = vrot.slane %v3399_v13, 4  ;;  %v3682_v44 = vld [vmem:[%s8841_s16 + $0x20] sm:$0xff]  ;;  %v3685_v10 = vld [vmem:[%s8841_s16 + $0x38] sm:$0xff] }
 0x83d   :  { %v3270_v11 = vrot.slane %v3269_v16, 2 }
 0x83e   :  { %v3282_v12 = vrot.slane %v3281_v8, 2  ;;  %v3401_v15 = vadd.f32 %v3400_v23, %v3399_v13  ;;  %v6415_v13 = vpack.c.bf16 %v3685_v10, %v3684_v7  ;;  %v3955_v7 = vld [vmem:[%s8843_s18 + $0x20] sm:$0xff]  ;;  %v3956_v10 = vld [vmem:[%s8843_s18 + $0x28] sm:$0xff] }
 0x83f   :  { %v3271_v17 = vadd.f32 %v3270_v11, %v3269_v16  ;;  %v3686_v16 = vld [vmem:[%s8841_s16 + $0x40] sm:$0xff]  ;;  %v3688_v11 = vld [vmem:[%s8841_s16 + $0x50] sm:$0xff] }
 0x840   :  { %v3283_v22 = vadd.f32 %v3282_v12, %v3281_v8  ;;  %v3402_v18 = vrot.slane %v3401_v15, 2  ;;  %v3687_v8 = vld [vmem:[%s8841_s16 + $0x48] sm:$0xff]  ;;  %v3689_v12 = vld [vmem:[%s8841_s16 + $0x58] sm:$0xff] }
 0x841   :  { %v3272_v26 = vrot.slane %v3271_v17, 1  ;;  %v6418_v23 = vpack.c.bf16 %v3687_v8, %v3686_v16  ;;  %v3957_v16 = vld [vmem:[%s8843_s18 + $0x30] sm:$0xff]  ;;  %v3958_v8 = vld [vmem:[%s8843_s18 + $0x38] sm:$0xff] }
 0x842   :  { %v3284_v21 = vrot.slane %v3283_v22, 1  ;;  %v3403_v27 = vadd.f32 %v3402_v18, %v3401_v15  ;;  %v6421_v15 = vpack.c.bf16 %v3689_v12, %v3688_v11  ;;  %v3959_v11 = vld [vmem:[%s8843_s18 + $0x40] sm:$0xff]  ;;  %v3960_v12 = vld [vmem:[%s8843_s18 + $0x48] sm:$0xff] }
 0x843   :  { %v3273_v24 = vadd.f32 %v3272_v26, %v3271_v17  ;;  %v3690_v17 = vld [vmem:[%s8841_s16 + $0x60] sm:$0xff]  ;;  %v3692_v26 = vld [vmem:[%s8841_s16 + $0x70] sm:$0xff] }
 0x844   :  { %v3285_v46 = vadd.f32 %v3284_v21, %v3283_v22  ;;  %v3404_v34 = vrot.slane %v3403_v27, 1  ;;  %v3691_v22 = vld [vmem:[%s8841_s16 + $0x68] sm:$0xff]  ;;  %v3693_v21 = vld [vmem:[%s8841_s16 + $0x78] sm:$0xff] }
 0x845   :  { %v6424_v18 = vpack.c.bf16 %v3691_v22, %v3690_v17 }
 0x846   :  { %5179 = vmatprep.mubr.msk.f32.mxu1 %vm361_vm2, %v3285_v46  ;;  %v3405_v31 = vadd.f32 %v3404_v34, %v3403_v27  ;;  %v6427_v27 = vpack.c.bf16 %v3693_v21, %v3692_v26  ;;  %v3694_v46 = vld [vmem:[%s8841_s16 + $0x80] sm:$0xff]  ;;  %v3695_v34 = vld [vmem:[%s8841_s16 + $0x88] sm:$0xff] }
 0x847   :  { %3374 = vmatmul.mubr.f32.vlgmr.msra.gmra.mrb[92].mxu1 %v3273_v24  ;;  %v6430_v24 = vpack.c.bf16 %v3695_v34, %v3694_v46  ;;  %v3872_v21 = vld [vmem:[%s8842_s17] sm:$0x3]  ;;  %v5195_v46 = vld [vmem:[%s8843_s18 + $0x58] sm:$0xff]  ;;  %v5191_v34 = vld [vmem:[%s8842_s17 + $0x2] sm:$0x3] }
 0x848   :  { %6369 = vmatpush1.bf16.msra.mxu1 %v7848_v28  ;;  %5180 = vmatprep.mubr.msk.f32.mxu1 %vm361_vm2, %v3405_v31  ;;  %v3390_v28 = vadd.f32 %v3389_v53, %v3388_v2  ;;  %v6412_v2 = vpack.c.bf16 %v3683_v52, %v3682_v44  ;;  %v3696_v31 = vld [vmem:[%s8841_s16 + $0x90] sm:$0xff]  ;;  %v3697_v53 = vld [vmem:[%s8841_s16 + $0x98] sm:$0xff]  ;;  %v6463_v44 = vpack.c.bf16 %v3952_v60, %v3951_v57  ;;  %v5217_v60 = vld [vmem:[%s8843_s18 + $0xe0] sm:$0xff] }
 0x849   :  { %6370 = vmatprep.subr.bf16.mxu1 %v6695_v3  ;;  %v3954_v52 = vld [vmem:[%s8843_s18 + $0x18] sm:$0xff] }
 0x84c   :  { %6372 = vmatpush1.bf16.msra.mxu1 %v7854_v30  ;;  %v3391_v30 = vrot.slane %v3390_v28, 2 }
 0x84d   :  { %6373 = vmatprep.subr.bf16.mxu1 %v6695_v3 }
 0x850   :  { %6375 = vmatpush1.bf16.msra.mxu1 %v7864_v35  ;;  %v3392_v35 = vadd.f32 %v3391_v30, %v3390_v28  ;;  %v6433_v28 = vpack.c.bf16 %v3697_v53, %v3696_v31  ;;  %v5196_v31 = vld [vmem:[%s8843_s18 + $0x60] sm:$0xff]  ;;  %v5197_v53 = vld [vmem:[%s8843_s18 + $0x68] sm:$0xff] }
 0x851   :  { %6376 = vmatprep.subr.bf16.mxu1 %v6695_v3 }
 0x854   :  { %6378 = vmatpush1.bf16.msra.mxu1 %v7874_v39  ;;  %v3393_v39 = vrot.slane %v3392_v35, 1 }
 0x855   :  { %6379 = vmatprep.subr.bf16.mxu1 %v6695_v3 }
 0x858   :  { %6381 = vmatpush1.bf16.msra.mxu1 %v8217_v29  ;;  %v3394_v29 = vadd.f32 %v3393_v39, %v3392_v35 }
 0x859   :  { %6382 = vmatprep.subr.bf16.mxu1 %v6695_v3 }
 0x85c   :  { %6384 = vmatpush1.bf16.msra.mxu1 %v8227_v33  ;;  %v3490_v33 = vld [vmem:[%s8837_s12 + $0x8] sm:$0xff] }
 0x85d   :  { %6385 = vmatprep.subr.bf16.mxu1 %v6695_v3 }
 0x860   :  { %6387 = vmatpush1.bf16.msra.mxu1 %v8237_v25  ;;  %v3492_v25 = vld [vmem:[%s8837_s12 + $0x18] sm:$0xff] }
 0x861   :  { %6388 = vmatprep.subr.bf16.mxu1 %v6695_v3 }
 0x864   :  { %6390 = vmatpush1.bf16.msra.mxu1 %v8247_v37  ;;  %v6397_v37 = vpack.c.bf16 %v3492_v25, %v3490_v33 }
 0x865   :  { %6391 = vmatprep.subr.bf16.mxu1 %v6695_v3 }
 0x866   :  { %6398 = vmatprep.subr.bf16.mxu0 %v6397_v37 }
 0x868   :  { %6393 = vmatpush1.bf16.msra.mxu1 %v8257_v42  ;;  %v6399_v42 = vpack.c.bf16 %v3491_v41, %v3489_v40 }
 0x869   :  { %6394 = vmatprep.subr.bf16.mxu1 %v6695_v3 }
 0x86a   :  { %6400 = vmatpush1.bf16.msra.mxu0 %v6399_v42 }
 0x86b   :  { %6402 = vmatprep.subr.bf16.mxu0 %v6397_v37 }
 0x86c   :  { %6396 = vmatpush1.bf16.msra.mxu1 %v8267_v38 }
 0x86f   :  { %3474 = vmatmul.mubr.f32.vlgmr.msra.gmra.mrb[94].mxu1 %v3394_v29 }
 0x91a   :  { %v3375_v4 = vpop.f32.mrb[92].mxu1 }
 0x91b   :  { %v3377_v45 = vpop.f32.mrb[93].mxu1  ;;  %v3379_v38 = vmul.f32 0.005, %v3375_v4 }
 0x91d   :  { %v3480_v36 = vmul.f32 %v3379_v38, %v3379_v38 }
 0x942   :  { %v3475_v48 = vpop.f32.mrb[94].mxu1 }
 0x943   :  { %v3479_v61 = vmul.f32 0.005, %v3475_v48  ;;  %v3477_v50 = vpop.f32.mrb[95].mxu1 }
 0x945   :  { %v3481_v51 = vsub.f32 %v3479_v61, %v3480_v36 }
 0x947   :  { %v3483_v54 = vadd.f32 1e-05, %v3481_v51 }
 0x949   :  { %6669 = vrsqrt.f32 %v3483_v54 }
 0x953   :  { %v6670_v56 = vpop.eup %6669 }
 0x954   :  { %v3485_v49 = vmul.f32 %v6670_v56, %v3482_v55 }
 0x956   :  { %5181 = vmatmul.mubr.msk.f32.vlgmr.msra.gmra.mrb[54].mxu0 %vm3493_vm13, %v3485_v49  ;;  %v3487_v1 = vmul.f32 %v3485_v49, %v3379_v38 }
 0x957   :  { %6404 = vmatpush1.bf16.msra.mxu0 %v6399_v42  ;;  %3635 = vmatprep.mubr.f32.mxu0 %v6697_v6 }
 0x958   :  { %v3488_v9 = vsub.f32 %v3486_v0, %v3487_v1  ;;  %6405 = vmatprep.subr.bf16.mxu0 %v6695_v3 }
 0x95a   :  { %5182 = vmatmul.mubr.msk.f32.vlgmr.msra.gmra.mrb[56].mxu0 %vm3493_vm13, %v3488_v9  ;;  %v3677_v9 = vld [vmem:[%s8840_s15 + $0x8] sm:$0x3] }
 0x95b   :  { %6407 = vmatpush1.bf16.msra.mxu0 %v6406_v43 }
 0x95c   :  { %6408 = vmatprep.subr.bf16.mxu0 %v6695_v3 }
 0x95f   :  { %6410 = vmatpush1.bf16.msra.mxu0 %v6409_v63  ;;  %v3953_v63 = vld [vmem:[%s8843_s18 + $0x10] sm:$0xff] }
 0x960   :  { %6411 = vmatprep.subr.bf16.mxu0 %v6695_v3 }
 0x963   :  { %6413 = vmatpush1.bf16.msra.mxu0 %v6412_v2  ;;  %v6466_v2 = vpack.c.bf16 %v3954_v52, %v3953_v63  ;;  %v5218_v63 = vld [vmem:[%s8843_s18 + $0xe8] sm:$0xff] }
 0x964   :  { %6414 = vmatprep.subr.bf16.mxu0 %v6695_v3  ;;  %v6494_v52 = vpack.c.bf16 %v5218_v63, %v5217_v60  ;;  %v4697_v63 = vld [vmem:[%s8845_s20 + $0x70] sm:$0xff] }
 0x967   :  { %6416 = vmatpush1.bf16.msra.mxu0 %v6415_v13  ;;  %v6469_v13 = vpack.c.bf16 %v3956_v10, %v3955_v7  ;;  %v5231_v10 = vld [vmem:[%s8843_s18 + $0x130] sm:$0xff] }
 0x968   :  { %6417 = vmatprep.subr.bf16.mxu0 %v6695_v3 }
 0x96b   :  { %6419 = vmatpush1.bf16.msra.mxu0 %v6418_v23  ;;  %v6472_v23 = vpack.c.bf16 %v3958_v8, %v3957_v16 }
 0x96c   :  { %6420 = vmatprep.subr.bf16.mxu0 %v6695_v3 }
 0x96f   :  { %6422 = vmatpush1.bf16.msra.mxu0 %v6421_v15  ;;  %v6475_v15 = vpack.c.bf16 %v3960_v12, %v3959_v11  ;;  %v5237_v11 = vld [vmem:[%s8843_s18 + $0x140] sm:$0xff]  ;;  %v5238_v12 = vld [vmem:[%s8843_s18 + $0x148] sm:$0xff] }
 0x970   :  { %6423 = vmatprep.subr.bf16.mxu0 %v6695_v3 }
 0x973   :  { %6425 = vmatpush1.bf16.msra.mxu0 %v6424_v18 }
 0x974   :  { %6426 = vmatprep.subr.bf16.mxu0 %v6695_v3 }
 0x977   :  { %6428 = vmatpush1.bf16.msra.mxu0 %v6427_v27  ;;  %v5194_v27 = vld [vmem:[%s8843_s18 + $0x50] sm:$0xff] }
 0x978   :  { %6429 = vmatprep.subr.bf16.mxu0 %v6695_v3 }
 0x97b   :  { %6431 = vmatpush1.bf16.msra.mxu0 %v6430_v24  ;;  %v6448_v24 = vpack.c.bf16 %v5195_v46, %v5194_v27  ;;  %v5234_v46 = vld [vmem:[%s8842_s17 + $0x8] sm:$0x3] }
 0x97c   :  { %6432 = vmatprep.subr.bf16.mxu0 %v6695_v3 }
 0x97f   :  { %6434 = vmatpush1.bf16.msra.mxu0 %v6433_v28  ;;  %v6451_v28 = vpack.c.bf16 %v5197_v53, %v5196_v31  ;;  %v5240_v31 = vld [vmem:[%s8843_s18 + $0x158] sm:$0xff] }
 0x980   :  { %6462 = vmatprep.subr.bf16.mxu0 %v6695_v3 }
 0xa29   :  { %v3563_v30 = vpop.f32.mrb[54].mxu0 }
 0xa2a   :  { %v3645_v35 = vrot.slane %v3563_v30, %v7605_v19  ;;  %v3565_v39 = vpop.f32.mrb[55].mxu0  ;;  %v5198_v30 = vld [vmem:[%s8843_s18 + $0x70] sm:$0xff] }
 0xa2b   :  { %v3649_v29 = vrot.slane %v3565_v39, %v7605_v19 }
 0xa2c   :  { %v3650_v33 = vmul.f32 %v3645_v35, %v8271_v20  ;;  %v3652_v25 = vmul.f32 %v3645_v35, %v8277_v14  ;;  %v3654_v37 = vmul.f32 %v3645_v35, %v8295_v62  ;;  %v5199_v35 = vld [vmem:[%s8843_s18 + $0x78] sm:$0xff] }
 0xa2d   :  { %v3651_v40 = vmul.f32 %v3649_v29, %v8273_v47  ;;  %v3653_v41 = vmul.f32 %v3649_v29, %v8285_v32  ;;  %v3655_v42 = vmul.f32 %v3649_v29, %v8301_v5  ;;  %v3637_v4 = vpop.f32.mrb[56].mxu0  ;;  %v3676_v5 = vld [vmem:[%s8840_s15] sm:$0xff]  ;;  %v6454_v39 = vpack.c.bf16 %v5199_v35, %v5198_v30  ;;  %v5242_v30 = vld [vmem:[%s8843_s18 + $0x168] sm:$0xff] }
 0xa2e   :  { %v3659_v45 = vrot.slane %v3637_v4, %v7605_v19  ;;  %v3639_v38 = vpop.f32.mrb[57].mxu0  ;;  %5777 = vmatprep.mubr.msk.f32.mxu1 %vm3787_vm14, %v3676_v5  ;;  %v5200_v29 = vld [vmem:[%s8843_s18 + $0x80] sm:$0xff] }
 0xa2f   :  { %v3663_v48 = vrot.slane %v3639_v38, %v7605_v19  ;;  %v5209_v4 = vld [vmem:[%s8843_s18 + $0xa0] sm:$0xff] }
 0xa30   :  { %v3664_v36 = vadd.f32 %v3659_v45, %v3650_v33  ;;  %v3666_v61 = vadd.f32 %v3659_v45, %v3652_v25  ;;  %v3668_v50 = vadd.f32 %v3659_v45, %v3654_v37  ;;  %v5201_v33 = vld [vmem:[%s8843_s18 + $0x88] sm:$0xff]  ;;  %v5202_v37 = vld [vmem:[%s8843_s18 + $0x90] sm:$0xff]  ;;  %v5213_v5 = vld [vmem:[%s8843_s18 + $0xc0] sm:$0xff] }
 0xa31   :  { %v3665_v20 = vadd.f32 %v3663_v48, %v3651_v40  ;;  %v3667_v51 = vadd.f32 %v3663_v48, %v3653_v41  ;;  %v3669_v14 = vadd.f32 %v3663_v48, %v3655_v42  ;;  %v6457_v25 = vpack.c.bf16 %v5201_v33, %v5200_v29  ;;  %v5203_v40 = vld [vmem:[%s8843_s18 + $0x98] sm:$0xff]  ;;  %v5210_v45 = vld [vmem:[%s8843_s18 + $0xa8] sm:$0xff]  ;;  %v5206_v48 = vld [vmem:[%s8842_s17 + $0x4] sm:$0x3] }
 0xa32   :  { %v3670_v62 = vmax.f32 %v3664_v36, 0.0  ;;  %v3672_v47 = vmax.f32 %v3666_v61, 0.0  ;;  %v3674_v19 = vmax.f32 %v3668_v50, 0.0  ;;  %v6460_v41 = vpack.c.bf16 %v5203_v40, %v5202_v37  ;;  %v5223_v61 = vld [vmem:[%s8843_s18 + $0xf0] sm:$0xff]  ;;  %v5224_v50 = vld [vmem:[%s8843_s18 + $0xf8] sm:$0xff]  ;;  %v5246_v37 = vld [vmem:[%s8843_s18 + $0x188] sm:$0xff] }
 0xa33   :  { %v3671_v54 = vmax.f32 %v3665_v20, 0.0  ;;  %v3673_v55 = vmax.f32 %v3667_v51, 0.0  ;;  %v3675_v32 = vmax.f32 %v3669_v14, 0.0  ;;  %v6482_v36 = vpack.c.bf16 %v5210_v45, %v5209_v4  ;;  %v5211_v51 = vld [vmem:[%s8843_s18 + $0xb0] sm:$0xff]  ;;  %v5212_v14 = vld [vmem:[%s8843_s18 + $0xb8] sm:$0xff] }
 0xa34   :  { %v5244_v29 = vld [vmem:[%s8843_s18 + $0x178] sm:$0xff]  ;;  %v4685_v4 = vld [vmem:[%s8845_s20 + $0x10] sm:$0xff] }
 0xa35   :  { %5183 = vmatprep.mubr.msk.f32.mxu0 %vm361_vm2, %v3671_v54 }
 0xa36   :  { %3772 = vmatmul.mubr.f32.vlgmr.msra.gmra.mrb[58].mxu0 %v3670_v62  ;;  %v5220_v62 = vld [vmem:[%s8842_s17 + $0x6] sm:$0x3] }
 0xa37   :  { %5184 = vmatprep.mubr.msk.f32.mxu0 %vm361_vm2, %v3673_v55  ;;  %6464 = vmatpush3.bf16.msra.mxu0 %v6463_v44  ;;  %v6501_v55 = vpack.c.bf16 %v5224_v50, %v5223_v61  ;;  %v5229_v44 = vld [vmem:[%s8843_s18 + $0x120] sm:$0xff]  ;;  %v4688_v61 = vld [vmem:[%s8845_s20 + $0x28] sm:$0xff] }
 0xa38   :  { %6465 = vmatprep.subr.bf16.mxu0 %v6695_v3 }
 0xa3a   :  { %3777 = vmatmul.mubr.f32.gmra.mrb[60].mxu0 %v3672_v47  ;;  %v6485_v47 = vpack.c.bf16 %v5212_v14, %v5211_v51  ;;  %v4690_v51 = vld [vmem:[%s8845_s20 + $0x38] sm:$0xff] }
 0xa3b   :  { %5185 = vmatprep.mubr.msk.f32.mxu0 %vm361_vm2, %v3675_v32  ;;  %6467 = vmatpush3.bf16.msra.mxu0 %v6466_v2  ;;  %vm3873_vm2 = vcmask 80896   ;;  %v5225_v32 = vld [vmem:[%s8843_s18 + $0x100] sm:$0xff]  ;;  %v5230_v2 = vld [vmem:[%s8843_s18 + $0x128] sm:$0xff] }
 0xa3c   :  { %6468 = vmatprep.subr.bf16.mxu0 %v6695_v3  ;;  %v6510_v7 = vpack.c.bf16 %v5230_v2, %v5229_v44  ;;  %v4778_v2 = vld [vmem:[%s8847_s22 + $0x8] sm:$0xff] }
 0xa3e   :  { %3782 = vmatmul.mubr.f32.gmra.mrb[62].mxu0 %v3674_v19  ;;  %v5226_v19 = vld [vmem:[%s8843_s18 + $0x108] sm:$0xff] }
 0xa3f   :  { %5837 = vmatprep.mubr.msk.f32.mxu0 %vm6696_vm0, %v6697_v6  ;;  %6470 = vmatpush3.bf16.msra.mxu0 %v6469_v13  ;;  %v5232_v13 = vld [vmem:[%s8843_s18 + $0x138] sm:$0xff] }
 0xa40   :  { %6471 = vmatprep.subr.bf16.mxu0 %v6695_v3  ;;  %v6513_v16 = vpack.c.bf16 %v5232_v13, %v5231_v10  ;;  %v4780_v13 = vld [vmem:[%s8847_s22 + $0x18] sm:$0xff] }
 0xa43   :  { %6473 = vmatpush3.bf16.msra.mxu0 %v6472_v23 }
 0xa44   :  { %6474 = vmatprep.subr.bf16.mxu0 %v6695_v3 }
 0xa47   :  { %6476 = vmatpush3.bf16.msra.mxu0 %v6475_v15 }
 0xa48   :  { %6477 = vmatprep.subr.bf16.mxu0 %v6695_v3 }
 0xb09   :  { %v3773_v56 = vpop.f32.mrb[58].mxu0 }
 0xb0a   :  { %v3775_v49 = vpop.f32.mrb[59].mxu0 }
 0xb0b   :  { %v6504_v49 = vpack.c.bf16 %v5226_v19, %v5225_v32  ;;  %v4694_v32 = vld [vmem:[%s8845_s20 + $0x58] sm:$0xff] }
 0xb0d   :  { %v3778_v58 = vpop.f32.mrb[60].mxu0 }
 0xb0e   :  { %v6435_v59 = vpack.c.bf16 %v3778_v58, %v3773_v56  ;;  %v3780_v0 = vpop.f32.mrb[61].mxu0  ;;  %v5214_v56 = vld [vmem:[%s8843_s18 + $0xc8] sm:$0xff] }
 0xb0f   :  { %v6488_v58 = vpack.c.bf16 %v5214_v56, %v5213_v5  ;;  %v5228_v0 = vld [vmem:[%s8843_s18 + $0x118] sm:$0xff] }
 0xb10   :  { %6436 = vmatprep.subr.bf16.mxu1 %v6435_v59 }
 0xb11   :  { %v3783_v1 = vpop.f32.mrb[62].mxu0  ;;  %6438 = vmatpush3.bf16.msra.mxu1 %v6435_v59  ;;  %v5227_v59 = vld [vmem:[%s8843_s18 + $0x110] sm:$0xff] }
 0xb12   :  { %v3785_v43 = vpop.f32.mrb[63].mxu0  ;;  %5775 = vmatprep.subr.msk.mxu1 %vm2186_vm7, %v3783_v1 }
 0xb13   :  { %v5216_v43 = vld [vmem:[%s8843_s18 + $0xd8] sm:$0xff] }
 0xb15   :  { %5776 = vmatpush3.msk.msra.mxu1 %vm2186_vm7, %v3783_v1  ;;  %v5215_v1 = vld [vmem:[%s8843_s18 + $0xd0] sm:$0xff] }
 0xb16   :  { %5778 = vmatmul.mubr.msk.f32.vlgmr.msra.gmra.mrb[96].mxu1 %vm3787_vm14, %v3677_v9  ;;  %6439 = vmatprep.subr.bf16.mxu1 %v6695_v3  ;;  %v6507_v9 = vpack.c.bf16 %v5228_v0, %v5227_v59  ;;  %v6491_v57 = vpack.c.bf16 %v5216_v43, %v5215_v1 }
 0xb17   :  { %5784 = vmatprep.mubr.msk.f32.mxu1 %vm6696_vm0, %v6697_v6 }
 0xbe9   :  { %v5779_v17 = vpop.f32.mrb[96].mxu1 }
 0xbea   :  { %v3863_v22 = vpop.f32.mrb[97].mxu1 }
 0xbeb   :  { %v8484_v26 = vpack.c.bf16 %v5779_v17, %v3863_v22 }
 0xbed   :  { %6442 = vmatpush3.bf16.msk.msra.mxu1 %vm8480_vm1, %v8484_v26 }
 0xbee   :  { %6443 = vmatprep.subr.bf16.mxu1 %v6695_v3 }
 0xbf0   :  { %5785 = vmatmul.mubr.msk.f32.vlgmr.msra.gmra.mrb[98].mxu1 %vm3873_vm2, %v3872_v21 }
 0xbf1   :  { %6446 = vmatpush3.bf16.msk.msra.mxu1 %vm8480_vm1, %v8484_v26  ;;  %5791 = vmatprep.mubr.msk.f32.mxu1 %vm6696_vm0, %v6697_v6 }
 0xbf2   :  { %6447 = vmatprep.subr.bf16.mxu1 %v6695_v3 }
 0xbf4   :  { %5792 = vmatmul.mubr.msk.f32.vlgmr.msra.gmra.mrb[100].mxu1 %vm3873_vm2, %v5191_v34  ;;  %v6520_v34 = vpack.c.bf16 %v5238_v12, %v5237_v11  ;;  %v4783_v12 = vld [vmem:[%s8847_s22 + $0x30] sm:$0xff] }
 0xbf5   :  { %6449 = vmatpush3.bf16.msra.mxu1 %v6448_v24  ;;  %5814 = vmatprep.mubr.msk.f32.mxu1 %vm6696_vm0, %v6697_v6  ;;  %v5239_v24 = vld [vmem:[%s8843_s18 + $0x150] sm:$0xff] }
 0xbf6   :  { %6450 = vmatprep.subr.bf16.mxu1 %v6695_v3  ;;  %v6523_v53 = vpack.c.bf16 %v5240_v31, %v5239_v24  ;;  %v4789_v31 = vld [vmem:[%s8847_s22 + $0x60] sm:$0xff] }
 0xbf9   :  { %6452 = vmatpush3.bf16.msra.mxu1 %v6451_v28  ;;  %v5241_v28 = vld [vmem:[%s8843_s18 + $0x160] sm:$0xff] }
 0xbfa   :  { %6453 = vmatprep.subr.bf16.mxu1 %v6695_v3  ;;  %v6526_v35 = vpack.c.bf16 %v5242_v30, %v5241_v28  ;;  %v5248_v28 = vld [vmem:[%s8844_s19] ss:$0 sm:$0xff] }
 0xbfd   :  { %6455 = vmatpush3.bf16.msra.mxu1 %v6454_v39  ;;  %v5243_v39 = vld [vmem:[%s8843_s18 + $0x170] sm:$0xff] }
 0xbfe   :  { %6456 = vmatprep.subr.bf16.mxu1 %v6695_v3  ;;  %v6529_v33 = vpack.c.bf16 %v5244_v29, %v5243_v39 }
 0xc01   :  { %6458 = vmatpush3.bf16.msra.mxu1 %v6457_v25  ;;  %v5245_v25 = vld [vmem:[%s8843_s18 + $0x180] sm:$0xff] }
 0xc02   :  { %6459 = vmatprep.subr.bf16.mxu1 %v6695_v3  ;;  %v6532_v40 = vpack.c.bf16 %v5246_v37, %v5245_v25  ;;  %v4792_v25 = vld [vmem:[%s8847_s22 + $0x78] sm:$0xff] }
 0xc05   :  { %6461 = vmatpush3.bf16.msra.mxu1 %v6460_v41  ;;  %v4683_v41 = vld [vmem:[%s8845_s20] sm:$0xff] }
 0xc06   :  { %6481 = vmatprep.subr.bf16.mxu1 %v6695_v3 }
 0xcc3   :  { %v3947_v42 = vpop.f32.mrb[98].mxu1 }
 0xcc4   :  { %v5786_v38 = vpop.f32.mrb[99].mxu1  ;;  %5838 = vmatmul.mubr.msk.f32.vlgmr.msra.gmra.mrb[64].mxu0 %vm4047_vm3, %v3947_v42  ;;  %v4684_v42 = vld [vmem:[%s8845_s20 + $0x8] sm:$0xff] }
 0xcc5   :  { %6480 = vmatpush3.bf16.msk.msra.mxu0 %vm8480_vm1, %v8484_v26  ;;  %5844 = vmatprep.mubr.msk.f32.mxu0 %vm6696_vm0, %v6697_v6  ;;  %v6535_v45 = vpack.c.bf16 %v4684_v42, %v4683_v41  ;;  %v4686_v38 = vld [vmem:[%s8845_s20 + $0x18] sm:$0xff] }
 0xcc6   :  { %6496 = vmatprep.subr.bf16.mxu0 %v6695_v3 }
 0xcc7   :  { %v4032_v20 = vpop.f32.mrb[100].mxu1 }
 0xcc8   :  { %5815 = vmatmul.mubr.msk.f32.vlgmr.msra.gmra.mrb[102].mxu1 %vm4047_vm3, %v4032_v20  ;;  %5845 = vmatmul.mubr.msk.f32.vlgmr.msra.gmra.mrb[66].mxu0 %vm3873_vm2, %v5206_v48  ;;  %v5793_v54 = vpop.f32.mrb[101].mxu1  ;;  %v6538_v48 = vpack.c.bf16 %v4686_v38, %v4685_v4  ;;  %v4689_v20 = vld [vmem:[%s8845_s20 + $0x30] sm:$0xff] }
 0xcc9   :  { %6499 = vmatpush3.bf16.msk.msra.mxu0 %vm8480_vm1, %v8484_v26  ;;  %5874 = vmatprep.mubr.msk.f32.mxu0 %vm6696_vm0, %v6697_v6  ;;  %v6544_v14 = vpack.c.bf16 %v4690_v51, %v4689_v20  ;;  %v4691_v54 = vld [vmem:[%s8845_s20 + $0x40] sm:$0xff] }
 0xcca   :  { %6483 = vmatpush3.bf16.msra.mxu1 %v6482_v36  ;;  %6500 = vmatprep.subr.bf16.mxu0 %v6695_v3  ;;  %v4687_v36 = vld [vmem:[%s8845_s20 + $0x20] sm:$0xff] }
 0xccb   :  { %6484 = vmatprep.subr.bf16.mxu1 %v6695_v3  ;;  %5867 = vmatprep.mubr.msk.f32.mxu1 %vm6696_vm0, %v6697_v6  ;;  %v6541_v50 = vpack.c.bf16 %v4688_v61, %v4687_v36 }
 0xccc   :  { %5875 = vmatmul.mubr.msk.f32.vlgmr.msra.gmra.mrb[68].mxu0 %vm3873_vm2, %v5220_v62  ;;  %v4692_v62 = vld [vmem:[%s8845_s20 + $0x48] sm:$0xff] }
 0xccd   :  { %6502 = vmatpush3.bf16.msra.mxu0 %v6501_v55  ;;  %5897 = vmatprep.mubr.msk.f32.mxu0 %vm6696_vm0, %v6697_v6  ;;  %v6547_v55 = vpack.c.bf16 %v4692_v62, %v4691_v54 }
 0xcce   :  { %6486 = vmatpush3.bf16.msra.mxu1 %v6485_v47  ;;  %6503 = vmatprep.subr.bf16.mxu0 %v6695_v3  ;;  %v4693_v47 = vld [vmem:[%s8845_s20 + $0x50] sm:$0xff] }
 0xccf   :  { %6487 = vmatprep.subr.bf16.mxu1 %v6695_v3  ;;  %v6550_v19 = vpack.c.bf16 %v4694_v32, %v4693_v47 }
 0xcd1   :  { %6505 = vmatpush3.bf16.msra.mxu0 %v6504_v49 }
 0xcd2   :  { %6489 = vmatpush3.bf16.msra.mxu1 %v6488_v58  ;;  %6506 = vmatprep.subr.bf16.mxu0 %v6695_v3 }
 0xcd3   :  { %6490 = vmatprep.subr.bf16.mxu1 %v6695_v3 }
 0xcd5   :  { %6508 = vmatpush3.bf16.msra.mxu0 %v6507_v9  ;;  %v4695_v9 = vld [vmem:[%s8845_s20 + $0x60] sm:$0xff] }
 0xcd6   :  { %6492 = vmatpush3.bf16.msra.mxu1 %v6491_v57  ;;  %6509 = vmatprep.subr.bf16.mxu0 %v6695_v3  ;;  %v4696_v57 = vld [vmem:[%s8845_s20 + $0x68] sm:$0xff] }
 0xcd7   :  { %6493 = vmatprep.subr.bf16.mxu1 %v6695_v3  ;;  %v6553_v60 = vpack.c.bf16 %v4696_v57, %v4695_v9 }
 0xcd9   :  { %6511 = vmatpush3.bf16.msra.mxu0 %v6510_v7  ;;  %v4779_v7 = vld [vmem:[%s8847_s22 + $0x10] sm:$0xff] }
 0xcda   :  { %6495 = vmatpush3.bf16.msra.mxu1 %v6494_v52  ;;  %6512 = vmatprep.subr.bf16.mxu0 %v6695_v3  ;;  %v4777_v52 = vld [vmem:[%s8847_s22] sm:$0xff] }
 0xcdb   :  { %6515 = vmatprep.subr.bf16.mxu1 %v6695_v3  ;;  %v6559_v10 = vpack.c.bf16 %v4778_v2, %v4777_v52 }
 0xcdd   :  { %6514 = vmatpush3.bf16.msra.mxu0 %v6513_v16  ;;  %v6562_v16 = vpack.c.bf16 %v4780_v13, %v4779_v7 }
 0xcde   :  { %6534 = vmatprep.subr.bf16.mxu0 %v6695_v3 }
 0xd97   :  { %v4190_v8 = vpop.f32.mrb[64].mxu0 }
 0xd98   :  { %v5839_v23 = vpop.f32.mrb[65].mxu0 }
 0xd99   :  { %v4782_v23 = vld [vmem:[%s8847_s22 + $0x28] sm:$0xff] }
 0xd9b   :  { %v4117_v15 = vpop.f32.mrb[102].mxu1  ;;  %v4265_v17 = vpop.f32.mrb[66].mxu0 }
 0xd9c   :  { %v8643_v22 = vadd.f32 %v4190_v8, %v4117_v15  ;;  %v5846_v21 = vpop.f32.mrb[67].mxu0  ;;  %5868 = vmatmul.mubr.msk.f32.vlgmr.msra.gmra.mrb[104].mxu1 %vm4047_vm3, %v4265_v17  ;;  %v5816_v27 = vpop.f32.mrb[103].mxu1  ;;  %v4781_v8 = vld [vmem:[%s8847_s22 + $0x20] sm:$0xff]  ;;  %v4784_v15 = vld [vmem:[%s8847_s22 + $0x38] sm:$0xff] }
 0xd9d   :  { %6518 = vmatpush3.bf16.msk.msra.mxu1 %vm8480_vm1, %v8484_v26  ;;  %5904 = vmatprep.mubr.msk.f32.mxu1 %vm6696_vm0, %v6697_v6  ;;  %v6565_v11 = vpack.c.bf16 %v4782_v23, %v4781_v8  ;;  %v6568_v17 = vpack.c.bf16 %v4784_v15, %v4783_v12  ;;  %v4786_v21 = vld [vmem:[%s8847_s22 + $0x48] sm:$0xff] }
 0xd9e   :  { %6519 = vmatprep.subr.bf16.mxu1 %v6695_v3 }
 0xd9f   :  { %v4425_v18 = vpop.f32.mrb[68].mxu0 }
 0xda0   :  { %5898 = vmatmul.mubr.msk.f32.vlgmr.msra.gmra.mrb[70].mxu0 %vm4047_vm3, %v4425_v18  ;;  %5905 = vmatmul.mubr.msk.f32.vlgmr.msra.gmra.mrb[106].mxu1 %vm3873_vm2, %v5234_v46  ;;  %v5876_v26 = vpop.f32.mrb[69].mxu0  ;;  %v4787_v46 = vld [vmem:[%s8847_s22 + $0x50] sm:$0xff]  ;;  %v4790_v18 = vld [vmem:[%s8847_s22 + $0x68] sm:$0xff] }
 0xda1   :  { %6521 = vmatpush3.bf16.msra.mxu1 %v6520_v34  ;;  %5927 = vmatprep.mubr.msk.f32.mxu1 %vm6696_vm0, %v6697_v6  ;;  %v4788_v34 = vld [vmem:[%s8847_s22 + $0x58] sm:$0xff]  ;;  %v6577_v26 = vpack.c.bf16 %v4790_v18, %v4789_v31 }
 0xda2   :  { %6522 = vmatprep.subr.bf16.mxu1 %v6695_v3  ;;  %5962 = vmatprep.mubr.msk.f32.mxu0 %vm6696_vm0, %v6697_v6  ;;  %v6574_v24 = vpack.c.bf16 %v4788_v34, %v4787_v46 }
 0xda3   :  { %6536 = vmatpush3.bf16.msra.mxu0 %v6535_v45  ;;  %v5250_v45 = vld [vmem:[%s8848_s23] ss:$0 sm:$0xff] }
 0xda4   :  { %6537 = vmatprep.subr.bf16.mxu0 %v6695_v3 }
 0xda5   :  { %6524 = vmatpush3.bf16.msra.mxu1 %v6523_v53 }
 0xda6   :  { %6525 = vmatprep.subr.bf16.mxu1 %v6695_v3 }
 0xda7   :  { %6539 = vmatpush3.bf16.msra.mxu0 %v6538_v48 }
 0xda8   :  { %6540 = vmatprep.subr.bf16.mxu0 %v6695_v3 }
 0xda9   :  { %6527 = vmatpush3.bf16.msra.mxu1 %v6526_v35 }
 0xdaa   :  { %6528 = vmatprep.subr.bf16.mxu1 %v6695_v3 }
 0xdab   :  { %6542 = vmatpush3.bf16.msra.mxu0 %v6541_v50 }
 0xdac   :  { %6543 = vmatprep.subr.bf16.mxu0 %v6695_v3 }
 0xdad   :  { %6530 = vmatpush3.bf16.msra.mxu1 %v6529_v33  ;;  %v4791_v33 = vld [vmem:[%s8847_s22 + $0x70] sm:$0xff] }
 0xdae   :  { %6531 = vmatprep.subr.bf16.mxu1 %v6695_v3  ;;  %v6580_v37 = vpack.c.bf16 %v4792_v25, %v4791_v33 }
 0xdaf   :  { %6545 = vmatpush3.bf16.msra.mxu0 %v6544_v14 }
 0xdb0   :  { %6546 = vmatprep.subr.bf16.mxu0 %v6695_v3 }
 0xdb1   :  { %6533 = vmatpush3.bf16.msra.mxu1 %v6532_v40 }
 0xdb2   :  { %6558 = vmatprep.subr.bf16.mxu1 %v6695_v3 }
 0xdb3   :  { %6548 = vmatpush3.bf16.msra.mxu0 %v6547_v55 }
 0xdb4   :  { %6549 = vmatprep.subr.bf16.mxu0 %v6695_v3 }
 0xdb7   :  { %6551 = vmatpush3.bf16.msra.mxu0 %v6550_v19 }
 0xdb8   :  { %6552 = vmatprep.subr.bf16.mxu0 %v6695_v3 }
 0xdbb   :  { %6554 = vmatpush3.bf16.msra.mxu0 %v6553_v60 }
 0xdbc   :  { %6555 = vmatprep.subr.bf16.mxu0 %v6695_v3 }
 0xe6f   :  { %v4349_v5 = vpop.f32.mrb[104].mxu1 }
 0xe70   :  { %v4353_v56 = vadd.f32 %v4349_v5, %v8643_v22  ;;  %v5869_v49 = vpop.f32.mrb[105].mxu1  ;;  %v4785_v22 = vld [vmem:[%s8847_s22 + $0x40] sm:$0xff]  ;;  %s6671_s22 = scalar_lea.vmem %s4878_s1, 32 }
 0xe71   :  { %v6571_v27 = vpack.c.bf16 %v4786_v21, %v4785_v22  ;;  %p6672_p0 = scmp.ne.s32.totalorder %s4878_s1, %s6671_s22  ;;  %p6677_p2 = scmp.lt.s32.totalorder %s6671_s22, %s6671_s22 }
 0xe73   :  { %v4509_v58 = vpop.f32.mrb[70].mxu0  ;;  %v4585_v59 = vpop.f32.mrb[106].mxu1  ;;  %p6678_p3 = por %p6677_p2, %p6676_p1 }
 0xe74   :  { %v4513_v0 = vadd.f32 %v4509_v58, %v4353_v56  ;;  %v5906_v1 = vpop.f32.mrb[107].mxu1  ;;  %5928 = vmatmul.mubr.msk.f32.vlgmr.msra.gmra.mrb[108].mxu1 %vm4047_vm3, %v4585_v59  ;;  %v5899_v43 = vpop.f32.mrb[71].mxu0 }
 0xe75   :  { %5997 = vmatprep.mubr.msk.f32.mxu1 %vm6696_vm0, %v6697_v6  ;;  %v4698_v6 = vld [vmem:[%s8845_s20 + $0x78] sm:$0xff]  ;;  %6560 = vmatpush3.bf16.msra.mxu1 %v6559_v10  ;;  %p6679_p4 = pnand %p6678_p3, %p6672_p0 }
 0xe76   :  { %v6556_v44 = vpack.c.bf16 %v4698_v6, %v4697_v63  ;;  %6561 = vmatprep.subr.bf16.mxu1 %v6695_v3 }
 0xe78   :  { %6557 = vmatpush3.bf16.msra.mxu0 %v6556_v44 }
 0xe79   :  { %6563 = vmatpush3.bf16.msra.mxu1 %v6562_v16 }
 0xe7a   :  { %6564 = vmatprep.subr.bf16.mxu1 %v6695_v3 }
 0xe7d   :  { %6566 = vmatpush3.bf16.msra.mxu1 %v6565_v11 }
 0xe7e   :  { %6567 = vmatprep.subr.bf16.mxu1 %v6695_v3 }
 0xe81   :  { %6569 = vmatpush3.bf16.msra.mxu1 %v6568_v17 }
 0xe82   :  { %6570 = vmatprep.subr.bf16.mxu1 %v6695_v3 }
 0xe85   :  { %6572 = vmatpush3.bf16.msra.mxu1 %v6571_v27 }
 0xe86   :  { %6573 = vmatprep.subr.bf16.mxu1 %v6695_v3 }
 0xe89   :  { %6575 = vmatpush3.bf16.msra.mxu1 %v6574_v24 }
 0xe8a   :  { %6576 = vmatprep.subr.bf16.mxu1 %v6695_v3 }
 0xe8d   :  { %6578 = vmatpush3.bf16.msra.mxu1 %v6577_v26 }
 0xe8e   :  { %6579 = vmatprep.subr.bf16.mxu1 %v6695_v3  ;;  %v5249_v3 = vld [vmem:[%s8846_s21] ss:$0 sm:$0xff] }
 0xe91   :  { %6581 = vmatpush3.bf16.msra.mxu1 %v6580_v37 }
 0xf47   :  { %v4669_v53 = vpop.f32.mrb[108].mxu1 }
 0xf48   :  { %v4673_v30 = vadd.f32 %v4669_v53, %v4513_v0  ;;  %v5929_v35 = vpop.f32.mrb[109].mxu1 }
 0xf4a   :  { %v4681_v39 = vadd.f32 %v5248_v28, %v4673_v30 }
 0xf4c   :  { %v4682_v29 = vmax.f32 %v4681_v39, 0.0 }
 0xf4e   :  { %5963 = vmatmul.mubr.f32.vlgmr.msra.gmra.mrb[72].mxu0 %v4682_v29 }
0x1021   :  { %v4772_v40 = vpop.f32.mrb[72].mxu0 }
0x1022   :  { %v4773_v41 = vadd.f32 %v5249_v3, %v4772_v40  ;;  %v5964_v42 = vpop.f32.mrb[73].mxu0 }
0x1024   :  { %v4776_v4 = vmax.f32 %v4773_v41, 0.0 }
0x1026   :  { %5998 = vmatmul.mubr.f32.vlgmr.msra.gmra.mrb[110].mxu1 %v4776_v4 }
0x10f9   :  { %v4866_v38 = vpop.f32.mrb[110].mxu1 }
0x10fa   :  { %v4867_v48 = vadd.f32 %v5250_v45, %v4866_v38  ;;  %v5999_v36 = vpop.f32.mrb[111].mxu1 }
0x10fc   :  { %4870 = vst [vmem:[#allocation2] sm:$0x3] %v4867_v48 }
0x10fd   :  { %6682 = shalt.err (!%p6679_p4)
}
0x10fe   :  { %s6683_s26 = scalar_lea.hbm %s8849_s24, 32 }
0x10ff   :  { %p6684_p5 = scmp.ne.s32.totalorder %s8849_s24, %s6683_s26  ;;  %p6687_p6 = scmp.lt.u32.totalorder %s6683_s26, %s8849_s24 }
0x1101   :  { %p6689_p7 = pnand %p6687_p6, %p6684_p5 }
0x1103   :  { %6692 = shalt.err (!%p6689_p7)
}
0x1104   :  { %4880 = dma.vmem_to_hbm [thread:$0]  %s4878_s1, 32, %s8849_s24, [#allocation3]  }
0x1105   :  { %6693 = dma.done.wait [#allocation3], 32  }
0x1106   :  { %6694 = vsyncadd [#allocation3], 4294967264 }
0x1107   :  { %4884 = vsyncpa [#allocation3], 1 }

</bundles_post_ra>
